<compile_context>
chip_gen: v6e
topology: v6e:2x2x1
jax: 0.10.0
libtpu: 0.0.40
codegen_flags: <defaults>
</compile_context>

<pallas_src>
import functools

import jax
import jax.numpy as jnp
from jax.experimental import pallas as pl
from jax.experimental.pallas import tpu as pltpu

MAX_WORDS = 20000
EMB_SIZE = 100
HIDDEN = 64
NUM_CLASSES = 2
FC1_OUT = 16
MAX_LENGTH = 100   # module truncates sequences at this length

# Padded, lane-aligned kernel layout.
EP = 128           # emb dim padded 100 -> 128 (K of the input projection)
HP = 128           # per-gate width padded 64 -> 128 (one full vreg of lanes)
GP = 3 * HP        # r | z | n gate blocks at lane offsets 0 / 128 / 256
F1P = 128          # fc1 out padded 16 -> 128
CP = 128           # logits padded 2 -> 128 (lane-dense output store)
T_ALIGN = 16       # bf16 sublane tile -> layout-free (B,t,EP)->(B*t,EP) reshape


def _rnn_kernel(x_ref,      # (B, t_pad, EP)  bf16 whole embedded sequence
                w_in_ref,   # (EP, GP)        bf16
                b_in_ref,   # (1, GP)         f32
                w_h_ref,    # (HP, GP)        bf16
                b_h_ref,    # (1, GP)         f32
                w1_ref,     # (HP, F1P)       bf16
                b1_ref,     # (1, F1P)        f32
                w2_ref,     # (F1P, CP)       bf16
                b2_ref,     # (1, CP)         f32
                o_ref,      # (B, CP)         f32 output (padded logits)
                *, t_eff):
    B, t_pad, _ = x_ref.shape

    # ---- Whole-sequence input projection: one big MXU matmul ---------------
    # t_pad is a multiple of 16, so this reshape is layout-free for bf16.
    x_flat = x_ref[...].reshape(B * t_pad, EP)                      # bf16
    tmp_i_all = (
        jnp.dot(x_flat, w_in_ref[...], preferred_element_type=jnp.float32)
        + b_in_ref[...]                                             # b_in folded once
    ).reshape(B, t_pad, GP)                                         # f32, VMEM-resident

    w_h = w_h_ref[...]                                              # bf16 (HP, GP)
    b_h = jnp.broadcast_to(b_h_ref[...], (B, GP))                   # hoisted bcast

    hid = jnp.zeros((B, HP), jnp.float32)
    # Exactly t_eff steps (static) -> no tail mask on the serial chain.
    for j in range(t_eff):
        tmp_i = tmp_i_all[:, j, :]                                  # (B, GP) f32, static slice
        tmp_h = jnp.dot(hid.astype(jnp.bfloat16), w_h,
                        preferred_element_type=jnp.float32) + b_h
        # Each gate lives on its own 128-lane tile -> free aligned slices.
        r_t = jnp.tanh(tmp_i[:, 0:HP]       + tmp_h[:, 0:HP])
        z_t = jnp.tanh(tmp_i[:, HP:2 * HP]  + tmp_h[:, HP:2 * HP])
        n_t = jnp.tanh(tmp_i[:, 2 * HP:GP]  + r_t * tmp_h[:, 2 * HP:GP])
        hid = (1.0 - z_t) * n_t + z_t * hid

    # ---- Head: fc1 -> tanh -> fc2 ------------------------------------------
    h1 = jnp.tanh(
        jnp.dot(hid.astype(jnp.bfloat16), w1_ref[...],
                preferred_element_type=jnp.float32) + b1_ref[...])
    o_ref[...] = (
        jnp.dot(h1.astype(jnp.bfloat16), w2_ref[...],
                preferred_element_type=jnp.float32) + b2_ref[...])


def tanh_rnn_forward(tokens, kparams):
    """tokens: (B, T) (or (T,)) int32 ids; kparams: prepare_params() output.
    Returns (B, NUM_CLASSES) float32 logits."""
    if tokens.ndim == 1:
        tokens = tokens[None, :]
    B, T = tokens.shape
    t_eff = min(T, MAX_LENGTH)                    # static truncation (matches the break)
    t_pad = ((t_eff + T_ALIGN - 1) // T_ALIGN) * T_ALIGN

    # Embedding gather (glue); table already lane-padded to EP and bf16.
    x = jnp.take(kparams["embedding"], tokens[:, :t_eff], axis=0)   # (B, t_eff, EP)
    x = jnp.pad(x, ((0, 0), (0, t_pad - t_eff), (0, 0)))            # zero tail (unused)

    vmem = pl.BlockSpec(memory_space=pltpu.MemorySpace.VMEM)
    out_p = pl.pallas_call(
        functools.partial(_rnn_kernel, t_eff=t_eff),
        out_shape=jax.ShapeDtypeStruct((B, CP), jnp.float32),
        in_specs=[vmem] * 9,                       # whole arrays live in VMEM (<1 MiB total)
        out_specs=vmem,
    )(x, kparams["w_in"], kparams["b_in"],
      kparams["w_h"], kparams["b_h"],
      kparams["w1"], kparams["b1"],
      kparams["w2"], kparams["b2"])
    return out_p[:, :NUM_CLASSES]


def init_params(key):
    """Reference-layout (PyTorch-like) parameters: f32, unpadded, W as (in,out)."""
    ks = jax.random.split(key, 5)

    def lin(k, fan_in, fan_out):
        bound = 1.0 / float(fan_in) ** 0.5
        kw, kb = jax.random.split(k)
        w = jax.random.uniform(kw, (fan_in, fan_out), jnp.float32, -bound, bound)
        b = jax.random.uniform(kb, (1, fan_out), jnp.float32, -bound, bound)
        return w, b

    w_in, b_in = lin(ks[1], EMB_SIZE, 3 * HIDDEN)
    w_h, b_h = lin(ks[2], HIDDEN, 3 * HIDDEN)
    w1, b1 = lin(ks[3], HIDDEN, FC1_OUT)
    w2, b2 = lin(ks[4], FC1_OUT, NUM_CLASSES)
    return {
        "embedding": jax.random.normal(ks[0], (MAX_WORDS, EMB_SIZE), jnp.float32),
        "w_in": w_in, "b_in": b_in,
        "w_h": w_h, "b_h": b_h,
        "w1": w1, "b1": b1,
        "w2": w2, "b2": b2,
    }


def prepare_params(params):
    """Repack reference params into the kernel layout:
    - each r/z/n gate on its own 128-lane tile (zero-padded columns),
    - contraction dims padded to 128 (zero-padded rows),
    - weights cast to bf16 (MXU-native), biases kept f32 (f32 accumulate).
    Zero padding keeps the padded hidden lanes exactly zero through the
    recurrence, so results match the unpadded math (up to bf16 rounding)."""
    def pad_to(a, shape):
        return jnp.pad(a, [(0, s - d) for d, s in zip(a.shape, shape)])

    def gate_pad_cols(a):  # (..., 3H) -> (..., 3*HP): gate g at lane g*HP
        r, z, n = jnp.split(a, 3, axis=-1)
        return jnp.concatenate(
            [pad_to(g, g.shape[:-1] + (HP,)) for g in (r, z, n)], axis=-1)

    return {
        "embedding": pad_to(params["embedding"], (MAX_WORDS, EP)).astype(jnp.bfloat16),
        "w_in": gate_pad_cols(pad_to(params["w_in"], (EP, 3 * HIDDEN))).astype(jnp.bfloat16),
        "b_in": gate_pad_cols(params["b_in"]).astype(jnp.float32),
        "w_h": gate_pad_cols(pad_to(params["w_h"], (HP, 3 * HIDDEN))).astype(jnp.bfloat16),
        "b_h": gate_pad_cols(params["b_h"]).astype(jnp.float32),
        "w1": pad_to(params["w1"], (HP, F1P)).astype(jnp.bfloat16),
        "b1": pad_to(params["b1"], (1, F1P)).astype(jnp.float32),
        "w2": pad_to(params["w2"], (F1P, CP)).astype(jnp.bfloat16),
        "b2": pad_to(params["b2"], (1, CP)).astype(jnp.float32),
    }


def reference_forward(tokens, params):
    """Pure-JAX f32 reference mirroring the PyTorch forward."""
    if tokens.ndim == 1:
        tokens = tokens[None, :]
    x = jnp.take(params["embedding"], tokens, axis=0)  # (B, T, E)
    B, T, _ = x.shape
    hid = jnp.zeros((B, HIDDEN), jnp.float32)
    for l in range(min(T, MAX_LENGTH)):
        tmp_i = x[:, l, :] @ params["w_in"] + params["b_in"]
        tmp_h = hid @ params["w_h"] + params["b_h"]
        r_i, z_i, n_i = jnp.split(tmp_i, 3, axis=1)
        r_h, z_h, n_h = jnp.split(tmp_h, 3, axis=1)
        r_t = jnp.tanh(r_i + r_h)
        z_t = jnp.tanh(z_i + z_h)
        n_t = jnp.tanh(n_i + r_t * n_h)
        hid = (1.0 - z_t) * n_t + z_t * hid
    h1 = jnp.tanh(hid @ params["w1"] + params["b1"])
    return h1 @ params["w2"] + params["b2"]


if __name__ == "__main__":
    key = jax.random.PRNGKey(0)
    kp_key, kx_key = jax.random.split(key)
    params = init_params(kp_key)
    kparams = prepare_params(params)

    B, T = 2, 20   # T not a multiple of 16 -> exercises the zero-padded time tail
    tokens = jax.random.randint(kx_key, (B, T), 0, MAX_WORDS, dtype=jnp.int32)

    out = jax.block_until_ready(tanh_rnn_forward(tokens, kparams))
    ref = jax.block_until_ready(reference_forward(tokens, params))
    assert out.shape == (B, NUM_CLASSES)
    # Kernel uses bf16 weight/input operands (f32 accumulate & gate math),
    # the reference is pure f32 -> loose tolerance for the bf16 rounding.
    assert jnp.allclose(out, ref, atol=3e-2, rtol=3e-2)
    print("KERNEL_OK")
</pallas_src>

<mosaic_0001>
module attributes {stable_mosaic.version = 11 : i64} {
  func.func @_rnn_kernel(%arg0: memref<2x32x128xbf16, #tpu.memory_space<vmem>>, %arg1: memref<128x384xbf16, #tpu.memory_space<vmem>>, %arg2: memref<1x384xf32, #tpu.memory_space<vmem>>, %arg3: memref<128x384xbf16, #tpu.memory_space<vmem>>, %arg4: memref<1x384xf32, #tpu.memory_space<vmem>>, %arg5: memref<128x128xbf16, #tpu.memory_space<vmem>>, %arg6: memref<1x128xf32, #tpu.memory_space<vmem>>, %arg7: memref<128x128xbf16, #tpu.memory_space<vmem>>, %arg8: memref<1x128xf32, #tpu.memory_space<vmem>>, %arg9: memref<2x128xf32, #tpu.memory_space<vmem>>) attributes {dimension_semantics = [], scalar_prefetch = 0 : i64, scratch_operands = 0 : i64, tpu.core_type = #tpu.core_type<tc>} {
    %c0 = arith.constant 0 : index
    %c0_0 = arith.constant 0 : index
    %c0_1 = arith.constant 0 : index
    %0 = vector.load %arg0[%c0, %c0_0, %c0_1] : memref<2x32x128xbf16, #tpu.memory_space<vmem>>, vector<2x32x128xbf16>
    %1 = vector.shape_cast %0 : vector<2x32x128xbf16> to vector<64x128xbf16>
    %c0_2 = arith.constant 0 : index
    %c0_3 = arith.constant 0 : index
    %2 = vector.load %arg1[%c0_2, %c0_3] : memref<128x384xbf16, #tpu.memory_space<vmem>>, vector<128x384xbf16>
    %cst = arith.constant dense<0.000000e+00> : vector<64x384xf32>
    %3 = tpu.matmul %1, %2, %cst {dimension_numbers = #tpu.dot_dimension_numbers<[1], [0], [0], [1], [0, 0, 1, 1], [], []>} : vector<64x128xbf16>, vector<128x384xbf16>, vector<64x384xf32> -> vector<64x384xf32>
    %c0_4 = arith.constant 0 : index
    %c0_5 = arith.constant 0 : index
    %4 = vector.load %arg2[%c0_4, %c0_5] : memref<1x384xf32, #tpu.memory_space<vmem>>, vector<1x384xf32>
    %5 = vector.broadcast %4 : vector<1x384xf32> to vector<64x384xf32>
    %6 = arith.addf %3, %5 : vector<64x384xf32>
    %7 = vector.shape_cast %6 : vector<64x384xf32> to vector<2x32x384xf32>
    %c0_6 = arith.constant 0 : index
    %c0_7 = arith.constant 0 : index
    %8 = vector.load %arg3[%c0_6, %c0_7] : memref<128x384xbf16, #tpu.memory_space<vmem>>, vector<128x384xbf16>
    %c0_8 = arith.constant 0 : index
    %c0_9 = arith.constant 0 : index
    %9 = vector.load %arg4[%c0_8, %c0_9] : memref<1x384xf32, #tpu.memory_space<vmem>>, vector<1x384xf32>
    %10 = vector.shape_cast %9 : vector<1x384xf32> to vector<1x384xf32>
    %11 = vector.broadcast %10 : vector<1x384xf32> to vector<2x384xf32>
    %cst_10 = arith.constant 0.000000e+00 : f32
    %12 = vector.broadcast %cst_10 : f32 to vector<2x128xf32>
    %13 = vector.extract_strided_slice %7 {offsets = [0, 0, 0], sizes = [2, 1, 384], strides = [1, 1, 1]} : vector<2x32x384xf32> to vector<2x1x384xf32>
    %14 = vector.shape_cast %13 : vector<2x1x384xf32> to vector<2x384xf32>
    %15 = arith.truncf %12 : vector<2x128xf32> to vector<2x128xbf16>
    %cst_11 = arith.constant dense<0.000000e+00> : vector<2x384xf32>
    %16 = tpu.matmul %15, %8, %cst_11 {dimension_numbers = #tpu.dot_dimension_numbers<[1], [0], [0], [1], [0, 0, 1, 1], [], []>} : vector<2x128xbf16>, vector<128x384xbf16>, vector<2x384xf32> -> vector<2x384xf32>
    %17 = arith.addf %16, %11 : vector<2x384xf32>
    %18 = vector.extract_strided_slice %14 {offsets = [0, 0], sizes = [2, 128], strides = [1, 1]} : vector<2x384xf32> to vector<2x128xf32>
    %19 = vector.extract_strided_slice %17 {offsets = [0, 0], sizes = [2, 128], strides = [1, 1]} : vector<2x384xf32> to vector<2x128xf32>
    %20 = arith.addf %18, %19 : vector<2x128xf32>
    %21 = math.tanh %20 : vector<2x128xf32>
    %22 = vector.extract_strided_slice %14 {offsets = [0, 128], sizes = [2, 128], strides = [1, 1]} : vector<2x384xf32> to vector<2x128xf32>
    %23 = vector.extract_strided_slice %17 {offsets = [0, 128], sizes = [2, 128], strides = [1, 1]} : vector<2x384xf32> to vector<2x128xf32>
    %24 = arith.addf %22, %23 : vector<2x128xf32>
    %25 = math.tanh %24 : vector<2x128xf32>
    %26 = vector.extract_strided_slice %14 {offsets = [0, 256], sizes = [2, 128], strides = [1, 1]} : vector<2x384xf32> to vector<2x128xf32>
    %27 = vector.extract_strided_slice %17 {offsets = [0, 256], sizes = [2, 128], strides = [1, 1]} : vector<2x384xf32> to vector<2x128xf32>
    %28 = arith.mulf %21, %27 : vector<2x128xf32>
    %29 = arith.addf %26, %28 : vector<2x128xf32>
    %30 = math.tanh %29 : vector<2x128xf32>
    %cst_12 = arith.constant 1.000000e+00 : f32
    %31 = vector.broadcast %cst_12 : f32 to vector<2x128xf32>
    %32 = arith.subf %31, %25 : vector<2x128xf32>
    %33 = arith.mulf %32, %30 : vector<2x128xf32>
    %34 = arith.mulf %25, %12 : vector<2x128xf32>
    %35 = arith.addf %33, %34 : vector<2x128xf32>
    %36 = vector.extract_strided_slice %7 {offsets = [0, 1, 0], sizes = [2, 1, 384], strides = [1, 1, 1]} : vector<2x32x384xf32> to vector<2x1x384xf32>
    %37 = vector.shape_cast %36 : vector<2x1x384xf32> to vector<2x384xf32>
    %38 = arith.truncf %35 : vector<2x128xf32> to vector<2x128xbf16>
    %cst_13 = arith.constant dense<0.000000e+00> : vector<2x384xf32>
    %39 = tpu.matmul %38, %8, %cst_13 {dimension_numbers = #tpu.dot_dimension_numbers<[1], [0], [0], [1], [0, 0, 1, 1], [], []>} : vector<2x128xbf16>, vector<128x384xbf16>, vector<2x384xf32> -> vector<2x384xf32>
    %40 = arith.addf %39, %11 : vector<2x384xf32>
    %41 = vector.extract_strided_slice %37 {offsets = [0, 0], sizes = [2, 128], strides = [1, 1]} : vector<2x384xf32> to vector<2x128xf32>
    %42 = vector.extract_strided_slice %40 {offsets = [0, 0], sizes = [2, 128], strides = [1, 1]} : vector<2x384xf32> to vector<2x128xf32>
    %43 = arith.addf %41, %42 : vector<2x128xf32>
    %44 = math.tanh %43 : vector<2x128xf32>
    %45 = vector.extract_strided_slice %37 {offsets = [0, 128], sizes = [2, 128], strides = [1, 1]} : vector<2x384xf32> to vector<2x128xf32>
    %46 = vector.extract_strided_slice %40 {offsets = [0, 128], sizes = [2, 128], strides = [1, 1]} : vector<2x384xf32> to vector<2x128xf32>
    %47 = arith.addf %45, %46 : vector<2x128xf32>
    %48 = math.tanh %47 : vector<2x128xf32>
    %49 = vector.extract_strided_slice %37 {offsets = [0, 256], sizes = [2, 128], strides = [1, 1]} : vector<2x384xf32> to vector<2x128xf32>
    %50 = vector.extract_strided_slice %40 {offsets = [0, 256], sizes = [2, 128], strides = [1, 1]} : vector<2x384xf32> to vector<2x128xf32>
    %51 = arith.mulf %44, %50 : vector<2x128xf32>
    %52 = arith.addf %49, %51 : vector<2x128xf32>
    %53 = math.tanh %52 : vector<2x128xf32>
    %cst_14 = arith.constant 1.000000e+00 : f32
    %54 = vector.broadcast %cst_14 : f32 to vector<2x128xf32>
    %55 = arith.subf %54, %48 : vector<2x128xf32>
    %56 = arith.mulf %55, %53 : vector<2x128xf32>
    %57 = arith.mulf %48, %35 : vector<2x128xf32>
    %58 = arith.addf %56, %57 : vector<2x128xf32>
    %59 = vector.extract_strided_slice %7 {offsets = [0, 2, 0], sizes = [2, 1, 384], strides = [1, 1, 1]} : vector<2x32x384xf32> to vector<2x1x384xf32>
    %60 = vector.shape_cast %59 : vector<2x1x384xf32> to vector<2x384xf32>
    %61 = arith.truncf %58 : vector<2x128xf32> to vector<2x128xbf16>
    %cst_15 = arith.constant dense<0.000000e+00> : vector<2x384xf32>
    %62 = tpu.matmul %61, %8, %cst_15 {dimension_numbers = #tpu.dot_dimension_numbers<[1], [0], [0], [1], [0, 0, 1, 1], [], []>} : vector<2x128xbf16>, vector<128x384xbf16>, vector<2x384xf32> -> vector<2x384xf32>
    %63 = arith.addf %62, %11 : vector<2x384xf32>
    %64 = vector.extract_strided_slice %60 {offsets = [0, 0], sizes = [2, 128], strides = [1, 1]} : vector<2x384xf32> to vector<2x128xf32>
    %65 = vector.extract_strided_slice %63 {offsets = [0, 0], sizes = [2, 128], strides = [1, 1]} : vector<2x384xf32> to vector<2x128xf32>
    %66 = arith.addf %64, %65 : vector<2x128xf32>
    %67 = math.tanh %66 : vector<2x128xf32>
    %68 = vector.extract_strided_slice %60 {offsets = [0, 128], sizes = [2, 128], strides = [1, 1]} : vector<2x384xf32> to vector<2x128xf32>
    %69 = vector.extract_strided_slice %63 {offsets = [0, 128], sizes = [2, 128], strides = [1, 1]} : vector<2x384xf32> to vector<2x128xf32>
    %70 = arith.addf %68, %69 : vector<2x128xf32>
    %71 = math.tanh %70 : vector<2x128xf32>
    %72 = vector.extract_strided_slice %60 {offsets = [0, 256], sizes = [2, 128], strides = [1, 1]} : vector<2x384xf32> to vector<2x128xf32>
    %73 = vector.extract_strided_slice %63 {offsets = [0, 256], sizes = [2, 128], strides = [1, 1]} : vector<2x384xf32> to vector<2x128xf32>
    %74 = arith.mulf %67, %73 : vector<2x128xf32>
    %75 = arith.addf %72, %74 : vector<2x128xf32>
    %76 = math.tanh %75 : vector<2x128xf32>
    %cst_16 = arith.constant 1.000000e+00 : f32
    %77 = vector.broadcast %cst_16 : f32 to vector<2x128xf32>
    %78 = arith.subf %77, %71 : vector<2x128xf32>
    %79 = arith.mulf %78, %76 : vector<2x128xf32>
    %80 = arith.mulf %71, %58 : vector<2x128xf32>
    %81 = arith.addf %79, %80 : vector<2x128xf32>
    %82 = vector.extract_strided_slice %7 {offsets = [0, 3, 0], sizes = [2, 1, 384], strides = [1, 1, 1]} : vector<2x32x384xf32> to vector<2x1x384xf32>
    %83 = vector.shape_cast %82 : vector<2x1x384xf32> to vector<2x384xf32>
    %84 = arith.truncf %81 : vector<2x128xf32> to vector<2x128xbf16>
    %cst_17 = arith.constant dense<0.000000e+00> : vector<2x384xf32>
    %85 = tpu.matmul %84, %8, %cst_17 {dimension_numbers = #tpu.dot_dimension_numbers<[1], [0], [0], [1], [0, 0, 1, 1], [], []>} : vector<2x128xbf16>, vector<128x384xbf16>, vector<2x384xf32> -> vector<2x384xf32>
    %86 = arith.addf %85, %11 : vector<2x384xf32>
    %87 = vector.extract_strided_slice %83 {offsets = [0, 0], sizes = [2, 128], strides = [1, 1]} : vector<2x384xf32> to vector<2x128xf32>
    %88 = vector.extract_strided_slice %86 {offsets = [0, 0], sizes = [2, 128], strides = [1, 1]} : vector<2x384xf32> to vector<2x128xf32>
    %89 = arith.addf %87, %88 : vector<2x128xf32>
    %90 = math.tanh %89 : vector<2x128xf32>
    %91 = vector.extract_strided_slice %83 {offsets = [0, 128], sizes = [2, 128], strides = [1, 1]} : vector<2x384xf32> to vector<2x128xf32>
    %92 = vector.extract_strided_slice %86 {offsets = [0, 128], sizes = [2, 128], strides = [1, 1]} : vector<2x384xf32> to vector<2x128xf32>
    %93 = arith.addf %91, %92 : vector<2x128xf32>
    %94 = math.tanh %93 : vector<2x128xf32>
    %95 = vector.extract_strided_slice %83 {offsets = [0, 256], sizes = [2, 128], strides = [1, 1]} : vector<2x384xf32> to vector<2x128xf32>
    %96 = vector.extract_strided_slice %86 {offsets = [0, 256], sizes = [2, 128], strides = [1, 1]} : vector<2x384xf32> to vector<2x128xf32>
    %97 = arith.mulf %90, %96 : vector<2x128xf32>
    %98 = arith.addf %95, %97 : vector<2x128xf32>
    %99 = math.tanh %98 : vector<2x128xf32>
    %cst_18 = arith.constant 1.000000e+00 : f32
    %100 = vector.broadcast %cst_18 : f32 to vector<2x128xf32>
    %101 = arith.subf %100, %94 : vector<2x128xf32>
    %102 = arith.mulf %101, %99 : vector<2x128xf32>
    %103 = arith.mulf %94, %81 : vector<2x128xf32>
    %104 = arith.addf %102, %103 : vector<2x128xf32>
    %105 = vector.extract_strided_slice %7 {offsets = [0, 4, 0], sizes = [2, 1, 384], strides = [1, 1, 1]} : vector<2x32x384xf32> to vector<2x1x384xf32>
    %106 = vector.shape_cast %105 : vector<2x1x384xf32> to vector<2x384xf32>
    %107 = arith.truncf %104 : vector<2x128xf32> to vector<2x128xbf16>
    %cst_19 = arith.constant dense<0.000000e+00> : vector<2x384xf32>
    %108 = tpu.matmul %107, %8, %cst_19 {dimension_numbers = #tpu.dot_dimension_numbers<[1], [0], [0], [1], [0, 0, 1, 1], [], []>} : vector<2x128xbf16>, vector<128x384xbf16>, vector<2x384xf32> -> vector<2x384xf32>
    %109 = arith.addf %108, %11 : vector<2x384xf32>
    %110 = vector.extract_strided_slice %106 {offsets = [0, 0], sizes = [2, 128], strides = [1, 1]} : vector<2x384xf32> to vector<2x128xf32>
    %111 = vector.extract_strided_slice %109 {offsets = [0, 0], sizes = [2, 128], strides = [1, 1]} : vector<2x384xf32> to vector<2x128xf32>
    %112 = arith.addf %110, %111 : vector<2x128xf32>
    %113 = math.tanh %112 : vector<2x128xf32>
    %114 = vector.extract_strided_slice %106 {offsets = [0, 128], sizes = [2, 128], strides = [1, 1]} : vector<2x384xf32> to vector<2x128xf32>
    %115 = vector.extract_strided_slice %109 {offsets = [0, 128], sizes = [2, 128], strides = [1, 1]} : vector<2x384xf32> to vector<2x128xf32>
    %116 = arith.addf %114, %115 : vector<2x128xf32>
    %117 = math.tanh %116 : vector<2x128xf32>
    %118 = vector.extract_strided_slice %106 {offsets = [0, 256], sizes = [2, 128], strides = [1, 1]} : vector<2x384xf32> to vector<2x128xf32>
    %119 = vector.extract_strided_slice %109 {offsets = [0, 256], sizes = [2, 128], strides = [1, 1]} : vector<2x384xf32> to vector<2x128xf32>
    %120 = arith.mulf %113, %119 : vector<2x128xf32>
    %121 = arith.addf %118, %120 : vector<2x128xf32>
    %122 = math.tanh %121 : vector<2x128xf32>
    %cst_20 = arith.constant 1.000000e+00 : f32
    %123 = vector.broadcast %cst_20 : f32 to vector<2x128xf32>
    %124 = arith.subf %123, %117 : vector<2x128xf32>
    %125 = arith.mulf %124, %122 : vector<2x128xf32>
    %126 = arith.mulf %117, %104 : vector<2x128xf32>
    %127 = arith.addf %125, %126 : vector<2x128xf32>
    %128 = vector.extract_strided_slice %7 {offsets = [0, 5, 0], sizes = [2, 1, 384], strides = [1, 1, 1]} : vector<2x32x384xf32> to vector<2x1x384xf32>
    %129 = vector.shape_cast %128 : vector<2x1x384xf32> to vector<2x384xf32>
    %130 = arith.truncf %127 : vector<2x128xf32> to vector<2x128xbf16>
    %cst_21 = arith.constant dense<0.000000e+00> : vector<2x384xf32>
    %131 = tpu.matmul %130, %8, %cst_21 {dimension_numbers = #tpu.dot_dimension_numbers<[1], [0], [0], [1], [0, 0, 1, 1], [], []>} : vector<2x128xbf16>, vector<128x384xbf16>, vector<2x384xf32> -> vector<2x384xf32>
    %132 = arith.addf %131, %11 : vector<2x384xf32>
    %133 = vector.extract_strided_slice %129 {offsets = [0, 0], sizes = [2, 128], strides = [1, 1]} : vector<2x384xf32> to vector<2x128xf32>
    %134 = vector.extract_strided_slice %132 {offsets = [0, 0], sizes = [2, 128], strides = [1, 1]} : vector<2x384xf32> to vector<2x128xf32>
    %135 = arith.addf %133, %134 : vector<2x128xf32>
    %136 = math.tanh %135 : vector<2x128xf32>
    %137 = vector.extract_strided_slice %129 {offsets = [0, 128], sizes = [2, 128], strides = [1, 1]} : vector<2x384xf32> to vector<2x128xf32>
    %138 = vector.extract_strided_slice %132 {offsets = [0, 128], sizes = [2, 128], strides = [1, 1]} : vector<2x384xf32> to vector<2x128xf32>
    %139 = arith.addf %137, %138 : vector<2x128xf32>
    %140 = math.tanh %139 : vector<2x128xf32>
    %141 = vector.extract_strided_slice %129 {offsets = [0, 256], sizes = [2, 128], strides = [1, 1]} : vector<2x384xf32> to vector<2x128xf32>
    %142 = vector.extract_strided_slice %132 {offsets = [0, 256], sizes = [2, 128], strides = [1, 1]} : vector<2x384xf32> to vector<2x128xf32>
    %143 = arith.mulf %136, %142 : vector<2x128xf32>
    %144 = arith.addf %141, %143 : vector<2x128xf32>
    %145 = math.tanh %144 : vector<2x128xf32>
    %cst_22 = arith.constant 1.000000e+00 : f32
    %146 = vector.broadcast %cst_22 : f32 to vector<2x128xf32>
    %147 = arith.subf %146, %140 : vector<2x128xf32>
    %148 = arith.mulf %147, %145 : vector<2x128xf32>
    %149 = arith.mulf %140, %127 : vector<2x128xf32>
    %150 = arith.addf %148, %149 : vector<2x128xf32>
    %151 = vector.extract_strided_slice %7 {offsets = [0, 6, 0], sizes = [2, 1, 384], strides = [1, 1, 1]} : vector<2x32x384xf32> to vector<2x1x384xf32>
    %152 = vector.shape_cast %151 : vector<2x1x384xf32> to vector<2x384xf32>
    %153 = arith.truncf %150 : vector<2x128xf32> to vector<2x128xbf16>
    %cst_23 = arith.constant dense<0.000000e+00> : vector<2x384xf32>
    %154 = tpu.matmul %153, %8, %cst_23 {dimension_numbers = #tpu.dot_dimension_numbers<[1], [0], [0], [1], [0, 0, 1, 1], [], []>} : vector<2x128xbf16>, vector<128x384xbf16>, vector<2x384xf32> -> vector<2x384xf32>
    %155 = arith.addf %154, %11 : vector<2x384xf32>
    %156 = vector.extract_strided_slice %152 {offsets = [0, 0], sizes = [2, 128], strides = [1, 1]} : vector<2x384xf32> to vector<2x128xf32>
    %157 = vector.extract_strided_slice %155 {offsets = [0, 0], sizes = [2, 128], strides = [1, 1]} : vector<2x384xf32> to vector<2x128xf32>
    %158 = arith.addf %156, %157 : vector<2x128xf32>
    %159 = math.tanh %158 : vector<2x128xf32>
    %160 = vector.extract_strided_slice %152 {offsets = [0, 128], sizes = [2, 128], strides = [1, 1]} : vector<2x384xf32> to vector<2x128xf32>
    %161 = vector.extract_strided_slice %155 {offsets = [0, 128], sizes = [2, 128], strides = [1, 1]} : vector<2x384xf32> to vector<2x128xf32>
    %162 = arith.addf %160, %161 : vector<2x128xf32>
    %163 = math.tanh %162 : vector<2x128xf32>
    %164 = vector.extract_strided_slice %152 {offsets = [0, 256], sizes = [2, 128], strides = [1, 1]} : vector<2x384xf32> to vector<2x128xf32>
    %165 = vector.extract_strided_slice %155 {offsets = [0, 256], sizes = [2, 128], strides = [1, 1]} : vector<2x384xf32> to vector<2x128xf32>
    %166 = arith.mulf %159, %165 : vector<2x128xf32>
    %167 = arith.addf %164, %166 : vector<2x128xf32>
    %168 = math.tanh %167 : vector<2x128xf32>
    %cst_24 = arith.constant 1.000000e+00 : f32
    %169 = vector.broadcast %cst_24 : f32 to vector<2x128xf32>
    %170 = arith.subf %169, %163 : vector<2x128xf32>
    %171 = arith.mulf %170, %168 : vector<2x128xf32>
    %172 = arith.mulf %163, %150 : vector<2x128xf32>
    %173 = arith.addf %171, %172 : vector<2x128xf32>
    %174 = vector.extract_strided_slice %7 {offsets = [0, 7, 0], sizes = [2, 1, 384], strides = [1, 1, 1]} : vector<2x32x384xf32> to vector<2x1x384xf32>
    %175 = vector.shape_cast %174 : vector<2x1x384xf32> to vector<2x384xf32>
    %176 = arith.truncf %173 : vector<2x128xf32> to vector<2x128xbf16>
    %cst_25 = arith.constant dense<0.000000e+00> : vector<2x384xf32>
    %177 = tpu.matmul %176, %8, %cst_25 {dimension_numbers = #tpu.dot_dimension_numbers<[1], [0], [0], [1], [0, 0, 1, 1], [], []>} : vector<2x128xbf16>, vector<128x384xbf16>, vector<2x384xf32> -> vector<2x384xf32>
    %178 = arith.addf %177, %11 : vector<2x384xf32>
    %179 = vector.extract_strided_slice %175 {offsets = [0, 0], sizes = [2, 128], strides = [1, 1]} : vector<2x384xf32> to vector<2x128xf32>
    %180 = vector.extract_strided_slice %178 {offsets = [0, 0], sizes = [2, 128], strides = [1, 1]} : vector<2x384xf32> to vector<2x128xf32>
    %181 = arith.addf %179, %180 : vector<2x128xf32>
    %182 = math.tanh %181 : vector<2x128xf32>
    %183 = vector.extract_strided_slice %175 {offsets = [0, 128], sizes = [2, 128], strides = [1, 1]} : vector<2x384xf32> to vector<2x128xf32>
    %184 = vector.extract_strided_slice %178 {offsets = [0, 128], sizes = [2, 128], strides = [1, 1]} : vector<2x384xf32> to vector<2x128xf32>
    %185 = arith.addf %183, %184 : vector<2x128xf32>
    %186 = math.tanh %185 : vector<2x128xf32>
    %187 = vector.extract_strided_slice %175 {offsets = [0, 256], sizes = [2, 128], strides = [1, 1]} : vector<2x384xf32> to vector<2x128xf32>
    %188 = vector.extract_strided_slice %178 {offsets = [0, 256], sizes = [2, 128], strides = [1, 1]} : vector<2x384xf32> to vector<2x128xf32>
    %189 = arith.mulf %182, %188 : vector<2x128xf32>
    %190 = arith.addf %187, %189 : vector<2x128xf32>
    %191 = math.tanh %190 : vector<2x128xf32>
    %cst_26 = arith.constant 1.000000e+00 : f32
    %192 = vector.broadcast %cst_26 : f32 to vector<2x128xf32>
    %193 = arith.subf %192, %186 : vector<2x128xf32>
    %194 = arith.mulf %193, %191 : vector<2x128xf32>
    %195 = arith.mulf %186, %173 : vector<2x128xf32>
    %196 = arith.addf %194, %195 : vector<2x128xf32>
    %197 = vector.extract_strided_slice %7 {offsets = [0, 8, 0], sizes = [2, 1, 384], strides = [1, 1, 1]} : vector<2x32x384xf32> to vector<2x1x384xf32>
    %198 = vector.shape_cast %197 : vector<2x1x384xf32> to vector<2x384xf32>
    %199 = arith.truncf %196 : vector<2x128xf32> to vector<2x128xbf16>
    %cst_27 = arith.constant dense<0.000000e+00> : vector<2x384xf32>
    %200 = tpu.matmul %199, %8, %cst_27 {dimension_numbers = #tpu.dot_dimension_numbers<[1], [0], [0], [1], [0, 0, 1, 1], [], []>} : vector<2x128xbf16>, vector<128x384xbf16>, vector<2x384xf32> -> vector<2x384xf32>
    %201 = arith.addf %200, %11 : vector<2x384xf32>
    %202 = vector.extract_strided_slice %198 {offsets = [0, 0], sizes = [2, 128], strides = [1, 1]} : vector<2x384xf32> to vector<2x128xf32>
    %203 = vector.extract_strided_slice %201 {offsets = [0, 0], sizes = [2, 128], strides = [1, 1]} : vector<2x384xf32> to vector<2x128xf32>
    %204 = arith.addf %202, %203 : vector<2x128xf32>
    %205 = math.tanh %204 : vector<2x128xf32>
    %206 = vector.extract_strided_slice %198 {offsets = [0, 128], sizes = [2, 128], strides = [1, 1]} : vector<2x384xf32> to vector<2x128xf32>
    %207 = vector.extract_strided_slice %201 {offsets = [0, 128], sizes = [2, 128], strides = [1, 1]} : vector<2x384xf32> to vector<2x128xf32>
    %208 = arith.addf %206, %207 : vector<2x128xf32>
    %209 = math.tanh %208 : vector<2x128xf32>
    %210 = vector.extract_strided_slice %198 {offsets = [0, 256], sizes = [2, 128], strides = [1, 1]} : vector<2x384xf32> to vector<2x128xf32>
    %211 = vector.extract_strided_slice %201 {offsets = [0, 256], sizes = [2, 128], strides = [1, 1]} : vector<2x384xf32> to vector<2x128xf32>
    %212 = arith.mulf %205, %211 : vector<2x128xf32>
    %213 = arith.addf %210, %212 : vector<2x128xf32>
    %214 = math.tanh %213 : vector<2x128xf32>
    %cst_28 = arith.constant 1.000000e+00 : f32
    %215 = vector.broadcast %cst_28 : f32 to vector<2x128xf32>
    %216 = arith.subf %215, %209 : vector<2x128xf32>
    %217 = arith.mulf %216, %214 : vector<2x128xf32>
    %218 = arith.mulf %209, %196 : vector<2x128xf32>
    %219 = arith.addf %217, %218 : vector<2x128xf32>
    %220 = vector.extract_strided_slice %7 {offsets = [0, 9, 0], sizes = [2, 1, 384], strides = [1, 1, 1]} : vector<2x32x384xf32> to vector<2x1x384xf32>
    %221 = vector.shape_cast %220 : vector<2x1x384xf32> to vector<2x384xf32>
    %222 = arith.truncf %219 : vector<2x128xf32> to vector<2x128xbf16>
    %cst_29 = arith.constant dense<0.000000e+00> : vector<2x384xf32>
    %223 = tpu.matmul %222, %8, %cst_29 {dimension_numbers = #tpu.dot_dimension_numbers<[1], [0], [0], [1], [0, 0, 1, 1], [], []>} : vector<2x128xbf16>, vector<128x384xbf16>, vector<2x384xf32> -> vector<2x384xf32>
    %224 = arith.addf %223, %11 : vector<2x384xf32>
    %225 = vector.extract_strided_slice %221 {offsets = [0, 0], sizes = [2, 128], strides = [1, 1]} : vector<2x384xf32> to vector<2x128xf32>
    %226 = vector.extract_strided_slice %224 {offsets = [0, 0], sizes = [2, 128], strides = [1, 1]} : vector<2x384xf32> to vector<2x128xf32>
    %227 = arith.addf %225, %226 : vector<2x128xf32>
    %228 = math.tanh %227 : vector<2x128xf32>
    %229 = vector.extract_strided_slice %221 {offsets = [0, 128], sizes = [2, 128], strides = [1, 1]} : vector<2x384xf32> to vector<2x128xf32>
    %230 = vector.extract_strided_slice %224 {offsets = [0, 128], sizes = [2, 128], strides = [1, 1]} : vector<2x384xf32> to vector<2x128xf32>
    %231 = arith.addf %229, %230 : vector<2x128xf32>
    %232 = math.tanh %231 : vector<2x128xf32>
    %233 = vector.extract_strided_slice %221 {offsets = [0, 256], sizes = [2, 128], strides = [1, 1]} : vector<2x384xf32> to vector<2x128xf32>
    %234 = vector.extract_strided_slice %224 {offsets = [0, 256], sizes = [2, 128], strides = [1, 1]} : vector<2x384xf32> to vector<2x128xf32>
    %235 = arith.mulf %228, %234 : vector<2x128xf32>
    %236 = arith.addf %233, %235 : vector<2x128xf32>
    %237 = math.tanh %236 : vector<2x128xf32>
    %cst_30 = arith.constant 1.000000e+00 : f32
    %238 = vector.broadcast %cst_30 : f32 to vector<2x128xf32>
    %239 = arith.subf %238, %232 : vector<2x128xf32>
    %240 = arith.mulf %239, %237 : vector<2x128xf32>
    %241 = arith.mulf %232, %219 : vector<2x128xf32>
    %242 = arith.addf %240, %241 : vector<2x128xf32>
    %243 = vector.extract_strided_slice %7 {offsets = [0, 10, 0], sizes = [2, 1, 384], strides = [1, 1, 1]} : vector<2x32x384xf32> to vector<2x1x384xf32>
    %244 = vector.shape_cast %243 : vector<2x1x384xf32> to vector<2x384xf32>
    %245 = arith.truncf %242 : vector<2x128xf32> to vector<2x128xbf16>
    %cst_31 = arith.constant dense<0.000000e+00> : vector<2x384xf32>
    %246 = tpu.matmul %245, %8, %cst_31 {dimension_numbers = #tpu.dot_dimension_numbers<[1], [0], [0], [1], [0, 0, 1, 1], [], []>} : vector<2x128xbf16>, vector<128x384xbf16>, vector<2x384xf32> -> vector<2x384xf32>
    %247 = arith.addf %246, %11 : vector<2x384xf32>
    %248 = vector.extract_strided_slice %244 {offsets = [0, 0], sizes = [2, 128], strides = [1, 1]} : vector<2x384xf32> to vector<2x128xf32>
    %249 = vector.extract_strided_slice %247 {offsets = [0, 0], sizes = [2, 128], strides = [1, 1]} : vector<2x384xf32> to vector<2x128xf32>
    %250 = arith.addf %248, %249 : vector<2x128xf32>
    %251 = math.tanh %250 : vector<2x128xf32>
    %252 = vector.extract_strided_slice %244 {offsets = [0, 128], sizes = [2, 128], strides = [1, 1]} : vector<2x384xf32> to vector<2x128xf32>
    %253 = vector.extract_strided_slice %247 {offsets = [0, 128], sizes = [2, 128], strides = [1, 1]} : vector<2x384xf32> to vector<2x128xf32>
    %254 = arith.addf %252, %253 : vector<2x128xf32>
    %255 = math.tanh %254 : vector<2x128xf32>
    %256 = vector.extract_strided_slice %244 {offsets = [0, 256], sizes = [2, 128], strides = [1, 1]} : vector<2x384xf32> to vector<2x128xf32>
    %257 = vector.extract_strided_slice %247 {offsets = [0, 256], sizes = [2, 128], strides = [1, 1]} : vector<2x384xf32> to vector<2x128xf32>
    %258 = arith.mulf %251, %257 : vector<2x128xf32>
    %259 = arith.addf %256, %258 : vector<2x128xf32>
    %260 = math.tanh %259 : vector<2x128xf32>
    %cst_32 = arith.constant 1.000000e+00 : f32
    %261 = vector.broadcast %cst_32 : f32 to vector<2x128xf32>
    %262 = arith.subf %261, %255 : vector<2x128xf32>
    %263 = arith.mulf %262, %260 : vector<2x128xf32>
    %264 = arith.mulf %255, %242 : vector<2x128xf32>
    %265 = arith.addf %263, %264 : vector<2x128xf32>
    %266 = vector.extract_strided_slice %7 {offsets = [0, 11, 0], sizes = [2, 1, 384], strides = [1, 1, 1]} : vector<2x32x384xf32> to vector<2x1x384xf32>
    %267 = vector.shape_cast %266 : vector<2x1x384xf32> to vector<2x384xf32>
    %268 = arith.truncf %265 : vector<2x128xf32> to vector<2x128xbf16>
    %cst_33 = arith.constant dense<0.000000e+00> : vector<2x384xf32>
    %269 = tpu.matmul %268, %8, %cst_33 {dimension_numbers = #tpu.dot_dimension_numbers<[1], [0], [0], [1], [0, 0, 1, 1], [], []>} : vector<2x128xbf16>, vector<128x384xbf16>, vector<2x384xf32> -> vector<2x384xf32>
    %270 = arith.addf %269, %11 : vector<2x384xf32>
    %271 = vector.extract_strided_slice %267 {offsets = [0, 0], sizes = [2, 128], strides = [1, 1]} : vector<2x384xf32> to vector<2x128xf32>
    %272 = vector.extract_strided_slice %270 {offsets = [0, 0], sizes = [2, 128], strides = [1, 1]} : vector<2x384xf32> to vector<2x128xf32>
    %273 = arith.addf %271, %272 : vector<2x128xf32>
    %274 = math.tanh %273 : vector<2x128xf32>
    %275 = vector.extract_strided_slice %267 {offsets = [0, 128], sizes = [2, 128], strides = [1, 1]} : vector<2x384xf32> to vector<2x128xf32>
    %276 = vector.extract_strided_slice %270 {offsets = [0, 128], sizes = [2, 128], strides = [1, 1]} : vector<2x384xf32> to vector<2x128xf32>
    %277 = arith.addf %275, %276 : vector<2x128xf32>
    %278 = math.tanh %277 : vector<2x128xf32>
    %279 = vector.extract_strided_slice %267 {offsets = [0, 256], sizes = [2, 128], strides = [1, 1]} : vector<2x384xf32> to vector<2x128xf32>
    %280 = vector.extract_strided_slice %270 {offsets = [0, 256], sizes = [2, 128], strides = [1, 1]} : vector<2x384xf32> to vector<2x128xf32>
    %281 = arith.mulf %274, %280 : vector<2x128xf32>
    %282 = arith.addf %279, %281 : vector<2x128xf32>
    %283 = math.tanh %282 : vector<2x128xf32>
    %cst_34 = arith.constant 1.000000e+00 : f32
    %284 = vector.broadcast %cst_34 : f32 to vector<2x128xf32>
    %285 = arith.subf %284, %278 : vector<2x128xf32>
    %286 = arith.mulf %285, %283 : vector<2x128xf32>
    %287 = arith.mulf %278, %265 : vector<2x128xf32>
    %288 = arith.addf %286, %287 : vector<2x128xf32>
    %289 = vector.extract_strided_slice %7 {offsets = [0, 12, 0], sizes = [2, 1, 384], strides = [1, 1, 1]} : vector<2x32x384xf32> to vector<2x1x384xf32>
    %290 = vector.shape_cast %289 : vector<2x1x384xf32> to vector<2x384xf32>
    %291 = arith.truncf %288 : vector<2x128xf32> to vector<2x128xbf16>
    %cst_35 = arith.constant dense<0.000000e+00> : vector<2x384xf32>
    %292 = tpu.matmul %291, %8, %cst_35 {dimension_numbers = #tpu.dot_dimension_numbers<[1], [0], [0], [1], [0, 0, 1, 1], [], []>} : vector<2x128xbf16>, vector<128x384xbf16>, vector<2x384xf32> -> vector<2x384xf32>
    %293 = arith.addf %292, %11 : vector<2x384xf32>
    %294 = vector.extract_strided_slice %290 {offsets = [0, 0], sizes = [2, 128], strides = [1, 1]} : vector<2x384xf32> to vector<2x128xf32>
    %295 = vector.extract_strided_slice %293 {offsets = [0, 0], sizes = [2, 128], strides = [1, 1]} : vector<2x384xf32> to vector<2x128xf32>
    %296 = arith.addf %294, %295 : vector<2x128xf32>
    %297 = math.tanh %296 : vector<2x128xf32>
    %298 = vector.extract_strided_slice %290 {offsets = [0, 128], sizes = [2, 128], strides = [1, 1]} : vector<2x384xf32> to vector<2x128xf32>
    %299 = vector.extract_strided_slice %293 {offsets = [0, 128], sizes = [2, 128], strides = [1, 1]} : vector<2x384xf32> to vector<2x128xf32>
    %300 = arith.addf %298, %299 : vector<2x128xf32>
    %301 = math.tanh %300 : vector<2x128xf32>
    %302 = vector.extract_strided_slice %290 {offsets = [0, 256], sizes = [2, 128], strides = [1, 1]} : vector<2x384xf32> to vector<2x128xf32>
    %303 = vector.extract_strided_slice %293 {offsets = [0, 256], sizes = [2, 128], strides = [1, 1]} : vector<2x384xf32> to vector<2x128xf32>
    %304 = arith.mulf %297, %303 : vector<2x128xf32>
    %305 = arith.addf %302, %304 : vector<2x128xf32>
    %306 = math.tanh %305 : vector<2x128xf32>
    %cst_36 = arith.constant 1.000000e+00 : f32
    %307 = vector.broadcast %cst_36 : f32 to vector<2x128xf32>
    %308 = arith.subf %307, %301 : vector<2x128xf32>
    %309 = arith.mulf %308, %306 : vector<2x128xf32>
    %310 = arith.mulf %301, %288 : vector<2x128xf32>
    %311 = arith.addf %309, %310 : vector<2x128xf32>
    %312 = vector.extract_strided_slice %7 {offsets = [0, 13, 0], sizes = [2, 1, 384], strides = [1, 1, 1]} : vector<2x32x384xf32> to vector<2x1x384xf32>
    %313 = vector.shape_cast %312 : vector<2x1x384xf32> to vector<2x384xf32>
    %314 = arith.truncf %311 : vector<2x128xf32> to vector<2x128xbf16>
    %cst_37 = arith.constant dense<0.000000e+00> : vector<2x384xf32>
    %315 = tpu.matmul %314, %8, %cst_37 {dimension_numbers = #tpu.dot_dimension_numbers<[1], [0], [0], [1], [0, 0, 1, 1], [], []>} : vector<2x128xbf16>, vector<128x384xbf16>, vector<2x384xf32> -> vector<2x384xf32>
    %316 = arith.addf %315, %11 : vector<2x384xf32>
    %317 = vector.extract_strided_slice %313 {offsets = [0, 0], sizes = [2, 128], strides = [1, 1]} : vector<2x384xf32> to vector<2x128xf32>
    %318 = vector.extract_strided_slice %316 {offsets = [0, 0], sizes = [2, 128], strides = [1, 1]} : vector<2x384xf32> to vector<2x128xf32>
    %319 = arith.addf %317, %318 : vector<2x128xf32>
    %320 = math.tanh %319 : vector<2x128xf32>
    %321 = vector.extract_strided_slice %313 {offsets = [0, 128], sizes = [2, 128], strides = [1, 1]} : vector<2x384xf32> to vector<2x128xf32>
    %322 = vector.extract_strided_slice %316 {offsets = [0, 128], sizes = [2, 128], strides = [1, 1]} : vector<2x384xf32> to vector<2x128xf32>
    %323 = arith.addf %321, %322 : vector<2x128xf32>
    %324 = math.tanh %323 : vector<2x128xf32>
    %325 = vector.extract_strided_slice %313 {offsets = [0, 256], sizes = [2, 128], strides = [1, 1]} : vector<2x384xf32> to vector<2x128xf32>
    %326 = vector.extract_strided_slice %316 {offsets = [0, 256], sizes = [2, 128], strides = [1, 1]} : vector<2x384xf32> to vector<2x128xf32>
    %327 = arith.mulf %320, %326 : vector<2x128xf32>
    %328 = arith.addf %325, %327 : vector<2x128xf32>
    %329 = math.tanh %328 : vector<2x128xf32>
    %cst_38 = arith.constant 1.000000e+00 : f32
    %330 = vector.broadcast %cst_38 : f32 to vector<2x128xf32>
    %331 = arith.subf %330, %324 : vector<2x128xf32>
    %332 = arith.mulf %331, %329 : vector<2x128xf32>
    %333 = arith.mulf %324, %311 : vector<2x128xf32>
    %334 = arith.addf %332, %333 : vector<2x128xf32>
    %335 = vector.extract_strided_slice %7 {offsets = [0, 14, 0], sizes = [2, 1, 384], strides = [1, 1, 1]} : vector<2x32x384xf32> to vector<2x1x384xf32>
    %336 = vector.shape_cast %335 : vector<2x1x384xf32> to vector<2x384xf32>
    %337 = arith.truncf %334 : vector<2x128xf32> to vector<2x128xbf16>
    %cst_39 = arith.constant dense<0.000000e+00> : vector<2x384xf32>
    %338 = tpu.matmul %337, %8, %cst_39 {dimension_numbers = #tpu.dot_dimension_numbers<[1], [0], [0], [1], [0, 0, 1, 1], [], []>} : vector<2x128xbf16>, vector<128x384xbf16>, vector<2x384xf32> -> vector<2x384xf32>
    %339 = arith.addf %338, %11 : vector<2x384xf32>
    %340 = vector.extract_strided_slice %336 {offsets = [0, 0], sizes = [2, 128], strides = [1, 1]} : vector<2x384xf32> to vector<2x128xf32>
    %341 = vector.extract_strided_slice %339 {offsets = [0, 0], sizes = [2, 128], strides = [1, 1]} : vector<2x384xf32> to vector<2x128xf32>
    %342 = arith.addf %340, %341 : vector<2x128xf32>
    %343 = math.tanh %342 : vector<2x128xf32>
    %344 = vector.extract_strided_slice %336 {offsets = [0, 128], sizes = [2, 128], strides = [1, 1]} : vector<2x384xf32> to vector<2x128xf32>
    %345 = vector.extract_strided_slice %339 {offsets = [0, 128], sizes = [2, 128], strides = [1, 1]} : vector<2x384xf32> to vector<2x128xf32>
    %346 = arith.addf %344, %345 : vector<2x128xf32>
    %347 = math.tanh %346 : vector<2x128xf32>
    %348 = vector.extract_strided_slice %336 {offsets = [0, 256], sizes = [2, 128], strides = [1, 1]} : vector<2x384xf32> to vector<2x128xf32>
    %349 = vector.extract_strided_slice %339 {offsets = [0, 256], sizes = [2, 128], strides = [1, 1]} : vector<2x384xf32> to vector<2x128xf32>
    %350 = arith.mulf %343, %349 : vector<2x128xf32>
    %351 = arith.addf %348, %350 : vector<2x128xf32>
    %352 = math.tanh %351 : vector<2x128xf32>
    %cst_40 = arith.constant 1.000000e+00 : f32
    %353 = vector.broadcast %cst_40 : f32 to vector<2x128xf32>
    %354 = arith.subf %353, %347 : vector<2x128xf32>
    %355 = arith.mulf %354, %352 : vector<2x128xf32>
    %356 = arith.mulf %347, %334 : vector<2x128xf32>
    %357 = arith.addf %355, %356 : vector<2x128xf32>
    %358 = vector.extract_strided_slice %7 {offsets = [0, 15, 0], sizes = [2, 1, 384], strides = [1, 1, 1]} : vector<2x32x384xf32> to vector<2x1x384xf32>
    %359 = vector.shape_cast %358 : vector<2x1x384xf32> to vector<2x384xf32>
    %360 = arith.truncf %357 : vector<2x128xf32> to vector<2x128xbf16>
    %cst_41 = arith.constant dense<0.000000e+00> : vector<2x384xf32>
    %361 = tpu.matmul %360, %8, %cst_41 {dimension_numbers = #tpu.dot_dimension_numbers<[1], [0], [0], [1], [0, 0, 1, 1], [], []>} : vector<2x128xbf16>, vector<128x384xbf16>, vector<2x384xf32> -> vector<2x384xf32>
    %362 = arith.addf %361, %11 : vector<2x384xf32>
    %363 = vector.extract_strided_slice %359 {offsets = [0, 0], sizes = [2, 128], strides = [1, 1]} : vector<2x384xf32> to vector<2x128xf32>
    %364 = vector.extract_strided_slice %362 {offsets = [0, 0], sizes = [2, 128], strides = [1, 1]} : vector<2x384xf32> to vector<2x128xf32>
    %365 = arith.addf %363, %364 : vector<2x128xf32>
    %366 = math.tanh %365 : vector<2x128xf32>
    %367 = vector.extract_strided_slice %359 {offsets = [0, 128], sizes = [2, 128], strides = [1, 1]} : vector<2x384xf32> to vector<2x128xf32>
    %368 = vector.extract_strided_slice %362 {offsets = [0, 128], sizes = [2, 128], strides = [1, 1]} : vector<2x384xf32> to vector<2x128xf32>
    %369 = arith.addf %367, %368 : vector<2x128xf32>
    %370 = math.tanh %369 : vector<2x128xf32>
    %371 = vector.extract_strided_slice %359 {offsets = [0, 256], sizes = [2, 128], strides = [1, 1]} : vector<2x384xf32> to vector<2x128xf32>
    %372 = vector.extract_strided_slice %362 {offsets = [0, 256], sizes = [2, 128], strides = [1, 1]} : vector<2x384xf32> to vector<2x128xf32>
    %373 = arith.mulf %366, %372 : vector<2x128xf32>
    %374 = arith.addf %371, %373 : vector<2x128xf32>
    %375 = math.tanh %374 : vector<2x128xf32>
    %cst_42 = arith.constant 1.000000e+00 : f32
    %376 = vector.broadcast %cst_42 : f32 to vector<2x128xf32>
    %377 = arith.subf %376, %370 : vector<2x128xf32>
    %378 = arith.mulf %377, %375 : vector<2x128xf32>
    %379 = arith.mulf %370, %357 : vector<2x128xf32>
    %380 = arith.addf %378, %379 : vector<2x128xf32>
    %381 = vector.extract_strided_slice %7 {offsets = [0, 16, 0], sizes = [2, 1, 384], strides = [1, 1, 1]} : vector<2x32x384xf32> to vector<2x1x384xf32>
    %382 = vector.shape_cast %381 : vector<2x1x384xf32> to vector<2x384xf32>
    %383 = arith.truncf %380 : vector<2x128xf32> to vector<2x128xbf16>
    %cst_43 = arith.constant dense<0.000000e+00> : vector<2x384xf32>
    %384 = tpu.matmul %383, %8, %cst_43 {dimension_numbers = #tpu.dot_dimension_numbers<[1], [0], [0], [1], [0, 0, 1, 1], [], []>} : vector<2x128xbf16>, vector<128x384xbf16>, vector<2x384xf32> -> vector<2x384xf32>
    %385 = arith.addf %384, %11 : vector<2x384xf32>
    %386 = vector.extract_strided_slice %382 {offsets = [0, 0], sizes = [2, 128], strides = [1, 1]} : vector<2x384xf32> to vector<2x128xf32>
    %387 = vector.extract_strided_slice %385 {offsets = [0, 0], sizes = [2, 128], strides = [1, 1]} : vector<2x384xf32> to vector<2x128xf32>
    %388 = arith.addf %386, %387 : vector<2x128xf32>
    %389 = math.tanh %388 : vector<2x128xf32>
    %390 = vector.extract_strided_slice %382 {offsets = [0, 128], sizes = [2, 128], strides = [1, 1]} : vector<2x384xf32> to vector<2x128xf32>
    %391 = vector.extract_strided_slice %385 {offsets = [0, 128], sizes = [2, 128], strides = [1, 1]} : vector<2x384xf32> to vector<2x128xf32>
    %392 = arith.addf %390, %391 : vector<2x128xf32>
    %393 = math.tanh %392 : vector<2x128xf32>
    %394 = vector.extract_strided_slice %382 {offsets = [0, 256], sizes = [2, 128], strides = [1, 1]} : vector<2x384xf32> to vector<2x128xf32>
    %395 = vector.extract_strided_slice %385 {offsets = [0, 256], sizes = [2, 128], strides = [1, 1]} : vector<2x384xf32> to vector<2x128xf32>
    %396 = arith.mulf %389, %395 : vector<2x128xf32>
    %397 = arith.addf %394, %396 : vector<2x128xf32>
    %398 = math.tanh %397 : vector<2x128xf32>
    %cst_44 = arith.constant 1.000000e+00 : f32
    %399 = vector.broadcast %cst_44 : f32 to vector<2x128xf32>
    %400 = arith.subf %399, %393 : vector<2x128xf32>
    %401 = arith.mulf %400, %398 : vector<2x128xf32>
    %402 = arith.mulf %393, %380 : vector<2x128xf32>
    %403 = arith.addf %401, %402 : vector<2x128xf32>
    %404 = vector.extract_strided_slice %7 {offsets = [0, 17, 0], sizes = [2, 1, 384], strides = [1, 1, 1]} : vector<2x32x384xf32> to vector<2x1x384xf32>
    %405 = vector.shape_cast %404 : vector<2x1x384xf32> to vector<2x384xf32>
    %406 = arith.truncf %403 : vector<2x128xf32> to vector<2x128xbf16>
    %cst_45 = arith.constant dense<0.000000e+00> : vector<2x384xf32>
    %407 = tpu.matmul %406, %8, %cst_45 {dimension_numbers = #tpu.dot_dimension_numbers<[1], [0], [0], [1], [0, 0, 1, 1], [], []>} : vector<2x128xbf16>, vector<128x384xbf16>, vector<2x384xf32> -> vector<2x384xf32>
    %408 = arith.addf %407, %11 : vector<2x384xf32>
    %409 = vector.extract_strided_slice %405 {offsets = [0, 0], sizes = [2, 128], strides = [1, 1]} : vector<2x384xf32> to vector<2x128xf32>
    %410 = vector.extract_strided_slice %408 {offsets = [0, 0], sizes = [2, 128], strides = [1, 1]} : vector<2x384xf32> to vector<2x128xf32>
    %411 = arith.addf %409, %410 : vector<2x128xf32>
    %412 = math.tanh %411 : vector<2x128xf32>
    %413 = vector.extract_strided_slice %405 {offsets = [0, 128], sizes = [2, 128], strides = [1, 1]} : vector<2x384xf32> to vector<2x128xf32>
    %414 = vector.extract_strided_slice %408 {offsets = [0, 128], sizes = [2, 128], strides = [1, 1]} : vector<2x384xf32> to vector<2x128xf32>
    %415 = arith.addf %413, %414 : vector<2x128xf32>
    %416 = math.tanh %415 : vector<2x128xf32>
    %417 = vector.extract_strided_slice %405 {offsets = [0, 256], sizes = [2, 128], strides = [1, 1]} : vector<2x384xf32> to vector<2x128xf32>
    %418 = vector.extract_strided_slice %408 {offsets = [0, 256], sizes = [2, 128], strides = [1, 1]} : vector<2x384xf32> to vector<2x128xf32>
    %419 = arith.mulf %412, %418 : vector<2x128xf32>
    %420 = arith.addf %417, %419 : vector<2x128xf32>
    %421 = math.tanh %420 : vector<2x128xf32>
    %cst_46 = arith.constant 1.000000e+00 : f32
    %422 = vector.broadcast %cst_46 : f32 to vector<2x128xf32>
    %423 = arith.subf %422, %416 : vector<2x128xf32>
    %424 = arith.mulf %423, %421 : vector<2x128xf32>
    %425 = arith.mulf %416, %403 : vector<2x128xf32>
    %426 = arith.addf %424, %425 : vector<2x128xf32>
    %427 = vector.extract_strided_slice %7 {offsets = [0, 18, 0], sizes = [2, 1, 384], strides = [1, 1, 1]} : vector<2x32x384xf32> to vector<2x1x384xf32>
    %428 = vector.shape_cast %427 : vector<2x1x384xf32> to vector<2x384xf32>
    %429 = arith.truncf %426 : vector<2x128xf32> to vector<2x128xbf16>
    %cst_47 = arith.constant dense<0.000000e+00> : vector<2x384xf32>
    %430 = tpu.matmul %429, %8, %cst_47 {dimension_numbers = #tpu.dot_dimension_numbers<[1], [0], [0], [1], [0, 0, 1, 1], [], []>} : vector<2x128xbf16>, vector<128x384xbf16>, vector<2x384xf32> -> vector<2x384xf32>
    %431 = arith.addf %430, %11 : vector<2x384xf32>
    %432 = vector.extract_strided_slice %428 {offsets = [0, 0], sizes = [2, 128], strides = [1, 1]} : vector<2x384xf32> to vector<2x128xf32>
    %433 = vector.extract_strided_slice %431 {offsets = [0, 0], sizes = [2, 128], strides = [1, 1]} : vector<2x384xf32> to vector<2x128xf32>
    %434 = arith.addf %432, %433 : vector<2x128xf32>
    %435 = math.tanh %434 : vector<2x128xf32>
    %436 = vector.extract_strided_slice %428 {offsets = [0, 128], sizes = [2, 128], strides = [1, 1]} : vector<2x384xf32> to vector<2x128xf32>
    %437 = vector.extract_strided_slice %431 {offsets = [0, 128], sizes = [2, 128], strides = [1, 1]} : vector<2x384xf32> to vector<2x128xf32>
    %438 = arith.addf %436, %437 : vector<2x128xf32>
    %439 = math.tanh %438 : vector<2x128xf32>
    %440 = vector.extract_strided_slice %428 {offsets = [0, 256], sizes = [2, 128], strides = [1, 1]} : vector<2x384xf32> to vector<2x128xf32>
    %441 = vector.extract_strided_slice %431 {offsets = [0, 256], sizes = [2, 128], strides = [1, 1]} : vector<2x384xf32> to vector<2x128xf32>
    %442 = arith.mulf %435, %441 : vector<2x128xf32>
    %443 = arith.addf %440, %442 : vector<2x128xf32>
    %444 = math.tanh %443 : vector<2x128xf32>
    %cst_48 = arith.constant 1.000000e+00 : f32
    %445 = vector.broadcast %cst_48 : f32 to vector<2x128xf32>
    %446 = arith.subf %445, %439 : vector<2x128xf32>
    %447 = arith.mulf %446, %444 : vector<2x128xf32>
    %448 = arith.mulf %439, %426 : vector<2x128xf32>
    %449 = arith.addf %447, %448 : vector<2x128xf32>
    %450 = vector.extract_strided_slice %7 {offsets = [0, 19, 0], sizes = [2, 1, 384], strides = [1, 1, 1]} : vector<2x32x384xf32> to vector<2x1x384xf32>
    %451 = vector.shape_cast %450 : vector<2x1x384xf32> to vector<2x384xf32>
    %452 = arith.truncf %449 : vector<2x128xf32> to vector<2x128xbf16>
    %cst_49 = arith.constant dense<0.000000e+00> : vector<2x384xf32>
    %453 = tpu.matmul %452, %8, %cst_49 {dimension_numbers = #tpu.dot_dimension_numbers<[1], [0], [0], [1], [0, 0, 1, 1], [], []>} : vector<2x128xbf16>, vector<128x384xbf16>, vector<2x384xf32> -> vector<2x384xf32>
    %454 = arith.addf %453, %11 : vector<2x384xf32>
    %455 = vector.extract_strided_slice %451 {offsets = [0, 0], sizes = [2, 128], strides = [1, 1]} : vector<2x384xf32> to vector<2x128xf32>
    %456 = vector.extract_strided_slice %454 {offsets = [0, 0], sizes = [2, 128], strides = [1, 1]} : vector<2x384xf32> to vector<2x128xf32>
    %457 = arith.addf %455, %456 : vector<2x128xf32>
    %458 = math.tanh %457 : vector<2x128xf32>
    %459 = vector.extract_strided_slice %451 {offsets = [0, 128], sizes = [2, 128], strides = [1, 1]} : vector<2x384xf32> to vector<2x128xf32>
    %460 = vector.extract_strided_slice %454 {offsets = [0, 128], sizes = [2, 128], strides = [1, 1]} : vector<2x384xf32> to vector<2x128xf32>
    %461 = arith.addf %459, %460 : vector<2x128xf32>
    %462 = math.tanh %461 : vector<2x128xf32>
    %463 = vector.extract_strided_slice %451 {offsets = [0, 256], sizes = [2, 128], strides = [1, 1]} : vector<2x384xf32> to vector<2x128xf32>
    %464 = vector.extract_strided_slice %454 {offsets = [0, 256], sizes = [2, 128], strides = [1, 1]} : vector<2x384xf32> to vector<2x128xf32>
    %465 = arith.mulf %458, %464 : vector<2x128xf32>
    %466 = arith.addf %463, %465 : vector<2x128xf32>
    %467 = math.tanh %466 : vector<2x128xf32>
    %cst_50 = arith.constant 1.000000e+00 : f32
    %468 = vector.broadcast %cst_50 : f32 to vector<2x128xf32>
    %469 = arith.subf %468, %462 : vector<2x128xf32>
    %470 = arith.mulf %469, %467 : vector<2x128xf32>
    %471 = arith.mulf %462, %449 : vector<2x128xf32>
    %472 = arith.addf %470, %471 : vector<2x128xf32>
    %473 = arith.truncf %472 : vector<2x128xf32> to vector<2x128xbf16>
    %c0_51 = arith.constant 0 : index
    %c0_52 = arith.constant 0 : index
    %474 = vector.load %arg5[%c0_51, %c0_52] : memref<128x128xbf16, #tpu.memory_space<vmem>>, vector<128x128xbf16>
    %cst_53 = arith.constant dense<0.000000e+00> : vector<2x128xf32>
    %475 = tpu.matmul %473, %474, %cst_53 {dimension_numbers = #tpu.dot_dimension_numbers<[1], [0], [0], [1], [0, 0, 1, 1], [], []>} : vector<2x128xbf16>, vector<128x128xbf16>, vector<2x128xf32> -> vector<2x128xf32>
    %c0_54 = arith.constant 0 : index
    %c0_55 = arith.constant 0 : index
    %476 = vector.load %arg6[%c0_54, %c0_55] : memref<1x128xf32, #tpu.memory_space<vmem>>, vector<1x128xf32>
    %477 = vector.broadcast %476 : vector<1x128xf32> to vector<2x128xf32>
    %478 = arith.addf %475, %477 : vector<2x128xf32>
    %479 = math.tanh %478 : vector<2x128xf32>
    %480 = arith.truncf %479 : vector<2x128xf32> to vector<2x128xbf16>
    %c0_56 = arith.constant 0 : index
    %c0_57 = arith.constant 0 : index
    %481 = vector.load %arg7[%c0_56, %c0_57] : memref<128x128xbf16, #tpu.memory_space<vmem>>, vector<128x128xbf16>
    %cst_58 = arith.constant dense<0.000000e+00> : vector<2x128xf32>
    %482 = tpu.matmul %480, %481, %cst_58 {dimension_numbers = #tpu.dot_dimension_numbers<[1], [0], [0], [1], [0, 0, 1, 1], [], []>} : vector<2x128xbf16>, vector<128x128xbf16>, vector<2x128xf32> -> vector<2x128xf32>
    %c0_59 = arith.constant 0 : index
    %c0_60 = arith.constant 0 : index
    %483 = vector.load %arg8[%c0_59, %c0_60] : memref<1x128xf32, #tpu.memory_space<vmem>>, vector<1x128xf32>
    %484 = vector.broadcast %483 : vector<1x128xf32> to vector<2x128xf32>
    %485 = arith.addf %482, %484 : vector<2x128xf32>
    %c0_61 = arith.constant 0 : index
    %c0_62 = arith.constant 0 : index
    %486 = vector.load %arg9[%c0_61, %c0_62] : memref<2x128xf32, #tpu.memory_space<vmem>>, vector<2x128xf32>
    tpu.vector_store %arg9[%c0_61, %c0_62], %485 {strides = array<i32>} : memref<2x128xf32, #tpu.memory_space<vmem>>, vector<2x128xf32>,
    return
  }
}

</mosaic_0001>

<bundles_post_ra>
// kernel: tpu_custom_call.1
= control target key start
LH: loop header
LB: loop body
LE: loop exit
PB: predicated region body
PF: predicated region fallthrough
CT: control target
= control target key end

     0   :  { %14 = vsyncpa [#allocation3], 0  ;;  %s6282_s0 = inlined_call_operand.hbm [shape: bf16[2,32,128], index: 0, kind: input, shape index: {}]   ;;  %s6283_s1 = inlined_call_operand.hbm [shape: bf16[128,384], index: 1, kind: input, shape index: {}]   ;;  %s6284_s2 = inlined_call_operand.vmem [shape: f32[1,384], index: 2, kind: input, shape index: {}]   ;;  %s6285_s3 = inlined_call_operand.hbm [shape: bf16[128,384], index: 3, kind: input, shape index: {}]   ;;  %s6286_s4 = inlined_call_operand.vmem [shape: f32[1,384], index: 4, kind: input, shape index: {}]   ;;  %s6287_s5 = inlined_call_operand.hbm [shape: bf16[128,128], index: 5, kind: input, shape index: {}]   ;;  %s6288_s6 = inlined_call_operand.vmem [shape: f32[1,128], index: 6, kind: input, shape index: {}]   ;;  %s6289_s7 = inlined_call_operand.hbm [shape: bf16[128,128], index: 7, kind: input, shape index: {}]   ;;  %s6290_s8 = inlined_call_operand.vmem [shape: f32[1,128], index: 8, kind: input, shape index: {}]   ;;  %s6291_s9 = inlined_call_operand.hbm [shape: f32[2,128], index: 9, kind: output, shape index: {}]  }
   0x1   :  { %15 = vsyncpa [#allocation6], 0 }
   0x2   :  { %16 = vsyncpa [#allocation9], 0 }
   0x3   :  { %17 = vsyncpa [#allocation4], 0  ;;  %s4816_s30 = smov [#allocation5]  }
   0x4   :  { %s35_s10 = sshll.u32 %s4816_s30, 4  ;;  %s36_s10 = int_to_ptr.vmem [resolvable:$true] %s35_s10 }
   0x5   :  { %s4696_s11 = scalar_lea.vmem %s36_s10, 3072  ;;  %p4701_p1 = scmp.lt.s32.totalorder %s36_s10, %s36_s10 }
   0x6   :  { %p4697_p0 = scmp.ne.s32.totalorder %s36_s10, %s4696_s11  ;;  %p4702_p2 = scmp.lt.s32.totalorder %s4696_s11, %s4696_s11 }
   0x8   :  { %p4703_p3 = por %p4702_p2, %p4701_p1 }
   0xa   :  { %p4704_p4 = pnand %p4703_p3, %p4697_p0 }
   0xc   :  { %4707 = shalt.err (!%p4704_p4)
}
   0xd   :  { %s4817_s12 = smov 192   ;;  %s4818_s13 = smov 12  }
   0xe   :  { %41 = dma.hbm_to_vmem [thread:$0]  %s6283_s1, 3072, %s36_s10, [#allocation6], %s4817_s12, %s4817_s12, %s4818_s13  }
   0xf   :  { %s4819_s16 = smov [#allocation8]   ;;  %s4820_s18 = smov [#allocation2]  }
  0x10   :  { %s63_s17 = sshll.u32 %s4819_s16, 4  ;;  %s23_s19 = sshll.u32 %s4820_s18, 4  ;;  %s64_s17 = int_to_ptr.vmem [resolvable:$true] %s63_s17  ;;  %s24_s19 = int_to_ptr.vmem [resolvable:$true] %s23_s19 }
  0x11   :  { %s4716_s20 = scalar_lea.vmem %s64_s17, 1024  ;;  %p4721_p6 = scmp.lt.s32.totalorder %s64_s17, %s64_s17 }
  0x12   :  { %p4717_p5 = scmp.ne.s32.totalorder %s64_s17, %s4716_s20  ;;  %p4722_p7 = scmp.lt.s32.totalorder %s4716_s20, %s4716_s20 }
  0x14   :  { %p4723_p8 = por %p4722_p7, %p4721_p6 }
  0x16   :  { %p4724_p9 = pnand %p4723_p8, %p4717_p5 }
  0x18   :  { %4727 = shalt.err (!%p4724_p9)
}
  0x19   :  { %s4821_s21 = smov 64   ;;  %s4822_s22 = smov 4  }
  0x1a   :  { %69 = dma.hbm_to_vmem [thread:$0]  %s6287_s5, 1024, %s64_s17, [#allocation9], %s4821_s21, %s4821_s21, %s4822_s22  }
  0x1b   :  { %s4736_s1 = scalar_lea.vmem %s24_s19, 512  ;;  %p4741_p11 = scmp.lt.s32.totalorder %s24_s19, %s24_s19 }
  0x1c   :  { %p4737_p10 = scmp.ne.s32.totalorder %s24_s19, %s4736_s1  ;;  %p4742_p12 = scmp.lt.s32.totalorder %s4736_s1, %s4736_s1 }
  0x1e   :  { %p4743_p13 = por %p4742_p12, %p4741_p11 }
  0x20   :  { %p4744_p0 = pnand %p4743_p13, %p4737_p10 }
  0x22   :  { %4747 = shalt.err (!%p4744_p0)
}
  0x23   :  { %29 = dma.hbm_to_vmem [thread:$0]  %s6282_s0, 512, %s24_s19, [#allocation3], %s4821_s21, %s4821_s21, %s4822_s22  }
  0x24   :  { %s4823_s27 = smov [#allocation7]   ;;  %s4824_s29 = smov [#allocation10]  }
  0x25   :  { %s49_s28 = sshll.u32 %s4823_s27, 4  ;;  %s77_s5 = sshll.u32 %s4824_s29, 4  ;;  %s50_s28 = int_to_ptr.vmem [resolvable:$true] %s49_s28  ;;  %s78_s5 = int_to_ptr.vmem [resolvable:$true] %s77_s5 }
  0x26   :  { %s4756_s30 = scalar_lea.vmem %s50_s28, 3072  ;;  %p4761_p2 = scmp.lt.s32.totalorder %s50_s28, %s50_s28 }
  0x27   :  { %p4757_p1 = scmp.ne.s32.totalorder %s50_s28, %s4756_s30  ;;  %p4762_p3 = scmp.lt.s32.totalorder %s4756_s30, %s4756_s30 }
  0x29   :  { %p4763_p4 = por %p4762_p3, %p4761_p2 }
  0x2b   :  { %p4764_p5 = pnand %p4763_p4, %p4757_p1 }
  0x2d   :  { %4767 = shalt.err (!%p4764_p5)
}
  0x2e   :  { %55 = dma.hbm_to_vmem [thread:$0]  %s6285_s3, 3072, %s50_s28, [#allocation6], %s4817_s12, %s4817_s12, %s4818_s13  }
  0x2f   :  { %s4776_s0 = scalar_lea.vmem %s78_s5, 1024  ;;  %p4781_p7 = scmp.lt.s32.totalorder %s78_s5, %s78_s5 }
  0x30   :  { %p4777_p6 = scmp.ne.s32.totalorder %s78_s5, %s4776_s0  ;;  %p4782_p8 = scmp.lt.s32.totalorder %s4776_s0, %s4776_s0 }
  0x32   :  { %p4783_p9 = por %p4782_p8, %p4781_p7 }
  0x34   :  { %p4784_p10 = pnand %p4783_p9, %p4777_p6 }
  0x36   :  { %4787 = shalt.err (!%p4784_p10)
}
  0x37   :  { %83 = dma.hbm_to_vmem [thread:$0]  %s6289_s7, 1024, %s78_s5, [#allocation9], %s4821_s21, %s4821_s21, %s4822_s22  }
  0x38   :  { %4808 = dma.done.wait [#allocation3], 512  }
  0x39   :  { %4809 = vsyncadd [#allocation3], 4294966784 }
  0x3a   :  { %4810 = dma.done.wait [#allocation6], 6144  }
  0x3b   :  { %4811 = vsyncadd [#allocation6], 4294961152 }
  0x3c   :  { %4812 = dma.done.wait [#allocation9], 2048  }
  0x3d   :  { %4813 = vsyncadd [#allocation9], 4294965248  ;;  %v6292_v0 = vmov 0   ;;  %v4290_v1 = vld [vmem:[#allocation5 + $0xac] ss:$12 sps:$4 sm:$0xff]   ;;  %v4320_v19 = vld [vmem:[#allocation2] sm:$0xff]   ;;  %v144_v54 = vlaneseq }
  0x3e   :  { %343 = vmatprep.mubr.bf16.mxu0 %v6292_v0  ;;  %v4292_v2 = vld [vmem:[#allocation5 + $0xa8] ss:$12 sps:$4 sm:$0xff]   ;;  %311 = vmatprep.subr.bf16.mxu0 %v4290_v1  ;;  %v4295_v4 = vld [vmem:[#allocation5 + $0x90] ss:$12 sps:$4 sm:$0xff]   ;;  %v4298_v7 = vld [vmem:[#allocation5 + $0x78] ss:$12 sps:$4 sm:$0xff]  }
  0x3f   :  { %v4293_v3 = vld [vmem:[#allocation5 + $0x94] ss:$12 sps:$4 sm:$0xff]   ;;  %312 = vmatpush1.bf16.msra.mxu0 %v4292_v2  ;;  %v4296_v5 = vld [vmem:[#allocation5 + $0x7c] ss:$12 sps:$4 sm:$0xff]   ;;  %v4303_v8 = vld [vmem:[#allocation5 + $0x98] ss:$12 sps:$4 sm:$0xff]   ;;  %3829 = vmatprep.mubr.bf16.mxu1 %v4320_v19 }
  0x40   :  { %313 = vmatprep.subr.bf16.mxu0 %v4293_v3  ;;  %v4299_v6 = vld [vmem:[#allocation5 + $0xb0] ss:$12 sps:$4 sm:$0xff]   ;;  %v4307_v10 = vld [vmem:[#allocation5 + $0x80] ss:$12 sps:$4 sm:$0xff]   ;;  %v4311_v13 = vld [vmem:[#allocation5 + $0x68] ss:$12 sps:$4 sm:$0xff]  }
  0x41   :  { %3813 = vmatprep.subr.bf16.mxu1 %v4299_v6  ;;  %v4300_v9 = vld [vmem:[#allocation5 + $0x64] ss:$12 sps:$4 sm:$0xff]   ;;  %v4302_v11 = vld [vmem:[#allocation5 + $0x60] ss:$12 sps:$4 sm:$0xff]   ;;  %v4306_v14 = vld [vmem:[#allocation5 + $0x48] ss:$12 sps:$4 sm:$0xff]  }
  0x42   :  { %3814 = vmatpush3.bf16.msra.mxu1 %v4299_v6  ;;  %v4304_v12 = vld [vmem:[#allocation5 + $0x4c] ss:$12 sps:$4 sm:$0xff]   ;;  %v4308_v15 = vld [vmem:[#allocation5 + $0x34] ss:$12 sps:$4 sm:$0xff]   ;;  %v4315_v16 = vld [vmem:[#allocation5 + $0x50] ss:$12 sps:$4 sm:$0xff]  }
  0x43   :  { %314 = vmatpush1.bf16.msra.mxu0 %v4295_v4  ;;  %3815 = vmatprep.subr.bf16.mxu1 %v4303_v8  ;;  %v4310_v17 = vld [vmem:[#allocation5 + $0x30] ss:$12 sps:$4 sm:$0xff]   ;;  %v4319_v20 = vld [vmem:[#allocation5 + $0x38] ss:$12 sps:$4 sm:$0xff]   ;;  %v4324_v23 = vld [vmem:[#allocation5 + $0x20] ss:$12 sps:$4 sm:$0xff]  }
  0x44   :  { %315 = vmatprep.subr.bf16.mxu0 %v4296_v5  ;;  %v4312_v18 = vld [vmem:[#allocation5 + $0x1c] ss:$12 sps:$4 sm:$0xff]   ;;  %v4314_v21 = vld [vmem:[#allocation5 + $0x18] ss:$12 sps:$4 sm:$0xff]   ;;  %v4318_v24 = vld [vmem:[#allocation5] ss:$12 sps:$4 sm:$0xff]  }
  0x45   :  { %v4316_v22 = vld [vmem:[#allocation5 + $0x4] ss:$12 sps:$4 sm:$0xff]   ;;  %v4910_v25 = vld [vmem:[#allocation7 + $0xac] ss:$12 sps:$4 sm:$0xff]   ;;  %v4328_v26 = vld [vmem:[#allocation5 + $0x8] ss:$12 sps:$4 sm:$0xff]  }
  0x46   :  { %3816 = vmatpush3.bf16.msra.mxu1 %v4303_v8  ;;  %v4912_v27 = vld [vmem:[#allocation7 + $0xa8] ss:$12 sps:$4 sm:$0xff]   ;;  %v4917_v29 = vld [vmem:[#allocation7 + $0x90] ss:$12 sps:$4 sm:$0xff]   ;;  %v4926_v33 = vld [vmem:[#allocation7 + $0x78] ss:$12 sps:$4 sm:$0xff]  }
  0x47   :  { %316 = vmatpush1.bf16.msra.mxu0 %v4298_v7  ;;  %3817 = vmatprep.subr.bf16.mxu1 %v4307_v10  ;;  %v4915_v28 = vld [vmem:[#allocation7 + $0x94] ss:$12 sps:$4 sm:$0xff]   ;;  %v4329_v30 = vld [vmem:[#allocation2 + $0x8] sm:$0xff]   ;;  %v4924_v32 = vld [vmem:[#allocation7 + $0xb0] ss:$12 sps:$4 sm:$0xff]   ;;  %v6294_v34 = vmov 0.0  }
  0x48   :  { %317 = vmatprep.subr.bf16.mxu0 %v4300_v9  ;;  %v4921_v31 = vld [vmem:[#allocation7 + $0x7c] ss:$12 sps:$4 sm:$0xff]   ;;  %v4929_v35 = vld [vmem:[#allocation7 + $0x64] ss:$12 sps:$4 sm:$0xff]   ;;  %v4936_v38 = vld [vmem:[#allocation7 + $0x60] ss:$12 sps:$4 sm:$0xff]  }
  0x49   :  { %v4337_v36 = vld [vmem:[#allocation2 + $0x10] sm:$0xff]   ;;  %v4934_v37 = vld [vmem:[#allocation7 + $0x98] ss:$12 sps:$4 sm:$0xff]   ;;  %v4941_v40 = vld [vmem:[#allocation7 + $0x80] ss:$12 sps:$4 sm:$0xff]   ;;  %vm4827_vm0 = vmmov 0  }
  0x4a   :  { %3818 = vmatpush3.bf16.msra.mxu1 %v4307_v10  ;;  %v4939_v39 = vld [vmem:[#allocation7 + $0x4c] ss:$12 sps:$4 sm:$0xff]   ;;  %v4947_v42 = vld [vmem:[#allocation7 + $0x48] ss:$12 sps:$4 sm:$0xff]   ;;  %v4957_v45 = vld [vmem:[#allocation7 + $0x30] ss:$12 sps:$4 sm:$0xff]  }
  0x4b   :  { %318 = vmatpush1.bf16.msra.mxu0 %v4302_v11  ;;  %3819 = vmatprep.subr.bf16.mxu1 %v4311_v13  ;;  %v4346_v41 = vld [vmem:[#allocation2 + $0x18] sm:$0xff]   ;;  %v4950_v43 = vld [vmem:[#allocation7 + $0x34] ss:$12 sps:$4 sm:$0xff]   ;;  %v4975_v49 = vld [vmem:[#allocation7 + $0x4] ss:$12 sps:$4 sm:$0xff]   ;;  %v145_v55 = vshrl.u32 %v144_v54, 7 }
  0x4c   :  { %319 = vmatprep.subr.bf16.mxu0 %v4304_v12  ;;  %v4952_v44 = vld [vmem:[#allocation7 + $0x68] ss:$12 sps:$4 sm:$0xff]   ;;  %v4968_v47 = vld [vmem:[#allocation7 + $0x50] ss:$12 sps:$4 sm:$0xff]   ;;  %v4972_v48 = vld [vmem:[#allocation7 + $0x18] ss:$12 sps:$4 sm:$0xff]  }
  0x4d   :  { %v4965_v46 = vld [vmem:[#allocation7 + $0x1c] ss:$12 sps:$4 sm:$0xff]   ;;  %v4978_v50 = vld [vmem:[#allocation7 + $0x38] ss:$12 sps:$4 sm:$0xff]   ;;  %v4982_v51 = vld [vmem:[#allocation7] ss:$12 sps:$4 sm:$0xff]  }
  0x4e   :  { %3820 = vmatpush3.bf16.msra.mxu1 %v4311_v13  ;;  %v4987_v52 = vld [vmem:[#allocation7 + $0x20] ss:$12 sps:$4 sm:$0xff]   ;;  %v4992_v53 = vld [vmem:[#allocation7 + $0x8] ss:$12 sps:$4 sm:$0xff]   ;;  %v154_v56 = vsub.s32 2, %v145_v55  ;;  %v146_v57 = vsub.s32 0, %v145_v55 }
  0x4f   :  { %320 = vmatpush1.bf16.msra.mxu0 %v4306_v14  ;;  %3821 = vmatprep.subr.bf16.mxu1 %v4315_v16  ;;  %v142_v58 = vld [vmem:[%s6284_s2] sm:$0x7]  ;;  %v150_v60 = vsub.s32 1, %v145_v55  ;;  %vm742_vm1 = vcmask 1041409   ;;  %s4828_s18 = smov [#allocation11]  }
  0x50   :  { %321 = vmatprep.subr.bf16.mxu0 %v4308_v15  ;;  %v5038_v62 = vrot.slane %v142_v58, %v154_v56  ;;  %v147_v63 = vrot.slane %v142_v58, %v146_v57  ;;  %s3522_s19 = sshll.u32 %s4828_s18, 4  ;;  %s3523_s19 = int_to_ptr.vmem [resolvable:$true] %s3522_s19 }
  0x51   :  { %v151_v2 = vrot.slane %v142_v58, %v150_v60  ;;  %p4793_p12 = scmp.lt.s32.totalorder %s3523_s19, %s3523_s19 }
  0x52   :  { %3822 = vmatpush3.bf16.msra.mxu1 %v4315_v16 }
  0x53   :  { %322 = vmatpush1.bf16.msra.mxu0 %v4310_v17  ;;  %3823 = vmatprep.subr.bf16.mxu1 %v4319_v20 }
  0x54   :  { %323 = vmatprep.subr.bf16.mxu0 %v4312_v18 }
  0x56   :  { %3824 = vmatpush3.bf16.msra.mxu1 %v4319_v20 }
  0x57   :  { %324 = vmatpush1.bf16.msra.mxu0 %v4314_v21  ;;  %3825 = vmatprep.subr.bf16.mxu1 %v4324_v23 }
  0x58   :  { %325 = vmatprep.subr.bf16.mxu0 %v4316_v22 }
  0x5a   :  { %3826 = vmatpush3.bf16.msra.mxu1 %v4324_v23 }
  0x5b   :  { %326 = vmatpush1.bf16.msra.mxu0 %v4318_v24  ;;  %3827 = vmatprep.subr.bf16.mxu1 %v4328_v26 }
  0x5c   :  { %620 = vmatprep.subr.bf16.mxu0 %v4910_v25 }
  0x5e   :  { %344 = vmatmul.mubr.bf16.vlgmr.msra.gmra.mxu0 %v4320_v19  ;;  %3828 = vmatpush3.bf16.msra.mxu1 %v4328_v26 }
  0x5f   :  { %621 = vmatpush1.bf16.msra.mxu0 %v4912_v27  ;;  %353 = vmatprep.mubr.bf16.mxu0 %v6292_v0 }
  0x60   :  { %622 = vmatprep.subr.bf16.mxu0 %v4915_v28  ;;  %3837 = vmatprep.subr.bf16.mxu1 %v6294_v34 }
  0x61   :  { %3830 = vmatmul.mubr.bf16.vlgmr.msra.gmra.mxu1 %v4329_v30 }
  0x62   :  { %3838 = vmatpush3.bf16.msra.mxu1 %v4924_v32  ;;  %3833 = vmatprep.mubr.bf16.mxu1 %v4337_v36 }
  0x63   :  { %623 = vmatpush1.bf16.msra.mxu0 %v4917_v29  ;;  %3839 = vmatprep.subr.bf16.mxu1 %v6294_v34 }
  0x64   :  { %624 = vmatprep.subr.bf16.mxu0 %v4921_v31 }
  0x66   :  { %354 = vmatmul.mubr.bf16.gmra.mxu0 %v4329_v30  ;;  %3840 = vmatpush3.bf16.msra.mxu1 %v4934_v37 }
  0x67   :  { %625 = vmatpush1.bf16.msra.mxu0 %v4926_v33  ;;  %361 = vmatprep.mubr.bf16.mxu0 %v6292_v0 }
  0x68   :  { %626 = vmatprep.subr.bf16.mxu0 %v4929_v35  ;;  %3841 = vmatprep.subr.bf16.mxu1 %v6294_v34 }
  0x69   :  { %3834 = vmatmul.mubr.bf16.gmra.mxu1 %v4346_v41 }
  0x6a   :  { %3842 = vmatpush3.bf16.msra.mxu1 %v4941_v40  ;;  %3853 = vmatprep.mubr.msk.bf16.mxu1 %vm4827_vm0, %v6294_v34 }
  0x6b   :  { %627 = vmatpush1.bf16.msra.mxu0 %v4936_v38  ;;  %3843 = vmatprep.subr.bf16.mxu1 %v6294_v34 }
  0x6c   :  { %628 = vmatprep.subr.bf16.mxu0 %v4939_v39 }
  0x6e   :  { %362 = vmatmul.mubr.bf16.gmra.mxu0 %v4337_v36  ;;  %3844 = vmatpush3.bf16.msra.mxu1 %v4952_v44 }
  0x6f   :  { %629 = vmatpush1.bf16.msra.mxu0 %v4947_v42  ;;  %371 = vmatprep.mubr.bf16.mxu0 %v6292_v0 }
  0x70   :  { %630 = vmatprep.subr.bf16.mxu0 %v4950_v43  ;;  %3845 = vmatprep.subr.bf16.mxu1 %v6294_v34 }
  0x72   :  { %3846 = vmatpush3.bf16.msra.mxu1 %v4968_v47 }
  0x73   :  { %631 = vmatpush1.bf16.msra.mxu0 %v4957_v45  ;;  %3847 = vmatprep.subr.bf16.mxu1 %v6294_v34 }
  0x74   :  { %632 = vmatprep.subr.bf16.mxu0 %v4965_v46 }
  0x76   :  { %372 = vmatmul.mubr.bf16.gmra.mxu0 %v4346_v41  ;;  %3848 = vmatpush3.bf16.msra.mxu1 %v4978_v50 }
  0x77   :  { %633 = vmatpush1.bf16.msra.mxu0 %v4972_v48  ;;  %652 = vmatprep.mubr.bf16.mxu0 %v6292_v0 }
  0x78   :  { %634 = vmatprep.subr.bf16.mxu0 %v4975_v49  ;;  %3849 = vmatprep.subr.bf16.mxu1 %v6294_v34 }
  0x7a   :  { %3850 = vmatpush3.bf16.msra.mxu1 %v4987_v52 }
  0x7b   :  { %635 = vmatpush1.bf16.msra.mxu0 %v4982_v51  ;;  %3851 = vmatprep.subr.bf16.mxu1 %v6294_v34 }
  0x7c   :  { %746 = vmatprep.subr.bf16.mxu0 %v4910_v25 }
  0x7e   :  { %653 = vmatmul.mubr.bf16.vlgmr.msra.gmra.mxu0 %v6292_v0  ;;  %3852 = vmatpush3.bf16.msra.mxu1 %v4992_v53 }
  0x7f   :  { %747 = vmatpush1.bf16.msra.mxu0 %v4912_v27  ;;  %778 = vmatprep.mubr.bf16.mxu0 %v6292_v0 }
  0x80   :  { %748 = vmatprep.subr.bf16.mxu0 %v4915_v28  ;;  %3857 = vmatprep.subr.bf16.mxu1 %v6294_v34 }
  0x81   :  { %3854 = vmatmul.mubr.bf16.vlgmr.msra.gmra.mxu1 %v6292_v0 }
  0x82   :  { %3858 = vmatpush3.bf16.msra.mxu1 %v4924_v32  ;;  %3873 = vmatprep.mubr.msk.bf16.mxu1 %vm4827_vm0, %v6294_v34 }
  0x83   :  { %749 = vmatpush1.bf16.msra.mxu0 %v4917_v29  ;;  %3859 = vmatprep.subr.bf16.mxu1 %v6294_v34 }
  0x84   :  { %750 = vmatprep.subr.bf16.mxu0 %v4921_v31 }
  0x86   :  { %3860 = vmatpush3.bf16.msra.mxu1 %v4934_v37 }
  0x87   :  { %751 = vmatpush1.bf16.msra.mxu0 %v4926_v33  ;;  %3861 = vmatprep.subr.bf16.mxu1 %v6294_v34 }
  0x88   :  { %752 = vmatprep.subr.bf16.mxu0 %v4929_v35 }
  0x8a   :  { %3862 = vmatpush3.bf16.msra.mxu1 %v4941_v40 }
  0x8b   :  { %753 = vmatpush1.bf16.msra.mxu0 %v4936_v38  ;;  %3863 = vmatprep.subr.bf16.mxu1 %v6294_v34 }
  0x8c   :  { %754 = vmatprep.subr.bf16.mxu0 %v4939_v39 }
  0x8e   :  { %3864 = vmatpush3.bf16.msra.mxu1 %v4952_v44 }
  0x8f   :  { %755 = vmatpush1.bf16.msra.mxu0 %v4947_v42  ;;  %3865 = vmatprep.subr.bf16.mxu1 %v6294_v34 }
  0x90   :  { %756 = vmatprep.subr.bf16.mxu0 %v4950_v43 }
  0x92   :  { %3866 = vmatpush3.bf16.msra.mxu1 %v4968_v47 }
  0x93   :  { %757 = vmatpush1.bf16.msra.mxu0 %v4957_v45  ;;  %3867 = vmatprep.subr.bf16.mxu1 %v6294_v34 }
  0x94   :  { %758 = vmatprep.subr.bf16.mxu0 %v4965_v46 }
  0x96   :  { %3868 = vmatpush3.bf16.msra.mxu1 %v4978_v50 }
  0x97   :  { %759 = vmatpush1.bf16.msra.mxu0 %v4972_v48  ;;  %3869 = vmatprep.subr.bf16.mxu1 %v6294_v34 }
  0x98   :  { %760 = vmatprep.subr.bf16.mxu0 %v4975_v49 }
  0x9a   :  { %3870 = vmatpush3.bf16.msra.mxu1 %v4987_v52 }
  0x9b   :  { %761 = vmatpush1.bf16.msra.mxu0 %v4982_v51  ;;  %3871 = vmatprep.subr.bf16.mxu1 %v6294_v34 }
  0x9c   :  { %877 = vmatprep.subr.bf16.mxu0 %v4910_v25 }
  0x9e   :  { %3872 = vmatpush3.bf16.msra.mxu1 %v4992_v53 }
  0x9f   :  { %3877 = vmatprep.subr.bf16.mxu1 %v6294_v34 }
 0x11e   :  { %v345_v59 = vpop.f32.mrf.mxu0 }
 0x120   :  { %v347_v61 = vpop.f32.mrf.mxu0 }
 0x121   :  { %v3831_v4 = vpop.f32.mrf.mxu1 }
 0x122   :  { %v349_v1 = vpop.f32.mrf.mxu0  ;;  %v5043_v6 = vadd.f32 %v3831_v4, %v5038_v62 }
 0x123   :  { %v5040_v3 = vadd.f32 %v349_v1, %v147_v63  ;;  %v414_v8 = vpop.f32.mrf.mxu1  ;;  %v475_v1 = vld [vmem:[%s6286_s4] sm:$0x7] }
 0x124   :  { %v351_v5 = vpop.f32.mrf.mxu0  ;;  %6300 = vst [vmem:[#allocation16_spill] sm:$0xff] %v5043_v6 }
 0x125   :  { %v5045_v7 = vadd.f32 %v351_v5, %v151_v2  ;;  %v3832_v11 = vpop.f32.mrf.mxu1 }
 0x126   :  { %v355_v9 = vpop.f32.mrf.mxu0  ;;  %v5071_v11 = vrot.slane %v475_v1, %v146_v57 }
 0x127   :  { %v5047_v10 = vadd.f32 %v355_v9, %v147_v63  ;;  %v417_v14 = vpop.f32.mrf.mxu1 }
 0x128   :  { %v357_v12 = vpop.f32.mrf.mxu0  ;;  %v5052_v16 = vadd.f32 %v417_v14, %v5038_v62 }
 0x129   :  { %v5049_v13 = vadd.f32 %v357_v12, %v151_v2  ;;  %v3835_v17 = vpop.f32.mrf.mxu1 }
 0x12a   :  { %v359_v15 = vpop.f32.mrf.mxu0  ;;  %v5055_v19 = vadd.f32 %v3835_v17, %v5038_v62 }
 0x12b   :  { %6301 = vst [vmem:[#allocation17_spill] sm:$0xff] %v5049_v13  ;;  %v429_v20 = vpop.f32.mrf.mxu1  ;;  %v5073_v15 = vadd.f32 %v345_v59, %v147_v63  ;;  %v5082_v59 = vrot.slane %v475_v1, %v154_v56  ;;  %v5093_v56 = vadd.f32 %v414_v8, %v5038_v62 }
 0x12c   :  { %v360_v18 = vpop.f32.mrf.mxu0  ;;  %6302 = vst [vmem:[#allocation18_spill] sm:$0xff] %v5055_v19 }
 0x12d   :  { %v3836_v22 = vpop.f32.mrf.mxu1 }
 0x12e   :  { %v363_v21 = vpop.f32.mrf.mxu0 }
 0x12f   :  { %v432_v24 = vpop.f32.mrf.mxu1  ;;  %v5076_v22 = vadd.f32 %v363_v21, %v147_v63  ;;  %v5085_v21 = vadd.f32 %v347_v61, %v151_v2  ;;  %v5096_v61 = vadd.f32 %v429_v20, %v5038_v62 }
 0x130   :  { %v365_v23 = vpop.f32.mrf.mxu0  ;;  %v5058_v30 = vadd.f32 %v432_v24, %v5038_v62 }
 0x132   :  { %v367_v26 = vpop.f32.mrf.mxu0 }
 0x133   :  { %v5060_v36 = vadd.f32 %v367_v26, %v147_v63 }
 0x134   :  { %v369_v41 = vpop.f32.mrf.mxu0 }
 0x135   :  { %v5062_v54 = vadd.f32 %v369_v41, %v151_v2 }
 0x136   :  { %v373_v55 = vpop.f32.mrf.mxu0 }
 0x137   :  { %v5064_v58 = vadd.f32 %v373_v55, %v147_v63  ;;  %v5079_v55 = vrot.slane %v475_v1, %v150_v60  ;;  %v5088_v60 = vadd.f32 %v365_v23, %v151_v2 }
 0x138   :  { %v375_v4 = vpop.f32.mrf.mxu0 }
 0x139   :  { %v5069_v5 = vadd.f32 %v375_v4, %v151_v2 }
 0x13a   :  { %v377_v9 = vpop.f32.mrf.mxu0 }
 0x13b   :  { %6303 = vst [vmem:[#allocation19_spill] sm:$0xff] %v5069_v5 }
 0x13c   :  { %v378_v12 = vpop.f32.mrf.mxu0 }
 0x13e   :  { %v654_v14 = vpop.f32.mrf.mxu0 }
 0x13f   :  { %v655_v17 = vadd.f32 %v654_v14, %v5071_v11 }
 0x140   :  { %v656_v18 = vpop.f32.mrf.mxu0 }
 0x141   :  { %v702_v24 = vrot.slane %v655_v17, 1  ;;  %v705_v26 = vadd.f32 %v655_v17, %v5073_v15  ;;  %v695_v57 = vpop.f32.mrf.mxu1  ;;  %v657_v14 = vadd.f32 %v656_v18, %v5079_v55 }
 0x142   :  { %v658_v41 = vpop.f32.mrf.mxu0  ;;  %v696_v17 = vadd.f32 %v695_v57, %v5082_v59 }
 0x143   :  { %v706_v4 = vadd.f32 %v702_v24, %v5076_v22  ;;  %4374 = vtanh.f32 %v705_v26  ;;  %v3855_v12 = vpop.f32.mrf.mxu1  ;;  %v710_v34 = vrot.slane %v657_v14, 1  ;;  %v713_v24 = vadd.f32 %v657_v14, %v5085_v21 }
 0x144   :  { %v659_v9 = vpop.f32.mrf.mxu0  ;;  %v718_v41 = vrot.slane %v696_v17, 1 }
 0x145   :  { %4376 = vtanh.f32 %v706_v4  ;;  %v698_v0 = vpop.f32.mrf.mxu1  ;;  %v714_v26 = vadd.f32 %v710_v34, %v5088_v60 }
 0x146   :  { %4378 = vtanh.f32 %v713_v24 }
 0x147   :  { %v3856_v63 = vpop.f32.mrf.mxu1  ;;  %4380 = vtanh.f32 %v714_v26 }
 0x150   :  { %v4375_v4 = vpop.eup %4374 }
 0x151   :  { %v721_v1 = vmul.f32 %v4375_v4, %v696_v17 }
 0x152   :  { %v4377_v0 = vpop.eup %4376 }
 0x153   :  { %v722_v18 = vmul.f32 %v4377_v0, %v718_v41  ;;  %v723_v2 = vadd.f32 %v721_v1, %v5093_v56  ;;  %v4379_v34 = vpop.eup %4378 }
 0x154   :  { %v4381_v57 = vpop.eup %4380  ;;  %v727_v9 = vsub.f32 1.0, %v4379_v34  ;;  %v731_v63 = vmul.f32 0.0, %v4379_v34  ;;  %v6304_v34 = vmov 0.0  }
 0x155   :  { %v724_v23 = vadd.f32 %v722_v18, %v5096_v61  ;;  %4382 = vtanh.f32 %v723_v2  ;;  %v728_v8 = vsub.f32 1.0, %v4381_v57  ;;  %v732_v26 = vmul.f32 0.0, %v4381_v57 }
 0x156   :  { %v6305_v57 = vmov 0  }
 0x157   :  { %4384 = vtanh.f32 %v724_v23 }
 0x162   :  { %v4383_v12 = vpop.eup %4382 }
 0x163   :  { %v729_v14 = vmul.f32 %v4383_v12, %v727_v9 }
 0x164   :  { %v4385_v17 = vpop.eup %4384 }
 0x165   :  { %v730_v24 = vmul.f32 %v4385_v17, %v728_v8  ;;  %v5100_v4 = vadd.f32 %v731_v63, %v729_v14 }
 0x167   :  { %v5102_v62 = vadd.f32 %v732_v26, %v730_v24  ;;  %v735_v20 = vpack.c.bf16 %v5100_v4, %v5100_v4 }
 0x169   :  { %v736_v41 = vpack.c.bf16 %v5102_v62, %v5102_v62  ;;  %v739_v0 = vunpack.c.l.b16 %v735_v20 }
 0x16b   :  { %v740_v1 = vunpack.c.l.b16 %v736_v41 }
 0x16d   :  { %v741_v18 = vrot.slane %v740_v1, 7 }
 0x16f   :  { %v743_v2 = vsel %vm742_vm1, %v741_v18, %v739_v0 }
 0x170   :  { %v744_v23 = vpack.c.b16 %v743_v2, %v743_v2 }
 0x172   :  { %779 = vmatmul.mubr.bf16.vlgmr.msra.gmra.mxu0 %v744_v23  ;;  %3874 = vmatmul.mubr.bf16.vlgmr.msra.gmra.mxu1 %v744_v23 }
 0x173   :  { %878 = vmatpush1.bf16.msra.mxu0 %v4912_v27  ;;  %3878 = vmatpush3.bf16.msra.mxu1 %v4924_v32 }
 0x174   :  { %879 = vmatprep.subr.bf16.mxu0 %v4915_v28  ;;  %3879 = vmatprep.subr.bf16.mxu1 %v6304_v34 }
 0x175   :  { %909 = vmatprep.mubr.bf16.mxu0 %v6305_v57  ;;  %3893 = vmatprep.mubr.msk.bf16.mxu1 %vm4827_vm0, %v6304_v34 }
 0x177   :  { %880 = vmatpush1.bf16.msra.mxu0 %v4917_v29  ;;  %3880 = vmatpush3.bf16.msra.mxu1 %v4934_v37 }
 0x178   :  { %881 = vmatprep.subr.bf16.mxu0 %v4921_v31  ;;  %3881 = vmatprep.subr.bf16.mxu1 %v6304_v34 }
 0x17b   :  { %882 = vmatpush1.bf16.msra.mxu0 %v4926_v33  ;;  %3882 = vmatpush3.bf16.msra.mxu1 %v4941_v40 }
 0x17c   :  { %883 = vmatprep.subr.bf16.mxu0 %v4929_v35  ;;  %3883 = vmatprep.subr.bf16.mxu1 %v6304_v34 }
 0x17f   :  { %884 = vmatpush1.bf16.msra.mxu0 %v4936_v38  ;;  %3884 = vmatpush3.bf16.msra.mxu1 %v4952_v44 }
 0x180   :  { %885 = vmatprep.subr.bf16.mxu0 %v4939_v39  ;;  %3885 = vmatprep.subr.bf16.mxu1 %v6304_v34 }
 0x183   :  { %886 = vmatpush1.bf16.msra.mxu0 %v4947_v42  ;;  %3886 = vmatpush3.bf16.msra.mxu1 %v4968_v47 }
 0x184   :  { %887 = vmatprep.subr.bf16.mxu0 %v4950_v43  ;;  %3887 = vmatprep.subr.bf16.mxu1 %v6304_v34 }
 0x187   :  { %888 = vmatpush1.bf16.msra.mxu0 %v4957_v45  ;;  %3888 = vmatpush3.bf16.msra.mxu1 %v4978_v50 }
 0x188   :  { %889 = vmatprep.subr.bf16.mxu0 %v4965_v46  ;;  %3889 = vmatprep.subr.bf16.mxu1 %v6304_v34 }
 0x18b   :  { %890 = vmatpush1.bf16.msra.mxu0 %v4972_v48  ;;  %3890 = vmatpush3.bf16.msra.mxu1 %v4987_v52 }
 0x18c   :  { %891 = vmatprep.subr.bf16.mxu0 %v4975_v49  ;;  %3891 = vmatprep.subr.bf16.mxu1 %v6304_v34 }
 0x18f   :  { %892 = vmatpush1.bf16.msra.mxu0 %v4982_v51  ;;  %3892 = vmatpush3.bf16.msra.mxu1 %v4992_v53 }
 0x190   :  { %1012 = vmatprep.subr.bf16.mxu0 %v4910_v25  ;;  %3897 = vmatprep.subr.bf16.mxu1 %v6304_v34 }
 0x232   :  { %v780_v9 = vpop.f32.mrf.mxu0  ;;  %v821_v12 = vpop.f32.mrf.mxu1 }
 0x233   :  { %v781_v8 = vadd.f32 %v780_v9, %v5071_v11  ;;  %v822_v23 = vadd.f32 %v821_v12, %v5082_v59  ;;  %v860_v12 = vrot.slane %v5102_v62, 7 }
 0x234   :  { %v782_v14 = vpop.f32.mrf.mxu0  ;;  %v3875_v63 = vpop.f32.mrf.mxu1 }
 0x235   :  { %v828_v17 = vrot.slane %v781_v8, 7  ;;  %v832_v24 = vadd.f32 %v781_v8, %v5076_v22  ;;  %v783_v18 = vadd.f32 %v782_v14, %v5079_v55  ;;  %v844_v6 = vrot.slane %v822_v23, 7 }
 0x236   :  { %v784_v26 = vpop.f32.mrf.mxu0  ;;  %v824_v20 = vpop.f32.mrf.mxu1 }
 0x237   :  { %v831_v41 = vadd.f32 %v828_v17, %v5073_v15  ;;  %4386 = vtanh.f32 %v832_v24  ;;  %v836_v2 = vrot.slane %v783_v18, 7  ;;  %v840_v9 = vadd.f32 %v783_v18, %v5088_v60 }
 0x238   :  { %v785_v1 = vpop.f32.mrf.mxu0  ;;  %v3876_v0 = vpop.f32.mrf.mxu1  ;;  %v859_v18 = vrot.slane %v5100_v4, 7 }
 0x239   :  { %4388 = vtanh.f32 %v831_v41  ;;  %v839_v63 = vadd.f32 %v836_v2, %v5085_v21 }
 0x23a   :  { %4390 = vtanh.f32 %v840_v9 }
 0x23b   :  { %4392 = vtanh.f32 %v839_v63 }
 0x244   :  { %v4387_v19 = vpop.eup %4386 }
 0x245   :  { %v848_v8 = vmul.f32 %v4387_v19, %v822_v23 }
 0x246   :  { %v4389_v26 = vpop.eup %4388 }
 0x247   :  { %v847_v20 = vmul.f32 %v4389_v26, %v844_v6  ;;  %v850_v17 = vadd.f32 %v848_v8, %v5096_v61  ;;  %v4391_v14 = vpop.eup %4390 }
 0x248   :  { %v4393_v41 = vpop.eup %4392  ;;  %v854_v1 = vsub.f32 1.0, %v4391_v14  ;;  %v864_v23 = vmul.f32 %v4391_v14, %v860_v12 }
 0x249   :  { %v849_v24 = vadd.f32 %v847_v20, %v5093_v56  ;;  %4394 = vtanh.f32 %v850_v17  ;;  %v853_v2 = vsub.f32 1.0, %v4393_v41  ;;  %v863_v26 = vmul.f32 %v4393_v41, %v859_v18 }
 0x24b   :  { %4396 = vtanh.f32 %v849_v24 }
 0x256   :  { %v4395_v0 = vpop.eup %4394 }
 0x257   :  { %v856_v19 = vmul.f32 %v4395_v0, %v854_v1 }
 0x258   :  { %v4397_v9 = vpop.eup %4396 }
 0x259   :  { %v855_v6 = vmul.f32 %v4397_v9, %v853_v2  ;;  %v5155_v8 = vadd.f32 %v864_v23, %v856_v19 }
 0x25b   :  { %v5157_v63 = vadd.f32 %v863_v26, %v855_v6  ;;  %v868_v62 = vpack.c.bf16 %v5155_v8, %v5155_v8 }
 0x25d   :  { %v867_v20 = vpack.c.bf16 %v5157_v63, %v5157_v63  ;;  %v872_v24 = vunpack.c.l.b16 %v868_v62 }
 0x25f   :  { %v871_v17 = vunpack.c.l.b16 %v867_v20 }
 0x261   :  { %v873_v5 = vrot.slane %v871_v17, 1 }
 0x263   :  { %v874_v4 = vsel %vm742_vm1, %v872_v24, %v873_v5 }
 0x264   :  { %v875_v1 = vpack.c.b16 %v874_v4, %v874_v4 }
 0x266   :  { %910 = vmatmul.mubr.bf16.vlgmr.msra.gmra.mxu0 %v875_v1  ;;  %3894 = vmatmul.mubr.bf16.vlgmr.msra.gmra.mxu1 %v875_v1 }
 0x267   :  { %1013 = vmatpush1.bf16.msra.mxu0 %v4912_v27  ;;  %3898 = vmatpush3.bf16.msra.mxu1 %v4924_v32 }
 0x268   :  { %1014 = vmatprep.subr.bf16.mxu0 %v4915_v28  ;;  %3899 = vmatprep.subr.bf16.mxu1 %v6304_v34 }
 0x269   :  { %1044 = vmatprep.mubr.bf16.mxu0 %v6305_v57  ;;  %3913 = vmatprep.mubr.msk.bf16.mxu1 %vm4827_vm0, %v6304_v34 }
 0x26b   :  { %1015 = vmatpush1.bf16.msra.mxu0 %v4917_v29  ;;  %3900 = vmatpush3.bf16.msra.mxu1 %v4934_v37 }
 0x26c   :  { %1016 = vmatprep.subr.bf16.mxu0 %v4921_v31  ;;  %3901 = vmatprep.subr.bf16.mxu1 %v6304_v34 }
 0x26f   :  { %1017 = vmatpush1.bf16.msra.mxu0 %v4926_v33  ;;  %3902 = vmatpush3.bf16.msra.mxu1 %v4941_v40 }
 0x270   :  { %1018 = vmatprep.subr.bf16.mxu0 %v4929_v35  ;;  %3903 = vmatprep.subr.bf16.mxu1 %v6304_v34 }
 0x273   :  { %1019 = vmatpush1.bf16.msra.mxu0 %v4936_v38  ;;  %3904 = vmatpush3.bf16.msra.mxu1 %v4952_v44 }
 0x274   :  { %1020 = vmatprep.subr.bf16.mxu0 %v4939_v39  ;;  %3905 = vmatprep.subr.bf16.mxu1 %v6304_v34 }
 0x277   :  { %1021 = vmatpush1.bf16.msra.mxu0 %v4947_v42  ;;  %3906 = vmatpush3.bf16.msra.mxu1 %v4968_v47 }
 0x278   :  { %1022 = vmatprep.subr.bf16.mxu0 %v4950_v43  ;;  %3907 = vmatprep.subr.bf16.mxu1 %v6304_v34 }
 0x27b   :  { %1023 = vmatpush1.bf16.msra.mxu0 %v4957_v45  ;;  %3908 = vmatpush3.bf16.msra.mxu1 %v4978_v50 }
 0x27c   :  { %1024 = vmatprep.subr.bf16.mxu0 %v4965_v46  ;;  %3909 = vmatprep.subr.bf16.mxu1 %v6304_v34 }
 0x27f   :  { %1025 = vmatpush1.bf16.msra.mxu0 %v4972_v48  ;;  %3910 = vmatpush3.bf16.msra.mxu1 %v4987_v52 }
 0x280   :  { %1026 = vmatprep.subr.bf16.mxu0 %v4975_v49  ;;  %3911 = vmatprep.subr.bf16.mxu1 %v6304_v34 }
 0x283   :  { %1027 = vmatpush1.bf16.msra.mxu0 %v4982_v51  ;;  %3912 = vmatpush3.bf16.msra.mxu1 %v4992_v53 }
 0x284   :  { %1147 = vmatprep.subr.bf16.mxu0 %v4910_v25  ;;  %3917 = vmatprep.subr.bf16.mxu1 %v6304_v34 }
 0x326   :  { %v911_v5 = vpop.f32.mrf.mxu0  ;;  %v952_v14 = vpop.f32.mrf.mxu1 }
 0x327   :  { %v912_v41 = vadd.f32 %v911_v5, %v5071_v11  ;;  %v953_v4 = vadd.f32 %v952_v14, %v5082_v59 }
 0x328   :  { %v913_v12 = vpop.f32.mrf.mxu0  ;;  %v3895_v0 = vpop.f32.mrf.mxu1 }
 0x329   :  { %v959_v18 = vrot.slane %v912_v41, 6  ;;  %v960_v2 = vrot.slane %v912_v41, 7  ;;  %v914_v62 = vadd.f32 %v913_v12, %v5079_v55  ;;  %v977_v41 = vrot.slane %v953_v4, 6 }
 0x32a   :  { %v915_v19 = vpop.f32.mrf.mxu0  ;;  %v955_v23 = vpop.f32.mrf.mxu1 }
 0x32b   :  { %v963_v9 = vadd.f32 %v959_v18, %v5073_v15  ;;  %v964_v6 = vadd.f32 %v960_v2, %v5076_v22  ;;  %v968_v17 = vrot.slane %v914_v62, 6  ;;  %v969_v24 = vrot.slane %v914_v62, 7 }
 0x32c   :  { %v916_v26 = vpop.f32.mrf.mxu0  ;;  %v3896_v20 = vpop.f32.mrf.mxu1  ;;  %v978_v19 = vrot.slane %v953_v4, 7 }
 0x32d   :  { %4398 = vtanh.f32 %v963_v9  ;;  %v972_v1 = vadd.f32 %v968_v17, %v5085_v21  ;;  %v973_v5 = vadd.f32 %v969_v24, %v5088_v60  ;;  %v993_v26 = vrot.slane %v5157_v63, 7 }
 0x32e   :  { %4400 = vtanh.f32 %v964_v6  ;;  %v994_v17 = vrot.slane %v5155_v8, 7 }
 0x32f   :  { %4402 = vtanh.f32 %v972_v1 }
 0x330   :  { %4404 = vtanh.f32 %v973_v5 }
 0x33a   :  { %v4399_v0 = vpop.eup %4398 }
 0x33b   :  { %v4401_v18 = vpop.eup %4400  ;;  %v981_v23 = vmul.f32 %v4399_v0, %v977_v41 }
 0x33c   :  { %v982_v2 = vmul.f32 %v4401_v18, %v978_v19  ;;  %v4403_v6 = vpop.eup %4402 }
 0x33d   :  { %v983_v9 = vadd.f32 %v981_v23, %v5093_v56  ;;  %v4405_v14 = vpop.eup %4404  ;;  %v987_v20 = vsub.f32 1.0, %v4403_v6  ;;  %v997_v1 = vmul.f32 %v4403_v6, %v993_v26 }
 0x33e   :  { %v984_v12 = vadd.f32 %v982_v2, %v5096_v61  ;;  %v988_v24 = vsub.f32 1.0, %v4405_v14  ;;  %v998_v5 = vmul.f32 %v4405_v14, %v994_v17 }
 0x33f   :  { %4406 = vtanh.f32 %v983_v9 }
 0x340   :  { %4408 = vtanh.f32 %v984_v12 }
 0x34c   :  { %v4407_v62 = vpop.eup %4406 }
 0x34d   :  { %v4409_v4 = vpop.eup %4408  ;;  %v989_v41 = vmul.f32 %v4407_v62, %v987_v20 }
 0x34e   :  { %v990_v0 = vmul.f32 %v4409_v4, %v988_v24 }
 0x34f   :  { %v5210_v19 = vadd.f32 %v997_v1, %v989_v41 }
 0x350   :  { %v5212_v18 = vadd.f32 %v998_v5, %v990_v0 }
 0x351   :  { %v1001_v23 = vpack.c.bf16 %v5210_v19, %v5210_v19 }
 0x352   :  { %v1002_v63 = vpack.c.bf16 %v5212_v18, %v5212_v18 }
 0x353   :  { %v1005_v2 = vunpack.c.l.b16 %v1001_v23 }
 0x354   :  { %v1006_v9 = vunpack.c.l.b16 %v1002_v63 }
 0x355   :  { %v1007_v12 = vrot.slane %v1005_v2, 2 }
 0x356   :  { %v1008_v8 = vrot.slane %v1006_v9, 1 }
 0x358   :  { %v1009_v13 = vsel %vm742_vm1, %v1008_v8, %v1007_v12 }
 0x359   :  { %v1010_v20 = vpack.c.b16 %v1009_v13, %v1009_v13 }
 0x35b   :  { %1045 = vmatmul.mubr.bf16.vlgmr.msra.gmra.mxu0 %v1010_v20  ;;  %3914 = vmatmul.mubr.bf16.vlgmr.msra.gmra.mxu1 %v1010_v20 }
 0x35c   :  { %1148 = vmatpush1.bf16.msra.mxu0 %v4912_v27  ;;  %3918 = vmatpush3.bf16.msra.mxu1 %v4924_v32 }
 0x35d   :  { %1149 = vmatprep.subr.bf16.mxu0 %v4915_v28  ;;  %3919 = vmatprep.subr.bf16.mxu1 %v6304_v34 }
 0x35e   :  { %1179 = vmatprep.mubr.bf16.mxu0 %v6305_v57  ;;  %3933 = vmatprep.mubr.msk.bf16.mxu1 %vm4827_vm0, %v6304_v34 }
 0x360   :  { %1150 = vmatpush1.bf16.msra.mxu0 %v4917_v29  ;;  %3920 = vmatpush3.bf16.msra.mxu1 %v4934_v37 }
 0x361   :  { %1151 = vmatprep.subr.bf16.mxu0 %v4921_v31  ;;  %3921 = vmatprep.subr.bf16.mxu1 %v6304_v34 }
 0x364   :  { %1152 = vmatpush1.bf16.msra.mxu0 %v4926_v33  ;;  %3922 = vmatpush3.bf16.msra.mxu1 %v4941_v40 }
 0x365   :  { %1153 = vmatprep.subr.bf16.mxu0 %v4929_v35  ;;  %3923 = vmatprep.subr.bf16.mxu1 %v6304_v34 }
 0x368   :  { %1154 = vmatpush1.bf16.msra.mxu0 %v4936_v38  ;;  %3924 = vmatpush3.bf16.msra.mxu1 %v4952_v44 }
 0x369   :  { %1155 = vmatprep.subr.bf16.mxu0 %v4939_v39  ;;  %3925 = vmatprep.subr.bf16.mxu1 %v6304_v34 }
 0x36c   :  { %1156 = vmatpush1.bf16.msra.mxu0 %v4947_v42  ;;  %3926 = vmatpush3.bf16.msra.mxu1 %v4968_v47 }
 0x36d   :  { %1157 = vmatprep.subr.bf16.mxu0 %v4950_v43  ;;  %3927 = vmatprep.subr.bf16.mxu1 %v6304_v34 }
 0x370   :  { %1158 = vmatpush1.bf16.msra.mxu0 %v4957_v45  ;;  %3928 = vmatpush3.bf16.msra.mxu1 %v4978_v50 }
 0x371   :  { %1159 = vmatprep.subr.bf16.mxu0 %v4965_v46  ;;  %3929 = vmatprep.subr.bf16.mxu1 %v6304_v34 }
 0x374   :  { %1160 = vmatpush1.bf16.msra.mxu0 %v4972_v48  ;;  %3930 = vmatpush3.bf16.msra.mxu1 %v4987_v52 }
 0x375   :  { %1161 = vmatprep.subr.bf16.mxu0 %v4975_v49  ;;  %3931 = vmatprep.subr.bf16.mxu1 %v6304_v34 }
 0x378   :  { %1162 = vmatpush1.bf16.msra.mxu0 %v4982_v51  ;;  %3932 = vmatpush3.bf16.msra.mxu1 %v4992_v53 }
 0x379   :  { %1282 = vmatprep.subr.bf16.mxu0 %v4910_v25  ;;  %3937 = vmatprep.subr.bf16.mxu1 %v6304_v34 }
 0x41b   :  { %v1046_v27 = vpop.f32.mrf.mxu0  ;;  %v1087_v28 = vpop.f32.mrf.mxu1 }
 0x41c   :  { %v1047_v29 = vadd.f32 %v1046_v27, %v5071_v11  ;;  %v1088_v41 = vadd.f32 %v1087_v28, %v5082_v59 }
 0x41d   :  { %v1048_v31 = vpop.f32.mrf.mxu0  ;;  %v3915_v32 = vpop.f32.mrf.mxu1 }
 0x41e   :  { %v1094_v33 = vrot.slane %v1047_v29, 5  ;;  %v1095_v35 = vrot.slane %v1047_v29, 6  ;;  %v1049_v25 = vadd.f32 %v1048_v31, %v5079_v55  ;;  %v1112_v5 = vrot.slane %v1088_v41, 5 }
 0x41f   :  { %v1050_v13 = vpop.f32.mrf.mxu0  ;;  %v1090_v6 = vpop.f32.mrf.mxu1  ;;  %v1113_v63 = vrot.slane %v1088_v41, 6  ;;  %v1128_v29 = vrot.slane %v5210_v19, 7 }
 0x420   :  { %v1098_v14 = vadd.f32 %v1094_v33, %v5073_v15  ;;  %v1099_v26 = vadd.f32 %v1095_v35, %v5076_v22  ;;  %v1103_v24 = vrot.slane %v1049_v25, 5  ;;  %v1104_v4 = vrot.slane %v1049_v25, 6 }
 0x421   :  { %v1051_v62 = vpop.f32.mrf.mxu0  ;;  %v3916_v17 = vpop.f32.mrf.mxu1  ;;  %v1129_v33 = vrot.slane %v5212_v18, 7 }
 0x422   :  { %4410 = vtanh.f32 %v1098_v14  ;;  %v1107_v1 = vadd.f32 %v1103_v24, %v5085_v21  ;;  %v1108_v0 = vadd.f32 %v1104_v4, %v5088_v60 }
 0x423   :  { %4412 = vtanh.f32 %v1099_v26 }
 0x424   :  { %4414 = vtanh.f32 %v1107_v1 }
 0x425   :  { %4416 = vtanh.f32 %v1108_v0 }
 0x42f   :  { %v4411_v23 = vpop.eup %4410 }
 0x430   :  { %v4413_v2 = vpop.eup %4412  ;;  %v1116_v9 = vmul.f32 %v4411_v23, %v1112_v5  ;;  %v5274_v23 = vld [vmem:[#allocation7 + $0xa8] ss:$12 sps:$4 sm:$0xff]  }
 0x431   :  { %v1117_v12 = vmul.f32 %v4413_v2, %v1113_v63  ;;  %v4415_v27 = vpop.eup %4414  ;;  %v5277_v63 = vld [vmem:[#allocation7 + $0xb0] ss:$12 sps:$4 sm:$0xff]   ;;  %v5280_v2 = vld [vmem:[#allocation7 + $0x94] ss:$12 sps:$4 sm:$0xff]  }
 0x432   :  { %v1118_v8 = vadd.f32 %v1116_v9, %v5093_v56  ;;  %v4417_v28 = vpop.eup %4416  ;;  %v1122_v31 = vsub.f32 1.0, %v4415_v27  ;;  %v1132_v14 = vmul.f32 %v4415_v27, %v1128_v29  ;;  %v5287_v9 = vld [vmem:[#allocation7 + $0x90] ss:$12 sps:$4 sm:$0xff]  }
 0x433   :  { %v1119_v20 = vadd.f32 %v1117_v12, %v5096_v61  ;;  %v1123_v35 = vsub.f32 1.0, %v4417_v28  ;;  %v1133_v62 = vmul.f32 %v4417_v28, %v1129_v33  ;;  %v5291_v12 = vld [vmem:[#allocation7 + $0x7c] ss:$12 sps:$4 sm:$0xff]  }
 0x434   :  { %4418 = vtanh.f32 %v1118_v8  ;;  %v5295_v8 = vld [vmem:[#allocation7 + $0x78] ss:$12 sps:$4 sm:$0xff]  }
 0x435   :  { %4420 = vtanh.f32 %v1119_v20  ;;  %v5299_v20 = vld [vmem:[#allocation7 + $0x64] ss:$12 sps:$4 sm:$0xff]  }
 0x441   :  { %v4419_v32 = vpop.eup %4418 }
 0x442   :  { %v4421_v13 = vpop.eup %4420  ;;  %v1124_v6 = vmul.f32 %v4419_v32, %v1122_v31 }
 0x443   :  { %v1125_v26 = vmul.f32 %v4421_v13, %v1123_v35 }
 0x444   :  { %v5265_v17 = vadd.f32 %v1132_v14, %v1124_v6 }
 0x445   :  { %v5267_v25 = vadd.f32 %v1133_v62, %v1125_v26 }
 0x446   :  { %v1136_v24 = vpack.c.bf16 %v5265_v17, %v5265_v17 }
 0x447   :  { %v1137_v19 = vpack.c.bf16 %v5267_v25, %v5267_v25 }
 0x448   :  { %v1140_v4 = vunpack.c.l.b16 %v1136_v24 }
 0x449   :  { %v1141_v41 = vunpack.c.l.b16 %v1137_v19 }
 0x44a   :  { %v1142_v1 = vrot.slane %v1140_v4, 3  ;;  %v1263_v4 = vrot.slane %v5265_v17, 7 }
 0x44b   :  { %v1143_v18 = vrot.slane %v1141_v41, 2 }
 0x44d   :  { %v1144_v0 = vsel %vm742_vm1, %v1143_v18, %v1142_v1  ;;  %v1264_v18 = vrot.slane %v5267_v25, 7 }
 0x44e   :  { %v1145_v5 = vpack.c.b16 %v1144_v0, %v1144_v0 }
 0x450   :  { %1180 = vmatmul.mubr.bf16.vlgmr.msra.gmra.mxu0 %v1145_v5  ;;  %3934 = vmatmul.mubr.bf16.vlgmr.msra.gmra.mxu1 %v1145_v5 }
 0x451   :  { %1283 = vmatpush1.bf16.msra.mxu0 %v5274_v23  ;;  %3938 = vmatpush3.bf16.msra.mxu1 %v5277_v63 }
 0x452   :  { %1284 = vmatprep.subr.bf16.mxu0 %v5280_v2  ;;  %3939 = vmatprep.subr.bf16.mxu1 %v6304_v34 }
 0x453   :  { %1314 = vmatprep.mubr.bf16.mxu0 %v6305_v57  ;;  %3953 = vmatprep.mubr.msk.bf16.mxu1 %vm4827_vm0, %v6304_v34 }
 0x455   :  { %1285 = vmatpush1.bf16.msra.mxu0 %v5287_v9  ;;  %3940 = vmatpush3.bf16.msra.mxu1 %v4934_v37  ;;  %v5321_v37 = vld [vmem:[#allocation7 + $0xac] ss:$12 sps:$4 sm:$0xff]  }
 0x456   :  { %1286 = vmatprep.subr.bf16.mxu0 %v5291_v12  ;;  %3941 = vmatprep.subr.bf16.mxu1 %v6304_v34 }
 0x459   :  { %1287 = vmatpush1.bf16.msra.mxu0 %v5295_v8  ;;  %3942 = vmatpush3.bf16.msra.mxu1 %v4941_v40 }
 0x45a   :  { %1288 = vmatprep.subr.bf16.mxu0 %v5299_v20  ;;  %3943 = vmatprep.subr.bf16.mxu1 %v6304_v34 }
 0x45d   :  { %1289 = vmatpush1.bf16.msra.mxu0 %v4936_v38  ;;  %3944 = vmatpush3.bf16.msra.mxu1 %v4952_v44 }
 0x45e   :  { %1290 = vmatprep.subr.bf16.mxu0 %v4939_v39  ;;  %3945 = vmatprep.subr.bf16.mxu1 %v6304_v34 }
 0x461   :  { %1291 = vmatpush1.bf16.msra.mxu0 %v4947_v42  ;;  %3946 = vmatpush3.bf16.msra.mxu1 %v4968_v47 }
 0x462   :  { %1292 = vmatprep.subr.bf16.mxu0 %v4950_v43  ;;  %3947 = vmatprep.subr.bf16.mxu1 %v6304_v34 }
 0x465   :  { %1293 = vmatpush1.bf16.msra.mxu0 %v4957_v45  ;;  %3948 = vmatpush3.bf16.msra.mxu1 %v4978_v50 }
 0x466   :  { %1294 = vmatprep.subr.bf16.mxu0 %v4965_v46  ;;  %3949 = vmatprep.subr.bf16.mxu1 %v6304_v34 }
 0x469   :  { %1295 = vmatpush1.bf16.msra.mxu0 %v4972_v48  ;;  %3950 = vmatpush3.bf16.msra.mxu1 %v4987_v52 }
 0x46a   :  { %1296 = vmatprep.subr.bf16.mxu0 %v4975_v49  ;;  %3951 = vmatprep.subr.bf16.mxu1 %v6304_v34 }
 0x46d   :  { %1297 = vmatpush1.bf16.msra.mxu0 %v4982_v51  ;;  %3952 = vmatpush3.bf16.msra.mxu1 %v4992_v53 }
 0x46e   :  { %1417 = vmatprep.subr.bf16.mxu0 %v5321_v37  ;;  %3957 = vmatprep.subr.bf16.mxu1 %v6304_v34 }
 0x510   :  { %v1181_v38 = vpop.f32.mrf.mxu0  ;;  %v1222_v39 = vpop.f32.mrf.mxu1 }
 0x511   :  { %v1182_v40 = vadd.f32 %v1181_v38, %v5071_v11  ;;  %v1223_v28 = vadd.f32 %v1222_v39, %v5082_v59 }
 0x512   :  { %v1183_v42 = vpop.f32.mrf.mxu0  ;;  %v3935_v43 = vpop.f32.mrf.mxu1 }
 0x513   :  { %v1229_v44 = vrot.slane %v1182_v40, 4  ;;  %v1230_v45 = vrot.slane %v1182_v40, 5  ;;  %v1184_v52 = vadd.f32 %v1183_v42, %v5079_v55  ;;  %v1247_v32 = vrot.slane %v1223_v28, 4 }
 0x514   :  { %v1185_v46 = vpop.f32.mrf.mxu0  ;;  %v1225_v47 = vpop.f32.mrf.mxu1  ;;  %v1248_v35 = vrot.slane %v1223_v28, 5  ;;  %v5370_v28 = vld [vmem:[#allocation7 + $0x4c] ss:$12 sps:$4 sm:$0xff]  }
 0x515   :  { %v1233_v48 = vadd.f32 %v1229_v44, %v5073_v15  ;;  %v1234_v49 = vadd.f32 %v1230_v45, %v5076_v22  ;;  %v1238_v53 = vrot.slane %v1184_v52, 4  ;;  %v1239_v27 = vrot.slane %v1184_v52, 5  ;;  %v5359_v52 = vld [vmem:[#allocation7 + $0x80] ss:$12 sps:$4 sm:$0xff]  }
 0x516   :  { %v1186_v50 = vpop.f32.mrf.mxu0  ;;  %v3936_v51 = vpop.f32.mrf.mxu1 }
 0x517   :  { %4422 = vtanh.f32 %v1233_v48  ;;  %v1242_v29 = vadd.f32 %v1238_v53, %v5085_v21  ;;  %v1243_v31 = vadd.f32 %v1239_v27, %v5088_v60  ;;  %v5353_v51 = vld [vmem:[#allocation7 + $0x98] ss:$12 sps:$4 sm:$0xff]   ;;  %v5364_v53 = vld [vmem:[#allocation7 + $0x60] ss:$12 sps:$4 sm:$0xff]   ;;  %v5367_v27 = vld [vmem:[#allocation7 + $0x68] ss:$12 sps:$4 sm:$0xff]  }
 0x518   :  { %4424 = vtanh.f32 %v1234_v49 }
 0x519   :  { %4426 = vtanh.f32 %v1242_v29  ;;  %v5374_v29 = vld [vmem:[#allocation7 + $0x48] ss:$12 sps:$4 sm:$0xff]  }
 0x51a   :  { %4428 = vtanh.f32 %v1243_v31  ;;  %v5377_v31 = vld [vmem:[#allocation7 + $0x50] ss:$12 sps:$4 sm:$0xff]  }
 0x524   :  { %v4423_v33 = vpop.eup %4422 }
 0x525   :  { %v4425_v13 = vpop.eup %4424  ;;  %v1251_v6 = vmul.f32 %v4423_v33, %v1247_v32  ;;  %v5380_v32 = vld [vmem:[#allocation7 + $0x34] ss:$12 sps:$4 sm:$0xff]   ;;  %v5384_v33 = vld [vmem:[#allocation7 + $0x30] ss:$12 sps:$4 sm:$0xff]  }
 0x526   :  { %v1252_v14 = vmul.f32 %v4425_v13, %v1248_v35  ;;  %v4427_v24 = vpop.eup %4426  ;;  %v5387_v35 = vld [vmem:[#allocation7 + $0x38] ss:$12 sps:$4 sm:$0xff]   ;;  %v5390_v13 = vld [vmem:[#allocation7 + $0x1c] ss:$12 sps:$4 sm:$0xff]  }
 0x527   :  { %v1253_v26 = vadd.f32 %v1251_v6, %v5093_v56  ;;  %v4429_v19 = vpop.eup %4428  ;;  %v1257_v41 = vsub.f32 1.0, %v4427_v24  ;;  %v1267_v39 = vmul.f32 %v4427_v24, %v1263_v4  ;;  %v5394_v6 = vld [vmem:[#allocation7 + $0x18] ss:$12 sps:$4 sm:$0xff]   ;;  %v5407_v24 = vld [vmem:[#allocation7 + $0x8] ss:$12 sps:$4 sm:$0xff]  }
 0x528   :  { %v1254_v62 = vadd.f32 %v1252_v14, %v5096_v61  ;;  %v1258_v0 = vsub.f32 1.0, %v4429_v19  ;;  %v1268_v42 = vmul.f32 %v4429_v19, %v1264_v18  ;;  %v5397_v14 = vld [vmem:[#allocation7 + $0x20] ss:$12 sps:$4 sm:$0xff]  }
 0x529   :  { %4430 = vtanh.f32 %v1253_v26  ;;  %v5400_v26 = vld [vmem:[#allocation7 + $0x4] ss:$12 sps:$4 sm:$0xff]  }
 0x52a   :  { %4432 = vtanh.f32 %v1254_v62  ;;  %v5404_v62 = vld [vmem:[#allocation7] ss:$12 sps:$4 sm:$0xff]  }
 0x536   :  { %v4431_v1 = vpop.eup %4430 }
 0x537   :  { %v4433_v5 = vpop.eup %4432  ;;  %v1259_v38 = vmul.f32 %v4431_v1, %v1257_v41 }
 0x538   :  { %v1260_v40 = vmul.f32 %v4433_v5, %v1258_v0 }
 0x539   :  { %v5336_v43 = vadd.f32 %v1267_v39, %v1259_v38 }
 0x53a   :  { %v5338_v44 = vadd.f32 %v1268_v42, %v1260_v40 }
 0x53b   :  { %v1271_v45 = vpack.c.bf16 %v5336_v43, %v5336_v43 }
 0x53c   :  { %v1272_v17 = vpack.c.bf16 %v5338_v44, %v5338_v44 }
 0x53d   :  { %v1275_v46 = vunpack.c.l.b16 %v1271_v45 }
 0x53e   :  { %v1276_v47 = vunpack.c.l.b16 %v1272_v17 }
 0x53f   :  { %v1277_v48 = vrot.slane %v1275_v46, 4 }
 0x540   :  { %v1278_v25 = vrot.slane %v1276_v47, 3 }
 0x542   :  { %v1279_v49 = vsel %vm742_vm1, %v1278_v25, %v1277_v48 }
 0x543   :  { %v1280_v50 = vpack.c.b16 %v1279_v49, %v1279_v49 }
 0x545   :  { %1315 = vmatmul.mubr.bf16.vlgmr.msra.gmra.mxu0 %v1280_v50  ;;  %3954 = vmatmul.mubr.bf16.vlgmr.msra.gmra.mxu1 %v1280_v50 }
 0x546   :  { %1418 = vmatpush1.bf16.msra.mxu0 %v5274_v23  ;;  %3958 = vmatpush3.bf16.msra.mxu1 %v5277_v63 }
 0x547   :  { %1419 = vmatprep.subr.bf16.mxu0 %v5280_v2  ;;  %3959 = vmatprep.subr.bf16.mxu1 %v6304_v34 }
 0x548   :  { %1449 = vmatprep.mubr.bf16.mxu0 %v6305_v57  ;;  %3973 = vmatprep.mubr.msk.bf16.mxu1 %vm4827_vm0, %v6304_v34 }
 0x54a   :  { %1420 = vmatpush1.bf16.msra.mxu0 %v5287_v9  ;;  %3960 = vmatpush3.bf16.msra.mxu1 %v5353_v51 }
 0x54b   :  { %1421 = vmatprep.subr.bf16.mxu0 %v5291_v12  ;;  %3961 = vmatprep.subr.bf16.mxu1 %v6304_v34 }
 0x54e   :  { %1422 = vmatpush1.bf16.msra.mxu0 %v5295_v8  ;;  %3962 = vmatpush3.bf16.msra.mxu1 %v5359_v52 }
 0x54f   :  { %1423 = vmatprep.subr.bf16.mxu0 %v5299_v20  ;;  %3963 = vmatprep.subr.bf16.mxu1 %v6304_v34 }
 0x552   :  { %1424 = vmatpush1.bf16.msra.mxu0 %v5364_v53  ;;  %3964 = vmatpush3.bf16.msra.mxu1 %v5367_v27 }
 0x553   :  { %1425 = vmatprep.subr.bf16.mxu0 %v5370_v28  ;;  %3965 = vmatprep.subr.bf16.mxu1 %v6304_v34 }
 0x556   :  { %1426 = vmatpush1.bf16.msra.mxu0 %v5374_v29  ;;  %3966 = vmatpush3.bf16.msra.mxu1 %v5377_v31 }
 0x557   :  { %1427 = vmatprep.subr.bf16.mxu0 %v5380_v32  ;;  %3967 = vmatprep.subr.bf16.mxu1 %v6304_v34 }
 0x55a   :  { %1428 = vmatpush1.bf16.msra.mxu0 %v5384_v33  ;;  %3968 = vmatpush3.bf16.msra.mxu1 %v5387_v35 }
 0x55b   :  { %1429 = vmatprep.subr.bf16.mxu0 %v5390_v13  ;;  %3969 = vmatprep.subr.bf16.mxu1 %v6304_v34 }
 0x55e   :  { %1430 = vmatpush1.bf16.msra.mxu0 %v5394_v6  ;;  %3970 = vmatpush3.bf16.msra.mxu1 %v5397_v14 }
 0x55f   :  { %1431 = vmatprep.subr.bf16.mxu0 %v5400_v26  ;;  %3971 = vmatprep.subr.bf16.mxu1 %v6304_v34 }
 0x562   :  { %1432 = vmatpush1.bf16.msra.mxu0 %v5404_v62  ;;  %3972 = vmatpush3.bf16.msra.mxu1 %v5407_v24 }
 0x563   :  { %1552 = vmatprep.subr.bf16.mxu0 %v5321_v37  ;;  %3977 = vmatprep.subr.bf16.mxu1 %v6304_v34 }
 0x605   :  { %v1316_v19 = vpop.f32.mrf.mxu0  ;;  %v1357_v4 = vpop.f32.mrf.mxu1 }
 0x606   :  { %v1317_v41 = vadd.f32 %v1316_v19, %v5071_v11  ;;  %v1358_v25 = vadd.f32 %v1357_v4, %v5082_v59 }
 0x607   :  { %v1318_v1 = vpop.f32.mrf.mxu0  ;;  %v3955_v18 = vpop.f32.mrf.mxu1 }
 0x608   :  { %v1364_v0 = vrot.slane %v1317_v41, 3  ;;  %v1365_v5 = vrot.slane %v1317_v41, 4  ;;  %v1319_v46 = vadd.f32 %v1318_v1, %v5079_v55  ;;  %v1382_v19 = vrot.slane %v1358_v25, 3 }
 0x609   :  { %v1320_v38 = vpop.f32.mrf.mxu0  ;;  %v1360_v39 = vpop.f32.mrf.mxu1  ;;  %v1383_v18 = vrot.slane %v1358_v25, 4 }
 0x60a   :  { %v1368_v40 = vadd.f32 %v1364_v0, %v5073_v15  ;;  %v1369_v42 = vadd.f32 %v1365_v5, %v5076_v22  ;;  %v1373_v47 = vrot.slane %v1319_v46, 3  ;;  %v1374_v48 = vrot.slane %v1319_v46, 4 }
 0x60b   :  { %v1321_v45 = vpop.f32.mrf.mxu0  ;;  %v3956_v17 = vpop.f32.mrf.mxu1  ;;  %v1399_v46 = vrot.slane %v5338_v44, 7 }
 0x60c   :  { %4434 = vtanh.f32 %v1368_v40  ;;  %v1377_v49 = vadd.f32 %v1373_v47, %v5085_v21  ;;  %v1378_v50 = vadd.f32 %v1374_v48, %v5088_v60 }
 0x60d   :  { %4436 = vtanh.f32 %v1369_v42  ;;  %v1398_v42 = vrot.slane %v5336_v43, 7 }
 0x60e   :  { %4438 = vtanh.f32 %v1377_v49 }
 0x60f   :  { %4440 = vtanh.f32 %v1378_v50 }
 0x619   :  { %v4435_v41 = vpop.eup %4434 }
 0x61a   :  { %v4437_v0 = vpop.eup %4436  ;;  %v1386_v38 = vmul.f32 %v4435_v41, %v1382_v19 }
 0x61b   :  { %v1387_v5 = vmul.f32 %v4437_v0, %v1383_v18  ;;  %v4439_v40 = vpop.eup %4438 }
 0x61c   :  { %v1388_v39 = vadd.f32 %v1386_v38, %v5093_v56  ;;  %v4441_v4 = vpop.eup %4440  ;;  %v1392_v45 = vsub.f32 1.0, %v4439_v40  ;;  %v1402_v49 = vmul.f32 %v4439_v40, %v1398_v42 }
 0x61d   :  { %v1389_v1 = vadd.f32 %v1387_v5, %v5096_v61  ;;  %v1393_v47 = vsub.f32 1.0, %v4441_v4  ;;  %v1403_v50 = vmul.f32 %v4441_v4, %v1399_v46 }
 0x61e   :  { %4442 = vtanh.f32 %v1388_v39 }
 0x61f   :  { %4444 = vtanh.f32 %v1389_v1 }
 0x62b   :  { %v4443_v17 = vpop.eup %4442 }
 0x62c   :  { %v4445_v48 = vpop.eup %4444  ;;  %v1394_v25 = vmul.f32 %v4443_v17, %v1392_v45 }
 0x62d   :  { %v1395_v19 = vmul.f32 %v4445_v48, %v1393_v47 }
 0x62e   :  { %v5423_v41 = vadd.f32 %v1402_v49, %v1394_v25 }
 0x62f   :  { %v5425_v18 = vadd.f32 %v1403_v50, %v1395_v19 }
 0x630   :  { %v1406_v0 = vpack.c.bf16 %v5423_v41, %v5423_v41 }
 0x631   :  { %v1407_v43 = vpack.c.bf16 %v5425_v18, %v5425_v18 }
 0x632   :  { %v1410_v38 = vunpack.c.l.b16 %v1406_v0 }
 0x633   :  { %v1411_v5 = vunpack.c.l.b16 %v1407_v43 }
 0x634   :  { %v1412_v39 = vrot.slane %v1410_v38, 5 }
 0x635   :  { %v1413_v44 = vrot.slane %v1411_v5, 4 }
 0x637   :  { %v1414_v1 = vsel %vm742_vm1, %v1413_v44, %v1412_v39 }
 0x638   :  { %v1415_v45 = vpack.c.b16 %v1414_v1, %v1414_v1 }
 0x63a   :  { %1450 = vmatmul.mubr.bf16.vlgmr.msra.gmra.mxu0 %v1415_v45  ;;  %3974 = vmatmul.mubr.bf16.vlgmr.msra.gmra.mxu1 %v1415_v45 }
 0x63b   :  { %1553 = vmatpush1.bf16.msra.mxu0 %v5274_v23  ;;  %3978 = vmatpush3.bf16.msra.mxu1 %v5277_v63 }
 0x63c   :  { %1554 = vmatprep.subr.bf16.mxu0 %v5280_v2  ;;  %3979 = vmatprep.subr.bf16.mxu1 %v6304_v34 }
 0x63d   :  { %1584 = vmatprep.mubr.bf16.mxu0 %v6305_v57  ;;  %3993 = vmatprep.mubr.msk.bf16.mxu1 %vm4827_vm0, %v6304_v34 }
 0x63f   :  { %1555 = vmatpush1.bf16.msra.mxu0 %v5287_v9  ;;  %3980 = vmatpush3.bf16.msra.mxu1 %v5353_v51 }
 0x640   :  { %1556 = vmatprep.subr.bf16.mxu0 %v5291_v12  ;;  %3981 = vmatprep.subr.bf16.mxu1 %v6304_v34 }
 0x643   :  { %1557 = vmatpush1.bf16.msra.mxu0 %v5295_v8  ;;  %3982 = vmatpush3.bf16.msra.mxu1 %v5359_v52 }
 0x644   :  { %1558 = vmatprep.subr.bf16.mxu0 %v5299_v20  ;;  %3983 = vmatprep.subr.bf16.mxu1 %v6304_v34 }
 0x647   :  { %1559 = vmatpush1.bf16.msra.mxu0 %v5364_v53  ;;  %3984 = vmatpush3.bf16.msra.mxu1 %v5367_v27 }
 0x648   :  { %1560 = vmatprep.subr.bf16.mxu0 %v5370_v28  ;;  %3985 = vmatprep.subr.bf16.mxu1 %v6304_v34 }
 0x64b   :  { %1561 = vmatpush1.bf16.msra.mxu0 %v5374_v29  ;;  %3986 = vmatpush3.bf16.msra.mxu1 %v5377_v31 }
 0x64c   :  { %1562 = vmatprep.subr.bf16.mxu0 %v5380_v32  ;;  %3987 = vmatprep.subr.bf16.mxu1 %v6304_v34 }
 0x64f   :  { %1563 = vmatpush1.bf16.msra.mxu0 %v5384_v33  ;;  %3988 = vmatpush3.bf16.msra.mxu1 %v5387_v35 }
 0x650   :  { %1564 = vmatprep.subr.bf16.mxu0 %v5390_v13  ;;  %3989 = vmatprep.subr.bf16.mxu1 %v6304_v34 }
 0x653   :  { %1565 = vmatpush1.bf16.msra.mxu0 %v5394_v6  ;;  %3990 = vmatpush3.bf16.msra.mxu1 %v5397_v14 }
 0x654   :  { %1566 = vmatprep.subr.bf16.mxu0 %v5400_v26  ;;  %3991 = vmatprep.subr.bf16.mxu1 %v6304_v34 }
 0x657   :  { %1567 = vmatpush1.bf16.msra.mxu0 %v5404_v62  ;;  %3992 = vmatpush3.bf16.msra.mxu1 %v5407_v24 }
 0x658   :  { %1687 = vmatprep.subr.bf16.mxu0 %v5321_v37  ;;  %3997 = vmatprep.subr.bf16.mxu1 %v6304_v34 }
 0x6fa   :  { %v1451_v40 = vpop.f32.mrf.mxu0  ;;  %v1492_v4 = vpop.f32.mrf.mxu1 }
 0x6fb   :  { %v1452_v42 = vadd.f32 %v1451_v40, %v5071_v11  ;;  %v1493_v44 = vadd.f32 %v1492_v4, %v5082_v59 }
 0x6fc   :  { %v1453_v17 = vpop.f32.mrf.mxu0  ;;  %v3975_v46 = vpop.f32.mrf.mxu1 }
 0x6fd   :  { %v1499_v47 = vrot.slane %v1452_v42, 2  ;;  %v1500_v48 = vrot.slane %v1452_v42, 3  ;;  %v1454_v38 = vadd.f32 %v1453_v17, %v5079_v55  ;;  %v1517_v40 = vrot.slane %v1493_v44, 2 }
 0x6fe   :  { %v1455_v25 = vpop.f32.mrf.mxu0  ;;  %v1495_v49 = vpop.f32.mrf.mxu1  ;;  %v1518_v46 = vrot.slane %v1493_v44, 3 }
 0x6ff   :  { %v1503_v19 = vadd.f32 %v1499_v47, %v5073_v15  ;;  %v1504_v50 = vadd.f32 %v1500_v48, %v5076_v22  ;;  %v1508_v5 = vrot.slane %v1454_v38, 2  ;;  %v1509_v39 = vrot.slane %v1454_v38, 3 }
 0x700   :  { %v1456_v0 = vpop.f32.mrf.mxu0  ;;  %v3976_v43 = vpop.f32.mrf.mxu1  ;;  %v1534_v38 = vrot.slane %v5425_v18, 7 }
 0x701   :  { %4446 = vtanh.f32 %v1503_v19  ;;  %v1512_v1 = vadd.f32 %v1508_v5, %v5085_v21  ;;  %v1513_v45 = vadd.f32 %v1509_v39, %v5088_v60 }
 0x702   :  { %4448 = vtanh.f32 %v1504_v50  ;;  %v1533_v50 = vrot.slane %v5423_v41, 7 }
 0x703   :  { %4450 = vtanh.f32 %v1512_v1 }
 0x704   :  { %4452 = vtanh.f32 %v1513_v45 }
 0x70e   :  { %v4447_v42 = vpop.eup %4446 }
 0x70f   :  { %v4449_v47 = vpop.eup %4448  ;;  %v1521_v25 = vmul.f32 %v4447_v42, %v1517_v40 }
 0x710   :  { %v1522_v48 = vmul.f32 %v4449_v47, %v1518_v46  ;;  %v4451_v19 = vpop.eup %4450 }
 0x711   :  { %v1523_v49 = vadd.f32 %v1521_v25, %v5093_v56  ;;  %v4453_v4 = vpop.eup %4452  ;;  %v1527_v0 = vsub.f32 1.0, %v4451_v19  ;;  %v1537_v1 = vmul.f32 %v4451_v19, %v1533_v50 }
 0x712   :  { %v1524_v17 = vadd.f32 %v1522_v48, %v5096_v61  ;;  %v1528_v5 = vsub.f32 1.0, %v4453_v4  ;;  %v1538_v45 = vmul.f32 %v4453_v4, %v1534_v38 }
 0x713   :  { %4454 = vtanh.f32 %v1523_v49 }
 0x714   :  { %4456 = vtanh.f32 %v1524_v17 }
 0x720   :  { %v4455_v43 = vpop.eup %4454 }
 0x721   :  { %v4457_v39 = vpop.eup %4456  ;;  %v1529_v44 = vmul.f32 %v4455_v43, %v1527_v0 }
 0x722   :  { %v1530_v40 = vmul.f32 %v4457_v39, %v1528_v5 }
 0x723   :  { %v5478_v42 = vadd.f32 %v1537_v1, %v1529_v44 }
 0x724   :  { %v5480_v46 = vadd.f32 %v1538_v45, %v1530_v40 }
 0x725   :  { %v1541_v47 = vpack.c.bf16 %v5478_v42, %v5478_v42 }
 0x726   :  { %v1542_v41 = vpack.c.bf16 %v5480_v46, %v5480_v46 }
 0x727   :  { %v1545_v25 = vunpack.c.l.b16 %v1541_v47 }
 0x728   :  { %v1546_v48 = vunpack.c.l.b16 %v1542_v41 }
 0x729   :  { %v1547_v49 = vrot.slane %v1545_v25, 6 }
 0x72a   :  { %v1548_v18 = vrot.slane %v1546_v48, 5 }
 0x72c   :  { %v1549_v17 = vsel %vm742_vm1, %v1548_v18, %v1547_v49 }
 0x72d   :  { %v1550_v0 = vpack.c.b16 %v1549_v17, %v1549_v17 }
 0x72f   :  { %1585 = vmatmul.mubr.bf16.vlgmr.msra.gmra.mxu0 %v1550_v0  ;;  %3994 = vmatmul.mubr.bf16.vlgmr.msra.gmra.mxu1 %v1550_v0 }
 0x730   :  { %1688 = vmatpush1.bf16.msra.mxu0 %v5274_v23  ;;  %3998 = vmatpush3.bf16.msra.mxu1 %v5277_v63 }
 0x731   :  { %1689 = vmatprep.subr.bf16.mxu0 %v5280_v2  ;;  %3999 = vmatprep.subr.bf16.mxu1 %v6304_v34 }
 0x732   :  { %1719 = vmatprep.mubr.bf16.mxu0 %v6305_v57  ;;  %4013 = vmatprep.mubr.msk.bf16.mxu1 %vm4827_vm0, %v6304_v34 }
 0x734   :  { %1690 = vmatpush1.bf16.msra.mxu0 %v5287_v9  ;;  %4000 = vmatpush3.bf16.msra.mxu1 %v5353_v51 }
 0x735   :  { %1691 = vmatprep.subr.bf16.mxu0 %v5291_v12  ;;  %4001 = vmatprep.subr.bf16.mxu1 %v6304_v34 }
 0x738   :  { %1692 = vmatpush1.bf16.msra.mxu0 %v5295_v8  ;;  %4002 = vmatpush3.bf16.msra.mxu1 %v5359_v52 }
 0x739   :  { %1693 = vmatprep.subr.bf16.mxu0 %v5299_v20  ;;  %4003 = vmatprep.subr.bf16.mxu1 %v6304_v34 }
 0x73c   :  { %1694 = vmatpush1.bf16.msra.mxu0 %v5364_v53  ;;  %4004 = vmatpush3.bf16.msra.mxu1 %v5367_v27 }
 0x73d   :  { %1695 = vmatprep.subr.bf16.mxu0 %v5370_v28  ;;  %4005 = vmatprep.subr.bf16.mxu1 %v6304_v34 }
 0x740   :  { %1696 = vmatpush1.bf16.msra.mxu0 %v5374_v29  ;;  %4006 = vmatpush3.bf16.msra.mxu1 %v5377_v31 }
 0x741   :  { %1697 = vmatprep.subr.bf16.mxu0 %v5380_v32  ;;  %4007 = vmatprep.subr.bf16.mxu1 %v6304_v34 }
 0x744   :  { %1698 = vmatpush1.bf16.msra.mxu0 %v5384_v33  ;;  %4008 = vmatpush3.bf16.msra.mxu1 %v5387_v35 }
 0x745   :  { %1699 = vmatprep.subr.bf16.mxu0 %v5390_v13  ;;  %4009 = vmatprep.subr.bf16.mxu1 %v6304_v34 }
 0x748   :  { %1700 = vmatpush1.bf16.msra.mxu0 %v5394_v6  ;;  %4010 = vmatpush3.bf16.msra.mxu1 %v5397_v14 }
 0x749   :  { %1701 = vmatprep.subr.bf16.mxu0 %v5400_v26  ;;  %4011 = vmatprep.subr.bf16.mxu1 %v6304_v34 }
 0x74c   :  { %1702 = vmatpush1.bf16.msra.mxu0 %v5404_v62  ;;  %4012 = vmatpush3.bf16.msra.mxu1 %v5407_v24 }
 0x74d   :  { %1818 = vmatprep.subr.bf16.mxu0 %v5321_v37  ;;  %4017 = vmatprep.subr.bf16.mxu1 %v6304_v34 }
 0x7ef   :  { %v1586_v19 = vpop.f32.mrf.mxu0  ;;  %v1627_v4 = vpop.f32.mrf.mxu1 }
 0x7f0   :  { %v1587_v50 = vadd.f32 %v1586_v19, %v5071_v11  ;;  %v1628_v18 = vadd.f32 %v1627_v4, %v5082_v59 }
 0x7f1   :  { %v1588_v43 = vpop.f32.mrf.mxu0  ;;  %v3995_v38 = vpop.f32.mrf.mxu1 }
 0x7f2   :  { %v1634_v5 = vrot.slane %v1587_v50, 1  ;;  %v1635_v39 = vrot.slane %v1587_v50, 2  ;;  %v1589_v25 = vadd.f32 %v1588_v43, %v5079_v55  ;;  %v1652_v19 = vrot.slane %v1628_v18, 1 }
 0x7f3   :  { %v1590_v44 = vpop.f32.mrf.mxu0  ;;  %v1630_v1 = vpop.f32.mrf.mxu1  ;;  %v1653_v38 = vrot.slane %v1628_v18, 2 }
 0x7f4   :  { %v1638_v40 = vadd.f32 %v1634_v5, %v5073_v15  ;;  %v1639_v45 = vadd.f32 %v1635_v39, %v5076_v22  ;;  %v1643_v48 = vrot.slane %v1589_v25, 1  ;;  %v1644_v49 = vrot.slane %v1589_v25, 2 }
 0x7f5   :  { %v1591_v47 = vpop.f32.mrf.mxu0  ;;  %v3996_v41 = vpop.f32.mrf.mxu1 }
 0x7f6   :  { %4458 = vtanh.f32 %v1638_v40  ;;  %v1647_v17 = vadd.f32 %v1643_v48, %v5085_v21  ;;  %v1648_v0 = vadd.f32 %v1644_v49, %v5088_v60  ;;  %v1668_v21 = vrot.slane %v5478_v42, 7 }
 0x7f7   :  { %4460 = vtanh.f32 %v1639_v45  ;;  %v1669_v40 = vrot.slane %v5480_v46, 7 }
 0x7f8   :  { %4462 = vtanh.f32 %v1647_v17 }
 0x7f9   :  { %4464 = vtanh.f32 %v1648_v0 }
 0x803   :  { %v4459_v50 = vpop.eup %4458 }
 0x804   :  { %v4461_v15 = vpop.eup %4460  ;;  %v1656_v5 = vmul.f32 %v4459_v50, %v1652_v19 }
 0x805   :  { %v1657_v22 = vmul.f32 %v4461_v15, %v1653_v38  ;;  %v4463_v44 = vpop.eup %4462 }
 0x806   :  { %v1658_v39 = vadd.f32 %v1656_v5, %v5093_v56  ;;  %v4465_v4 = vpop.eup %4464  ;;  %v1662_v1 = vsub.f32 1.0, %v4463_v44  ;;  %v1672_v25 = vmul.f32 %v4463_v44, %v1668_v21 }
 0x807   :  { %v1659_v43 = vadd.f32 %v1657_v22, %v5096_v61  ;;  %v1663_v45 = vsub.f32 1.0, %v4465_v4  ;;  %v1673_v49 = vmul.f32 %v4465_v4, %v1669_v40 }
 0x808   :  { %4466 = vtanh.f32 %v1658_v39 }
 0x809   :  { %4468 = vtanh.f32 %v1659_v43 }
 0x815   :  { %v4467_v60 = vpop.eup %4466 }
 0x816   :  { %v4469_v47 = vpop.eup %4468  ;;  %v1664_v41 = vmul.f32 %v4467_v60, %v1662_v1 }
 0x817   :  { %v1665_v48 = vmul.f32 %v4469_v47, %v1663_v45 }
 0x818   :  { %v5533_v18 = vadd.f32 %v1672_v25, %v1664_v41 }
 0x819   :  { %v5535_v56 = vadd.f32 %v1673_v49, %v1665_v48 }
 0x81a   :  { %v1676_v61 = vpack.c.bf16 %v5533_v18, %v5533_v18 }
 0x81b   :  { %v1677_v42 = vpack.c.bf16 %v5535_v56, %v5535_v56 }
 0x81c   :  { %v1680_v17 = vunpack.c.l.b16 %v1676_v61 }
 0x81d   :  { %v1681_v0 = vunpack.c.l.b16 %v1677_v42 }
 0x81e   :  { %v1682_v19 = vrot.slane %v1680_v17, 7 }
 0x81f   :  { %v1683_v46 = vrot.slane %v1681_v0, 6 }
 0x821   :  { %v1684_v50 = vsel %vm742_vm1, %v1683_v46, %v1682_v19 }
 0x822   :  { %v1685_v38 = vpack.c.b16 %v1684_v50, %v1684_v50 }
 0x824   :  { %1720 = vmatmul.mubr.bf16.vlgmr.msra.gmra.mxu0 %v1685_v38  ;;  %4014 = vmatmul.mubr.bf16.vlgmr.msra.gmra.mxu1 %v1685_v38 }
 0x825   :  { %1819 = vmatpush1.bf16.msra.mxu0 %v5274_v23  ;;  %4018 = vmatpush3.bf16.msra.mxu1 %v5277_v63 }
 0x826   :  { %1820 = vmatprep.subr.bf16.mxu0 %v5280_v2  ;;  %4019 = vmatprep.subr.bf16.mxu1 %v6304_v34 }
 0x827   :  { %1850 = vmatprep.mubr.bf16.mxu0 %v6305_v57  ;;  %4033 = vmatprep.mubr.msk.bf16.mxu1 %vm4827_vm0, %v6304_v34 }
 0x829   :  { %1821 = vmatpush1.bf16.msra.mxu0 %v5287_v9  ;;  %4020 = vmatpush3.bf16.msra.mxu1 %v5353_v51 }
 0x82a   :  { %1822 = vmatprep.subr.bf16.mxu0 %v5291_v12  ;;  %4021 = vmatprep.subr.bf16.mxu1 %v6304_v34 }
 0x82d   :  { %1823 = vmatpush1.bf16.msra.mxu0 %v5295_v8  ;;  %4022 = vmatpush3.bf16.msra.mxu1 %v5359_v52 }
 0x82e   :  { %1824 = vmatprep.subr.bf16.mxu0 %v5299_v20  ;;  %4023 = vmatprep.subr.bf16.mxu1 %v6304_v34 }
 0x831   :  { %1825 = vmatpush1.bf16.msra.mxu0 %v5364_v53  ;;  %4024 = vmatpush3.bf16.msra.mxu1 %v5367_v27 }
 0x832   :  { %1826 = vmatprep.subr.bf16.mxu0 %v5370_v28  ;;  %4025 = vmatprep.subr.bf16.mxu1 %v6304_v34 }
 0x835   :  { %1827 = vmatpush1.bf16.msra.mxu0 %v5374_v29  ;;  %4026 = vmatpush3.bf16.msra.mxu1 %v5377_v31 }
 0x836   :  { %1828 = vmatprep.subr.bf16.mxu0 %v5380_v32  ;;  %4027 = vmatprep.subr.bf16.mxu1 %v6304_v34 }
 0x839   :  { %1829 = vmatpush1.bf16.msra.mxu0 %v5384_v33  ;;  %4028 = vmatpush3.bf16.msra.mxu1 %v5387_v35 }
 0x83a   :  { %1830 = vmatprep.subr.bf16.mxu0 %v5390_v13  ;;  %4029 = vmatprep.subr.bf16.mxu1 %v6304_v34 }
 0x83d   :  { %1831 = vmatpush1.bf16.msra.mxu0 %v5394_v6  ;;  %4030 = vmatpush3.bf16.msra.mxu1 %v5397_v14 }
 0x83e   :  { %1832 = vmatprep.subr.bf16.mxu0 %v5400_v26  ;;  %4031 = vmatprep.subr.bf16.mxu1 %v6304_v34 }
 0x841   :  { %1833 = vmatpush1.bf16.msra.mxu0 %v5404_v62  ;;  %4032 = vmatpush3.bf16.msra.mxu1 %v5407_v24 }
 0x842   :  { %1949 = vmatprep.subr.bf16.mxu0 %v5321_v37  ;;  %4037 = vmatprep.subr.bf16.mxu1 %v6304_v34 }
 0x8e4   :  { %v1721_v15 = vpop.f32.mrf.mxu0  ;;  %v1762_v5 = vpop.f32.mrf.mxu1 }
 0x8e5   :  { %v1722_v22 = vadd.f32 %v1721_v15, %v5071_v11  ;;  %v1763_v25 = vadd.f32 %v1762_v5, %v5082_v59  ;;  %v1800_v5 = vrot.slane %v5533_v18, 7 }
 0x8e6   :  { %v1723_v39 = vpop.f32.mrf.mxu0  ;;  %v4015_v43 = vpop.f32.mrf.mxu1 }
 0x8e7   :  { %v1769_v44 = vrot.slane %v1722_v22, 1  ;;  %v1772_v4 = vadd.f32 %v1722_v22, %v5040_v3  ;;  %v1724_v47 = vadd.f32 %v1723_v39, %v5079_v55  ;;  %v1785_v42 = vrot.slane %v1763_v25, 1 }
 0x8e8   :  { %v1725_v21 = vpop.f32.mrf.mxu0  ;;  %v1765_v1 = vpop.f32.mrf.mxu1  ;;  %v1801_v43 = vrot.slane %v5535_v56, 7 }
 0x8e9   :  { %v1773_v60 = vadd.f32 %v1769_v44, %v5060_v36  ;;  %4470 = vtanh.f32 %v1772_v4  ;;  %v1777_v41 = vrot.slane %v1724_v47, 1  ;;  %v1780_v48 = vadd.f32 %v1724_v47, %v5045_v7 }
 0x8ea   :  { %v1726_v40 = vpop.f32.mrf.mxu0  ;;  %v4016_v45 = vpop.f32.mrf.mxu1 }
 0x8eb   :  { %4472 = vtanh.f32 %v1773_v60  ;;  %v1781_v49 = vadd.f32 %v1777_v41, %v5062_v54 }
 0x8ec   :  { %4474 = vtanh.f32 %v1780_v48 }
 0x8ed   :  { %4476 = vtanh.f32 %v1781_v49 }
 0x8f6   :  { %v4471_v61 = vpop.eup %4470 }
 0x8f7   :  { %v1788_v17 = vmul.f32 %v4471_v61, %v1763_v25 }
 0x8f8   :  { %v4473_v0 = vpop.eup %4472 }
 0x8f9   :  { %v1789_v19 = vmul.f32 %v4473_v0, %v1785_v42  ;;  %v1790_v46 = vadd.f32 %v1788_v17, %v5052_v16  ;;  %v4475_v38 = vpop.eup %4474 }
 0x8fa   :  { %v4477_v15 = vpop.eup %4476  ;;  %v1794_v22 = vsub.f32 1.0, %v4475_v38  ;;  %v1804_v21 = vmul.f32 %v4475_v38, %v1800_v5 }
 0x8fb   :  { %v1791_v50 = vadd.f32 %v1789_v19, %v5058_v30  ;;  %4478 = vtanh.f32 %v1790_v46  ;;  %v1795_v44 = vsub.f32 1.0, %v4477_v15  ;;  %v1805_v40 = vmul.f32 %v4477_v15, %v1801_v43 }
 0x8fd   :  { %4480 = vtanh.f32 %v1791_v50 }
 0x908   :  { %v4479_v39 = vpop.eup %4478 }
 0x909   :  { %v1796_v4 = vmul.f32 %v4479_v39, %v1794_v22 }
 0x90a   :  { %v4481_v1 = vpop.eup %4480 }
 0x90b   :  { %v1797_v60 = vmul.f32 %v4481_v1, %v1795_v44  ;;  %v5588_v45 = vadd.f32 %v1804_v21, %v1796_v4 }
 0x90d   :  { %v5590_v47 = vadd.f32 %v1805_v40, %v1797_v60  ;;  %v1808_v41 = vpack.c.bf16 %v5588_v45, %v5588_v45 }
 0x90f   :  { %v1809_v18 = vpack.c.bf16 %v5590_v47, %v5590_v47  ;;  %v1812_v48 = vunpack.c.l.b16 %v1808_v41  ;;  %v1932_v41 = vrot.slane %v5590_v47, 7 }
 0x911   :  { %v1813_v25 = vunpack.c.l.b16 %v1809_v18 }
 0x913   :  { %v1814_v49 = vrot.slane %v1813_v25, 7 }
 0x915   :  { %v1815_v56 = vsel %vm742_vm1, %v1814_v49, %v1812_v48  ;;  %v1931_v48 = vrot.slane %v5588_v45, 7 }
 0x916   :  { %v1816_v61 = vpack.c.b16 %v1815_v56, %v1815_v56 }
 0x918   :  { %1851 = vmatmul.mubr.bf16.vlgmr.msra.gmra.mxu0 %v1816_v61  ;;  %4034 = vmatmul.mubr.bf16.vlgmr.msra.gmra.mxu1 %v1816_v61 }
 0x919   :  { %1950 = vmatpush1.bf16.msra.mxu0 %v5274_v23  ;;  %4038 = vmatpush3.bf16.msra.mxu1 %v5277_v63 }
 0x91a   :  { %1951 = vmatprep.subr.bf16.mxu0 %v5280_v2  ;;  %4039 = vmatprep.subr.bf16.mxu1 %v6304_v34 }
 0x91b   :  { %1981 = vmatprep.mubr.bf16.mxu0 %v6305_v57  ;;  %4053 = vmatprep.mubr.msk.bf16.mxu1 %vm4827_vm0, %v6304_v34 }
 0x91d   :  { %1952 = vmatpush1.bf16.msra.mxu0 %v5287_v9  ;;  %4040 = vmatpush3.bf16.msra.mxu1 %v5353_v51 }
 0x91e   :  { %1953 = vmatprep.subr.bf16.mxu0 %v5291_v12  ;;  %4041 = vmatprep.subr.bf16.mxu1 %v6304_v34 }
 0x921   :  { %1954 = vmatpush1.bf16.msra.mxu0 %v5295_v8  ;;  %4042 = vmatpush3.bf16.msra.mxu1 %v5359_v52 }
 0x922   :  { %1955 = vmatprep.subr.bf16.mxu0 %v5299_v20  ;;  %4043 = vmatprep.subr.bf16.mxu1 %v6304_v34 }
 0x925   :  { %1956 = vmatpush1.bf16.msra.mxu0 %v5364_v53  ;;  %4044 = vmatpush3.bf16.msra.mxu1 %v5367_v27 }
 0x926   :  { %1957 = vmatprep.subr.bf16.mxu0 %v5370_v28  ;;  %4045 = vmatprep.subr.bf16.mxu1 %v6304_v34 }
 0x929   :  { %1958 = vmatpush1.bf16.msra.mxu0 %v5374_v29  ;;  %4046 = vmatpush3.bf16.msra.mxu1 %v5377_v31 }
 0x92a   :  { %1959 = vmatprep.subr.bf16.mxu0 %v5380_v32  ;;  %4047 = vmatprep.subr.bf16.mxu1 %v6304_v34 }
 0x92d   :  { %1960 = vmatpush1.bf16.msra.mxu0 %v5384_v33  ;;  %4048 = vmatpush3.bf16.msra.mxu1 %v5387_v35 }
 0x92e   :  { %1961 = vmatprep.subr.bf16.mxu0 %v5390_v13  ;;  %4049 = vmatprep.subr.bf16.mxu1 %v6304_v34 }
 0x931   :  { %1962 = vmatpush1.bf16.msra.mxu0 %v5394_v6  ;;  %4050 = vmatpush3.bf16.msra.mxu1 %v5397_v14 }
 0x932   :  { %1963 = vmatprep.subr.bf16.mxu0 %v5400_v26  ;;  %4051 = vmatprep.subr.bf16.mxu1 %v6304_v34 }
 0x935   :  { %1964 = vmatpush1.bf16.msra.mxu0 %v5404_v62  ;;  %4052 = vmatpush3.bf16.msra.mxu1 %v5407_v24 }
 0x936   :  { %2084 = vmatprep.subr.bf16.mxu0 %v5321_v37  ;;  %4057 = vmatprep.subr.bf16.mxu1 %v6304_v34 }
 0x9d8   :  { %v1852_v23 = vpop.f32.mrf.mxu0  ;;  %v1893_v63 = vpop.f32.mrf.mxu1 }
 0x9d9   :  { %v1853_v2 = vadd.f32 %v1852_v23, %v5071_v11  ;;  %v1894_v38 = vadd.f32 %v1893_v63, %v5082_v59 }
 0x9da   :  { %v1854_v9 = vpop.f32.mrf.mxu0  ;;  %v4035_v12 = vpop.f32.mrf.mxu1 }
 0x9db   :  { %v1900_v8 = vrot.slane %v1853_v2, 7  ;;  %v1904_v20 = vadd.f32 %v1853_v2, %v5060_v36  ;;  %v1855_v37 = vadd.f32 %v1854_v9, %v5079_v55  ;;  %v1916_v39 = vrot.slane %v1894_v38, 7 }
 0x9dc   :  { %v1856_v42 = vpop.f32.mrf.mxu0  ;;  %v1896_v17 = vpop.f32.mrf.mxu1 }
 0x9dd   :  { %v1903_v0 = vadd.f32 %v1900_v8, %v5040_v3  ;;  %4482 = vtanh.f32 %v1904_v20  ;;  %v1908_v50 = vrot.slane %v1855_v37, 7  ;;  %v1912_v15 = vadd.f32 %v1855_v37, %v5062_v54  ;;  %v5658_v37 = vld [vmem:[#allocation7 + $0x94] ss:$12 sps:$4 sm:$0xff]  }
 0x9de   :  { %v1857_v19 = vpop.f32.mrf.mxu0  ;;  %v4036_v46 = vpop.f32.mrf.mxu1 }
 0x9df   :  { %4484 = vtanh.f32 %v1903_v0  ;;  %v1911_v5 = vadd.f32 %v1908_v50, %v5045_v7  ;;  %v5652_v19 = vld [vmem:[#allocation7 + $0xa8] ss:$12 sps:$4 sm:$0xff]   ;;  %v5655_v46 = vld [vmem:[#allocation7 + $0xb0] ss:$12 sps:$4 sm:$0xff]  }
 0x9e0   :  { %4486 = vtanh.f32 %v1912_v15  ;;  %v5665_v50 = vld [vmem:[#allocation7 + $0x90] ss:$12 sps:$4 sm:$0xff]   ;;  %v5673_v15 = vld [vmem:[#allocation7 + $0x78] ss:$12 sps:$4 sm:$0xff]  }
 0x9e1   :  { %4488 = vtanh.f32 %v1911_v5  ;;  %v5677_v5 = vld [vmem:[#allocation7 + $0x64] ss:$12 sps:$4 sm:$0xff]  }
 0x9ea   :  { %v4483_v22 = vpop.eup %4482 }
 0x9eb   :  { %v1920_v43 = vmul.f32 %v4483_v22, %v1894_v38  ;;  %v5669_v38 = vld [vmem:[#allocation7 + $0x7c] ss:$12 sps:$4 sm:$0xff]  }
 0x9ec   :  { %v4485_v44 = vpop.eup %4484 }
 0x9ed   :  { %v1919_v4 = vmul.f32 %v4485_v44, %v1916_v39  ;;  %v1922_v21 = vadd.f32 %v1920_v43, %v5058_v30  ;;  %v4487_v60 = vpop.eup %4486 }
 0x9ee   :  { %v4489_v40 = vpop.eup %4488  ;;  %v1926_v18 = vsub.f32 1.0, %v4487_v60  ;;  %v1936_v61 = vmul.f32 %v4487_v60, %v1932_v41 }
 0x9ef   :  { %v1921_v1 = vadd.f32 %v1919_v4, %v5052_v16  ;;  %4490 = vtanh.f32 %v1922_v21  ;;  %v1925_v49 = vsub.f32 1.0, %v4489_v40  ;;  %v1935_v2 = vmul.f32 %v4489_v40, %v1931_v48 }
 0x9f1   :  { %4492 = vtanh.f32 %v1921_v1 }
 0x9fc   :  { %v4491_v25 = vpop.eup %4490 }
 0x9fd   :  { %v1928_v56 = vmul.f32 %v4491_v25, %v1926_v18 }
 0x9fe   :  { %v4493_v23 = vpop.eup %4492 }
 0x9ff   :  { %v1927_v63 = vmul.f32 %v4493_v23, %v1925_v49  ;;  %v5643_v9 = vadd.f32 %v1936_v61, %v1928_v56 }
 0xa01   :  { %v5645_v12 = vadd.f32 %v1935_v2, %v1927_v63  ;;  %v1940_v47 = vpack.c.bf16 %v5643_v9, %v5643_v9  ;;  %v2066_v63 = vrot.slane %v5643_v9, 7 }
 0xa03   :  { %v1939_v8 = vpack.c.bf16 %v5645_v12, %v5645_v12  ;;  %v1944_v42 = vunpack.c.l.b16 %v1940_v47  ;;  %v2065_v56 = vrot.slane %v5645_v12, 7 }
 0xa05   :  { %v1943_v20 = vunpack.c.l.b16 %v1939_v8 }
 0xa07   :  { %v1945_v17 = vrot.slane %v1943_v20, 1 }
 0xa09   :  { %v1946_v45 = vsel %vm742_vm1, %v1944_v42, %v1945_v17 }
 0xa0a   :  { %v1947_v0 = vpack.c.b16 %v1946_v45, %v1946_v45 }
 0xa0c   :  { %1982 = vmatmul.mubr.bf16.vlgmr.msra.gmra.mxu0 %v1947_v0  ;;  %4054 = vmatmul.mubr.bf16.vlgmr.msra.gmra.mxu1 %v1947_v0 }
 0xa0d   :  { %2085 = vmatpush1.bf16.msra.mxu0 %v5652_v19  ;;  %4058 = vmatpush3.bf16.msra.mxu1 %v5655_v46 }
 0xa0e   :  { %2086 = vmatprep.subr.bf16.mxu0 %v5658_v37  ;;  %4059 = vmatprep.subr.bf16.mxu1 %v6304_v34 }
 0xa0f   :  { %2116 = vmatprep.mubr.bf16.mxu0 %v6305_v57  ;;  %4073 = vmatprep.mubr.msk.bf16.mxu1 %vm4827_vm0, %v6304_v34 }
 0xa11   :  { %2087 = vmatpush1.bf16.msra.mxu0 %v5665_v50  ;;  %4060 = vmatpush3.bf16.msra.mxu1 %v5353_v51  ;;  %v5699_v51 = vld [vmem:[#allocation7 + $0xac] ss:$12 sps:$4 sm:$0xff]  }
 0xa12   :  { %2088 = vmatprep.subr.bf16.mxu0 %v5669_v38  ;;  %4061 = vmatprep.subr.bf16.mxu1 %v6304_v34 }
 0xa15   :  { %2089 = vmatpush1.bf16.msra.mxu0 %v5673_v15  ;;  %4062 = vmatpush3.bf16.msra.mxu1 %v5359_v52 }
 0xa16   :  { %2090 = vmatprep.subr.bf16.mxu0 %v5677_v5  ;;  %4063 = vmatprep.subr.bf16.mxu1 %v6304_v34 }
 0xa19   :  { %2091 = vmatpush1.bf16.msra.mxu0 %v5364_v53  ;;  %4064 = vmatpush3.bf16.msra.mxu1 %v5367_v27 }
 0xa1a   :  { %2092 = vmatprep.subr.bf16.mxu0 %v5370_v28  ;;  %4065 = vmatprep.subr.bf16.mxu1 %v6304_v34 }
 0xa1d   :  { %2093 = vmatpush1.bf16.msra.mxu0 %v5374_v29  ;;  %4066 = vmatpush3.bf16.msra.mxu1 %v5377_v31 }
 0xa1e   :  { %2094 = vmatprep.subr.bf16.mxu0 %v5380_v32  ;;  %4067 = vmatprep.subr.bf16.mxu1 %v6304_v34 }
 0xa21   :  { %2095 = vmatpush1.bf16.msra.mxu0 %v5384_v33  ;;  %4068 = vmatpush3.bf16.msra.mxu1 %v5387_v35 }
 0xa22   :  { %2096 = vmatprep.subr.bf16.mxu0 %v5390_v13  ;;  %4069 = vmatprep.subr.bf16.mxu1 %v6304_v34 }
 0xa25   :  { %2097 = vmatpush1.bf16.msra.mxu0 %v5394_v6  ;;  %4070 = vmatpush3.bf16.msra.mxu1 %v5397_v14 }
 0xa26   :  { %2098 = vmatprep.subr.bf16.mxu0 %v5400_v26  ;;  %4071 = vmatprep.subr.bf16.mxu1 %v6304_v34 }
 0xa29   :  { %2099 = vmatpush1.bf16.msra.mxu0 %v5404_v62  ;;  %4072 = vmatpush3.bf16.msra.mxu1 %v5407_v24 }
 0xa2a   :  { %2219 = vmatprep.subr.bf16.mxu0 %v5699_v51  ;;  %4077 = vmatprep.subr.bf16.mxu1 %v6304_v34 }
 0xacc   :  { %v1983_v52 = vpop.f32.mrf.mxu0  ;;  %v2024_v53 = vpop.f32.mrf.mxu1 }
 0xacd   :  { %v1984_v27 = vadd.f32 %v1983_v52, %v5071_v11  ;;  %v2025_v39 = vadd.f32 %v2024_v53, %v5082_v59 }
 0xace   :  { %v1985_v28 = vpop.f32.mrf.mxu0  ;;  %v4055_v29 = vpop.f32.mrf.mxu1 }
 0xacf   :  { %v2031_v31 = vrot.slane %v1984_v27, 6  ;;  %v2032_v32 = vrot.slane %v1984_v27, 7  ;;  %v1986_v62 = vadd.f32 %v1985_v28, %v5079_v55  ;;  %v2049_v4 = vrot.slane %v2025_v39, 6 }
 0xad0   :  { %v1987_v33 = vpop.f32.mrf.mxu0  ;;  %v2027_v35 = vpop.f32.mrf.mxu1  ;;  %v2050_v1 = vrot.slane %v2025_v39, 7  ;;  %v5768_v39 = vld [vmem:[#allocation7 + $0x1c] ss:$12 sps:$4 sm:$0xff]  }
 0xad1   :  { %v2035_v13 = vadd.f32 %v2031_v31, %v5040_v3  ;;  %v2036_v6 = vadd.f32 %v2032_v32, %v5060_v36  ;;  %v2040_v24 = vrot.slane %v1986_v62, 6  ;;  %v2041_v22 = vrot.slane %v1986_v62, 7  ;;  %v5731_v32 = vld [vmem:[#allocation7 + $0x98] ss:$12 sps:$4 sm:$0xff]   ;;  %v5737_v33 = vld [vmem:[#allocation7 + $0x80] ss:$12 sps:$4 sm:$0xff]  }
 0xad2   :  { %v1988_v14 = vpop.f32.mrf.mxu0  ;;  %v4056_v26 = vpop.f32.mrf.mxu1  ;;  %v5742_v35 = vld [vmem:[#allocation7 + $0x60] ss:$12 sps:$4 sm:$0xff]  }
 0xad3   :  { %4494 = vtanh.f32 %v2035_v13  ;;  %v2044_v43 = vadd.f32 %v2040_v24, %v5045_v7  ;;  %v2045_v44 = vadd.f32 %v2041_v22, %v5062_v54  ;;  %v5745_v13 = vld [vmem:[#allocation7 + $0x68] ss:$12 sps:$4 sm:$0xff]   ;;  %v5755_v26 = vld [vmem:[#allocation7 + $0x50] ss:$12 sps:$4 sm:$0xff]   ;;  %v5765_v22 = vld [vmem:[#allocation7 + $0x38] ss:$12 sps:$4 sm:$0xff]  }
 0xad4   :  { %4496 = vtanh.f32 %v2036_v6  ;;  %v5748_v6 = vld [vmem:[#allocation7 + $0x4c] ss:$12 sps:$4 sm:$0xff]   ;;  %v5752_v14 = vld [vmem:[#allocation7 + $0x48] ss:$12 sps:$4 sm:$0xff]   ;;  %v5762_v24 = vld [vmem:[#allocation7 + $0x30] ss:$12 sps:$4 sm:$0xff]  }
 0xad5   :  { %4498 = vtanh.f32 %v2044_v43  ;;  %v5758_v62 = vld [vmem:[#allocation7 + $0x34] ss:$12 sps:$4 sm:$0xff]   ;;  %v5772_v43 = vld [vmem:[#allocation7 + $0x18] ss:$12 sps:$4 sm:$0xff]  }
 0xad6   :  { %4500 = vtanh.f32 %v2045_v44  ;;  %v5775_v44 = vld [vmem:[#allocation7 + $0x20] ss:$12 sps:$4 sm:$0xff]  }
 0xae0   :  { %v4495_v21 = vpop.eup %4494 }
 0xae1   :  { %v4497_v60 = vpop.eup %4496  ;;  %v2053_v40 = vmul.f32 %v4495_v21, %v2049_v4  ;;  %v5778_v4 = vld [vmem:[#allocation7 + $0x4] ss:$12 sps:$4 sm:$0xff]   ;;  %v5782_v21 = vld [vmem:[#allocation7] ss:$12 sps:$4 sm:$0xff]  }
 0xae2   :  { %v2054_v41 = vmul.f32 %v4497_v60, %v2050_v1  ;;  %v4499_v48 = vpop.eup %4498  ;;  %v5785_v1 = vld [vmem:[#allocation7 + $0x8] ss:$12 sps:$4 sm:$0xff]  }
 0xae3   :  { %v2055_v18 = vadd.f32 %v2053_v40, %v5052_v16  ;;  %v4501_v49 = vpop.eup %4500  ;;  %v2059_v61 = vsub.f32 1.0, %v4499_v48  ;;  %v2069_v20 = vmul.f32 %v4499_v48, %v2065_v56 }
 0xae4   :  { %v2056_v25 = vadd.f32 %v2054_v41, %v5058_v30  ;;  %v2060_v2 = vsub.f32 1.0, %v4501_v49  ;;  %v2070_v17 = vmul.f32 %v4501_v49, %v2066_v63 }
 0xae5   :  { %4502 = vtanh.f32 %v2055_v18 }
 0xae6   :  { %4504 = vtanh.f32 %v2056_v25 }
 0xaf2   :  { %v4503_v23 = vpop.eup %4502 }
 0xaf3   :  { %v4505_v8 = vpop.eup %4504  ;;  %v2061_v47 = vmul.f32 %v4503_v23, %v2059_v61 }
 0xaf4   :  { %v2062_v42 = vmul.f32 %v4505_v8, %v2060_v2 }
 0xaf5   :  { %v5714_v45 = vadd.f32 %v2069_v20, %v2061_v47 }
 0xaf6   :  { %v5716_v0 = vadd.f32 %v2070_v17, %v2062_v42 }
 0xaf7   :  { %v2073_v52 = vpack.c.bf16 %v5714_v45, %v5714_v45 }
 0xaf8   :  { %v2074_v12 = vpack.c.bf16 %v5716_v0, %v5716_v0 }
 0xaf9   :  { %v2077_v53 = vunpack.c.l.b16 %v2073_v52 }
 0xafa   :  { %v2078_v27 = vunpack.c.l.b16 %v2074_v12 }
 0xafb   :  { %v2079_v28 = vrot.slane %v2077_v53, 2 }
 0xafc   :  { %v2080_v9 = vrot.slane %v2078_v27, 1 }
 0xafe   :  { %v2081_v29 = vsel %vm742_vm1, %v2080_v9, %v2079_v28 }
 0xaff   :  { %v2082_v31 = vpack.c.b16 %v2081_v29, %v2081_v29 }
 0xb01   :  { %2117 = vmatmul.mubr.bf16.vlgmr.msra.gmra.mxu0 %v2082_v31  ;;  %4074 = vmatmul.mubr.bf16.vlgmr.msra.gmra.mxu1 %v2082_v31 }
 0xb02   :  { %2220 = vmatpush1.bf16.msra.mxu0 %v5652_v19  ;;  %4078 = vmatpush3.bf16.msra.mxu1 %v5655_v46 }
 0xb03   :  { %2221 = vmatprep.subr.bf16.mxu0 %v5658_v37  ;;  %4079 = vmatprep.subr.bf16.mxu1 %v6304_v34 }
 0xb04   :  { %2251 = vmatprep.mubr.bf16.mxu0 %v6305_v57  ;;  %4093 = vmatprep.mubr.msk.bf16.mxu1 %vm4827_vm0, %v6304_v34 }
 0xb06   :  { %2222 = vmatpush1.bf16.msra.mxu0 %v5665_v50  ;;  %4080 = vmatpush3.bf16.msra.mxu1 %v5731_v32 }
 0xb07   :  { %2223 = vmatprep.subr.bf16.mxu0 %v5669_v38  ;;  %4081 = vmatprep.subr.bf16.mxu1 %v6304_v34 }
 0xb0a   :  { %2224 = vmatpush1.bf16.msra.mxu0 %v5673_v15  ;;  %4082 = vmatpush3.bf16.msra.mxu1 %v5737_v33 }
 0xb0b   :  { %2225 = vmatprep.subr.bf16.mxu0 %v5677_v5  ;;  %4083 = vmatprep.subr.bf16.mxu1 %v6304_v34 }
 0xb0e   :  { %2226 = vmatpush1.bf16.msra.mxu0 %v5742_v35  ;;  %4084 = vmatpush3.bf16.msra.mxu1 %v5745_v13 }
 0xb0f   :  { %2227 = vmatprep.subr.bf16.mxu0 %v5748_v6  ;;  %4085 = vmatprep.subr.bf16.mxu1 %v6304_v34 }
 0xb12   :  { %2228 = vmatpush1.bf16.msra.mxu0 %v5752_v14  ;;  %4086 = vmatpush3.bf16.msra.mxu1 %v5755_v26 }
 0xb13   :  { %2229 = vmatprep.subr.bf16.mxu0 %v5758_v62  ;;  %4087 = vmatprep.subr.bf16.mxu1 %v6304_v34 }
 0xb16   :  { %2230 = vmatpush1.bf16.msra.mxu0 %v5762_v24  ;;  %4088 = vmatpush3.bf16.msra.mxu1 %v5765_v22 }
 0xb17   :  { %2231 = vmatprep.subr.bf16.mxu0 %v5768_v39  ;;  %4089 = vmatprep.subr.bf16.mxu1 %v6304_v34 }
 0xb1a   :  { %2232 = vmatpush1.bf16.msra.mxu0 %v5772_v43  ;;  %4090 = vmatpush3.bf16.msra.mxu1 %v5775_v44 }
 0xb1b   :  { %2233 = vmatprep.subr.bf16.mxu0 %v5778_v4  ;;  %4091 = vmatprep.subr.bf16.mxu1 %v6304_v34 }
 0xb1e   :  { %2234 = vmatpush1.bf16.msra.mxu0 %v5782_v21  ;;  %4092 = vmatpush3.bf16.msra.mxu1 %v5785_v1 }
 0xb1f   :  { %2354 = vmatprep.subr.bf16.mxu0 %v5699_v51  ;;  %4097 = vmatprep.subr.bf16.mxu1 %v6304_v34 }
 0xbc1   :  { %v2118_v60 = vpop.f32.mrf.mxu0  ;;  %v2159_v40 = vpop.f32.mrf.mxu1 }
 0xbc2   :  { %v2119_v41 = vadd.f32 %v2118_v60, %v5071_v11  ;;  %v2160_v17 = vadd.f32 %v2159_v40, %v5082_v59 }
 0xbc3   :  { %v2120_v18 = vpop.f32.mrf.mxu0  ;;  %v4075_v25 = vpop.f32.mrf.mxu1 }
 0xbc4   :  { %v2166_v48 = vrot.slane %v2119_v41, 5  ;;  %v2167_v49 = vrot.slane %v2119_v41, 6  ;;  %v2121_v47 = vadd.f32 %v2120_v18, %v5079_v55  ;;  %v2184_v53 = vrot.slane %v2160_v17, 5 }
 0xbc5   :  { %v2122_v56 = vpop.f32.mrf.mxu0  ;;  %v2162_v61 = vpop.f32.mrf.mxu1  ;;  %v2185_v28 = vrot.slane %v2160_v17, 6  ;;  %v2200_v25 = vrot.slane %v5714_v45, 7 }
 0xbc6   :  { %v2170_v23 = vadd.f32 %v2166_v48, %v5040_v3  ;;  %v2171_v63 = vadd.f32 %v2167_v49, %v5060_v36  ;;  %v2175_v20 = vrot.slane %v2121_v47, 5  ;;  %v2176_v42 = vrot.slane %v2121_v47, 6 }
 0xbc7   :  { %v2123_v2 = vpop.f32.mrf.mxu0  ;;  %v4076_v8 = vpop.f32.mrf.mxu1  ;;  %v2201_v56 = vrot.slane %v5716_v0, 7 }
 0xbc8   :  { %4506 = vtanh.f32 %v2170_v23  ;;  %v2179_v52 = vadd.f32 %v2175_v20, %v5045_v7  ;;  %v2180_v12 = vadd.f32 %v2176_v42, %v5062_v54 }
 0xbc9   :  { %4508 = vtanh.f32 %v2171_v63 }
 0xbca   :  { %4510 = vtanh.f32 %v2179_v52 }
 0xbcb   :  { %4512 = vtanh.f32 %v2180_v12 }
 0xbd5   :  { %v4507_v27 = vpop.eup %4506 }
 0xbd6   :  { %v4509_v9 = vpop.eup %4508  ;;  %v2188_v29 = vmul.f32 %v4507_v27, %v2184_v53 }
 0xbd7   :  { %v2189_v31 = vmul.f32 %v4509_v9, %v2185_v28  ;;  %v4511_v18 = vpop.eup %4510 }
 0xbd8   :  { %v2190_v60 = vadd.f32 %v2188_v29, %v5052_v16  ;;  %v4513_v40 = vpop.eup %4512  ;;  %v2194_v48 = vsub.f32 1.0, %v4511_v18  ;;  %v2204_v2 = vmul.f32 %v4511_v18, %v2200_v25 }
 0xbd9   :  { %v2191_v41 = vadd.f32 %v2189_v31, %v5058_v30  ;;  %v2195_v61 = vsub.f32 1.0, %v4513_v40  ;;  %v2205_v47 = vmul.f32 %v4513_v40, %v2201_v56 }
 0xbda   :  { %4514 = vtanh.f32 %v2190_v60 }
 0xbdb   :  { %4516 = vtanh.f32 %v2191_v41 }
 0xbe7   :  { %v4515_v49 = vpop.eup %4514 }
 0xbe8   :  { %v4517_v23 = vpop.eup %4516  ;;  %v2196_v63 = vmul.f32 %v4515_v49, %v2194_v48 }
 0xbe9   :  { %v2197_v8 = vmul.f32 %v4517_v23, %v2195_v61 }
 0xbea   :  { %v5801_v20 = vadd.f32 %v2204_v2, %v2196_v63 }
 0xbeb   :  { %v5803_v42 = vadd.f32 %v2205_v47, %v2197_v8 }
 0xbec   :  { %v2208_v17 = vpack.c.bf16 %v5801_v20, %v5801_v20 }
 0xbed   :  { %v2209_v45 = vpack.c.bf16 %v5803_v42, %v5803_v42 }
 0xbee   :  { %v2212_v52 = vunpack.c.l.b16 %v2208_v17 }
 0xbef   :  { %v2213_v12 = vunpack.c.l.b16 %v2209_v45 }
 0xbf0   :  { %v2214_v53 = vrot.slane %v2212_v52, 3 }
 0xbf1   :  { %v2215_v0 = vrot.slane %v2213_v12, 2 }
 0xbf3   :  { %v2216_v27 = vsel %vm742_vm1, %v2215_v0, %v2214_v53 }
 0xbf4   :  { %v2217_v28 = vpack.c.b16 %v2216_v27, %v2216_v27 }
 0xbf6   :  { %2252 = vmatmul.mubr.bf16.vlgmr.msra.gmra.mxu0 %v2217_v28  ;;  %4094 = vmatmul.mubr.bf16.vlgmr.msra.gmra.mxu1 %v2217_v28 }
 0xbf7   :  { %2355 = vmatpush1.bf16.msra.mxu0 %v5652_v19  ;;  %4098 = vmatpush3.bf16.msra.mxu1 %v5655_v46 }
 0xbf8   :  { %2356 = vmatprep.subr.bf16.mxu0 %v5658_v37  ;;  %4099 = vmatprep.subr.bf16.mxu1 %v6304_v34 }
 0xbf9   :  { %2386 = vmatprep.mubr.bf16.mxu0 %v6305_v57  ;;  %4113 = vmatprep.mubr.msk.bf16.mxu1 %vm4827_vm0, %v6304_v34 }
 0xbfb   :  { %2357 = vmatpush1.bf16.msra.mxu0 %v5665_v50  ;;  %4100 = vmatpush3.bf16.msra.mxu1 %v5731_v32 }
 0xbfc   :  { %2358 = vmatprep.subr.bf16.mxu0 %v5669_v38  ;;  %4101 = vmatprep.subr.bf16.mxu1 %v6304_v34 }
 0xbff   :  { %2359 = vmatpush1.bf16.msra.mxu0 %v5673_v15  ;;  %4102 = vmatpush3.bf16.msra.mxu1 %v5737_v33 }
 0xc00   :  { %2360 = vmatprep.subr.bf16.mxu0 %v5677_v5  ;;  %4103 = vmatprep.subr.bf16.mxu1 %v6304_v34 }
 0xc03   :  { %2361 = vmatpush1.bf16.msra.mxu0 %v5742_v35  ;;  %4104 = vmatpush3.bf16.msra.mxu1 %v5745_v13 }
 0xc04   :  { %2362 = vmatprep.subr.bf16.mxu0 %v5748_v6  ;;  %4105 = vmatprep.subr.bf16.mxu1 %v6304_v34 }
 0xc07   :  { %2363 = vmatpush1.bf16.msra.mxu0 %v5752_v14  ;;  %4106 = vmatpush3.bf16.msra.mxu1 %v5755_v26 }
 0xc08   :  { %2364 = vmatprep.subr.bf16.mxu0 %v5758_v62  ;;  %4107 = vmatprep.subr.bf16.mxu1 %v6304_v34 }
 0xc0b   :  { %2365 = vmatpush1.bf16.msra.mxu0 %v5762_v24  ;;  %4108 = vmatpush3.bf16.msra.mxu1 %v5765_v22 }
 0xc0c   :  { %2366 = vmatprep.subr.bf16.mxu0 %v5768_v39  ;;  %4109 = vmatprep.subr.bf16.mxu1 %v6304_v34 }
 0xc0f   :  { %2367 = vmatpush1.bf16.msra.mxu0 %v5772_v43  ;;  %4110 = vmatpush3.bf16.msra.mxu1 %v5775_v44 }
 0xc10   :  { %2368 = vmatprep.subr.bf16.mxu0 %v5778_v4  ;;  %4111 = vmatprep.subr.bf16.mxu1 %v6304_v34 }
 0xc13   :  { %2369 = vmatpush1.bf16.msra.mxu0 %v5782_v21  ;;  %4112 = vmatpush3.bf16.msra.mxu1 %v5785_v1 }
 0xc14   :  { %2489 = vmatprep.subr.bf16.mxu0 %v5699_v51  ;;  %4117 = vmatprep.subr.bf16.mxu1 %v6304_v34 }
 0xcb6   :  { %v2253_v9 = vpop.f32.mrf.mxu0  ;;  %v2294_v29 = vpop.f32.mrf.mxu1 }
 0xcb7   :  { %v2254_v31 = vadd.f32 %v2253_v9, %v5071_v11  ;;  %v2295_v47 = vadd.f32 %v2294_v29, %v5082_v59 }
 0xcb8   :  { %v2255_v60 = vpop.f32.mrf.mxu0  ;;  %v4095_v41 = vpop.f32.mrf.mxu1 }
 0xcb9   :  { %v2301_v18 = vrot.slane %v2254_v31, 4  ;;  %v2302_v40 = vrot.slane %v2254_v31, 5  ;;  %v2256_v63 = vadd.f32 %v2255_v60, %v5079_v55  ;;  %v2319_v52 = vrot.slane %v2295_v47, 4 }
 0xcba   :  { %v2257_v25 = vpop.f32.mrf.mxu0  ;;  %v2297_v48 = vpop.f32.mrf.mxu1  ;;  %v2320_v53 = vrot.slane %v2295_v47, 5  ;;  %v2335_v41 = vrot.slane %v5801_v20, 7 }
 0xcbb   :  { %v2305_v49 = vadd.f32 %v2301_v18, %v5040_v3  ;;  %v2306_v56 = vadd.f32 %v2302_v40, %v5060_v36  ;;  %v2310_v2 = vrot.slane %v2256_v63, 4  ;;  %v2311_v8 = vrot.slane %v2256_v63, 5 }
 0xcbc   :  { %v2258_v61 = vpop.f32.mrf.mxu0  ;;  %v4096_v23 = vpop.f32.mrf.mxu1  ;;  %v2336_v25 = vrot.slane %v5803_v42, 7 }
 0xcbd   :  { %4518 = vtanh.f32 %v2305_v49  ;;  %v2314_v17 = vadd.f32 %v2310_v2, %v5045_v7  ;;  %v2315_v45 = vadd.f32 %v2311_v8, %v5062_v54 }
 0xcbe   :  { %4520 = vtanh.f32 %v2306_v56 }
 0xcbf   :  { %4522 = vtanh.f32 %v2314_v17 }
 0xcc0   :  { %4524 = vtanh.f32 %v2315_v45 }
 0xcca   :  { %v4519_v12 = vpop.eup %4518 }
 0xccb   :  { %v4521_v0 = vpop.eup %4520  ;;  %v2323_v27 = vmul.f32 %v4519_v12, %v2319_v52 }
 0xccc   :  { %v2324_v28 = vmul.f32 %v4521_v0, %v2320_v53  ;;  %v4523_v60 = vpop.eup %4522 }
 0xccd   :  { %v2325_v9 = vadd.f32 %v2323_v27, %v5052_v16  ;;  %v4525_v29 = vpop.eup %4524  ;;  %v2329_v18 = vsub.f32 1.0, %v4523_v60  ;;  %v2339_v61 = vmul.f32 %v4523_v60, %v2335_v41 }
 0xcce   :  { %v2326_v31 = vadd.f32 %v2324_v28, %v5058_v30  ;;  %v2330_v48 = vsub.f32 1.0, %v4525_v29  ;;  %v2340_v63 = vmul.f32 %v4525_v29, %v2336_v25 }
 0xccf   :  { %4526 = vtanh.f32 %v2325_v9 }
 0xcd0   :  { %4528 = vtanh.f32 %v2326_v31 }
 0xcdc   :  { %v4527_v40 = vpop.eup %4526 }
 0xcdd   :  { %v4529_v49 = vpop.eup %4528  ;;  %v2331_v56 = vmul.f32 %v4527_v40, %v2329_v18 }
 0xcde   :  { %v2332_v23 = vmul.f32 %v4529_v49, %v2330_v48 }
 0xcdf   :  { %v5856_v2 = vadd.f32 %v2339_v61, %v2331_v56 }
 0xce0   :  { %v5858_v8 = vadd.f32 %v2340_v63, %v2332_v23 }
 0xce1   :  { %v2343_v47 = vpack.c.bf16 %v5856_v2, %v5856_v2 }
 0xce2   :  { %v2344_v20 = vpack.c.bf16 %v5858_v8, %v5858_v8 }
 0xce3   :  { %v2347_v17 = vunpack.c.l.b16 %v2343_v47 }
 0xce4   :  { %v2348_v45 = vunpack.c.l.b16 %v2344_v20 }
 0xce5   :  { %v2349_v52 = vrot.slane %v2347_v17, 4 }
 0xce6   :  { %v2350_v42 = vrot.slane %v2348_v45, 3 }
 0xce8   :  { %v2351_v12 = vsel %vm742_vm1, %v2350_v42, %v2349_v52 }
 0xce9   :  { %v2352_v53 = vpack.c.b16 %v2351_v12, %v2351_v12 }
 0xceb   :  { %2387 = vmatmul.mubr.bf16.vlgmr.msra.gmra.mxu0 %v2352_v53  ;;  %4114 = vmatmul.mubr.bf16.vlgmr.msra.gmra.mxu1 %v2352_v53 }
 0xcec   :  { %2490 = vmatpush1.bf16.msra.mxu0 %v5652_v19  ;;  %4118 = vmatpush3.bf16.msra.mxu1 %v5655_v46 }
 0xced   :  { %2491 = vmatprep.subr.bf16.mxu0 %v5658_v37  ;;  %4119 = vmatprep.subr.bf16.mxu1 %v6304_v34 }
 0xcee   :  { %2521 = vmatprep.mubr.bf16.mxu0 %v6305_v57  ;;  %4133 = vmatprep.mubr.msk.bf16.mxu1 %vm4827_vm0, %v6304_v34 }
 0xcf0   :  { %2492 = vmatpush1.bf16.msra.mxu0 %v5665_v50  ;;  %4120 = vmatpush3.bf16.msra.mxu1 %v5731_v32 }
 0xcf1   :  { %2493 = vmatprep.subr.bf16.mxu0 %v5669_v38  ;;  %4121 = vmatprep.subr.bf16.mxu1 %v6304_v34 }
 0xcf4   :  { %2494 = vmatpush1.bf16.msra.mxu0 %v5673_v15  ;;  %4122 = vmatpush3.bf16.msra.mxu1 %v5737_v33 }
 0xcf5   :  { %2495 = vmatprep.subr.bf16.mxu0 %v5677_v5  ;;  %4123 = vmatprep.subr.bf16.mxu1 %v6304_v34 }
 0xcf8   :  { %2496 = vmatpush1.bf16.msra.mxu0 %v5742_v35  ;;  %4124 = vmatpush3.bf16.msra.mxu1 %v5745_v13 }
 0xcf9   :  { %2497 = vmatprep.subr.bf16.mxu0 %v5748_v6  ;;  %4125 = vmatprep.subr.bf16.mxu1 %v6304_v34 }
 0xcfc   :  { %2498 = vmatpush1.bf16.msra.mxu0 %v5752_v14  ;;  %4126 = vmatpush3.bf16.msra.mxu1 %v5755_v26 }
 0xcfd   :  { %2499 = vmatprep.subr.bf16.mxu0 %v5758_v62  ;;  %4127 = vmatprep.subr.bf16.mxu1 %v6304_v34 }
 0xd00   :  { %2500 = vmatpush1.bf16.msra.mxu0 %v5762_v24  ;;  %4128 = vmatpush3.bf16.msra.mxu1 %v5765_v22 }
 0xd01   :  { %2501 = vmatprep.subr.bf16.mxu0 %v5768_v39  ;;  %4129 = vmatprep.subr.bf16.mxu1 %v6304_v34 }
 0xd04   :  { %2502 = vmatpush1.bf16.msra.mxu0 %v5772_v43  ;;  %4130 = vmatpush3.bf16.msra.mxu1 %v5775_v44 }
 0xd05   :  { %2503 = vmatprep.subr.bf16.mxu0 %v5778_v4  ;;  %4131 = vmatprep.subr.bf16.mxu1 %v6304_v34 }
 0xd08   :  { %2504 = vmatpush1.bf16.msra.mxu0 %v5782_v21  ;;  %4132 = vmatpush3.bf16.msra.mxu1 %v5785_v1 }
 0xd09   :  { %2624 = vmatprep.subr.bf16.mxu0 %v5699_v51  ;;  %4137 = vmatprep.subr.bf16.mxu1 %v6304_v34 }
 0xdab   :  { %v2388_v0 = vpop.f32.mrf.mxu0  ;;  %v2429_v27 = vpop.f32.mrf.mxu1 }
 0xdac   :  { %v2389_v28 = vadd.f32 %v2388_v0, %v5071_v11  ;;  %v2430_v63 = vadd.f32 %v2429_v27, %v5082_v59 }
 0xdad   :  { %v2390_v9 = vpop.f32.mrf.mxu0  ;;  %v4115_v31 = vpop.f32.mrf.mxu1 }
 0xdae   :  { %v2436_v60 = vrot.slane %v2389_v28, 3  ;;  %v2437_v29 = vrot.slane %v2389_v28, 4  ;;  %v2391_v56 = vadd.f32 %v2390_v9, %v5079_v55  ;;  %v2454_v17 = vrot.slane %v2430_v63, 3 }
 0xdaf   :  { %v2392_v41 = vpop.f32.mrf.mxu0  ;;  %v2432_v18 = vpop.f32.mrf.mxu1  ;;  %v2455_v52 = vrot.slane %v2430_v63, 4  ;;  %v2470_v31 = vrot.slane %v5856_v2, 7 }
 0xdb0   :  { %v2440_v40 = vadd.f32 %v2436_v60, %v5040_v3  ;;  %v2441_v25 = vadd.f32 %v2437_v29, %v5060_v36  ;;  %v2445_v61 = vrot.slane %v2391_v56, 3  ;;  %v2446_v23 = vrot.slane %v2391_v56, 4 }
 0xdb1   :  { %v2393_v48 = vpop.f32.mrf.mxu0  ;;  %v4116_v49 = vpop.f32.mrf.mxu1  ;;  %v2471_v41 = vrot.slane %v5858_v8, 7 }
 0xdb2   :  { %4530 = vtanh.f32 %v2440_v40  ;;  %v2449_v47 = vadd.f32 %v2445_v61, %v5045_v7  ;;  %v2450_v20 = vadd.f32 %v2446_v23, %v5062_v54 }
 0xdb3   :  { %4532 = vtanh.f32 %v2441_v25 }
 0xdb4   :  { %4534 = vtanh.f32 %v2449_v47 }
 0xdb5   :  { %4536 = vtanh.f32 %v2450_v20 }
 0xdbf   :  { %v4531_v45 = vpop.eup %4530 }
 0xdc0   :  { %v4533_v42 = vpop.eup %4532  ;;  %v2458_v12 = vmul.f32 %v4531_v45, %v2454_v17 }
 0xdc1   :  { %v2459_v53 = vmul.f32 %v4533_v42, %v2455_v52  ;;  %v4535_v9 = vpop.eup %4534 }
 0xdc2   :  { %v2460_v0 = vadd.f32 %v2458_v12, %v5052_v16  ;;  %v4537_v27 = vpop.eup %4536  ;;  %v2464_v60 = vsub.f32 1.0, %v4535_v9  ;;  %v2474_v48 = vmul.f32 %v4535_v9, %v2470_v31 }
 0xdc3   :  { %v2461_v28 = vadd.f32 %v2459_v53, %v5058_v30  ;;  %v2465_v18 = vsub.f32 1.0, %v4537_v27  ;;  %v2475_v56 = vmul.f32 %v4537_v27, %v2471_v41 }
 0xdc4   :  { %4538 = vtanh.f32 %v2460_v0 }
 0xdc5   :  { %4540 = vtanh.f32 %v2461_v28 }
 0xdd1   :  { %v4539_v29 = vpop.eup %4538 }
 0xdd2   :  { %v4541_v40 = vpop.eup %4540  ;;  %v2466_v25 = vmul.f32 %v4539_v29, %v2464_v60 }
 0xdd3   :  { %v2467_v49 = vmul.f32 %v4541_v40, %v2465_v18 }
 0xdd4   :  { %v5911_v61 = vadd.f32 %v2474_v48, %v2466_v25 }
 0xdd5   :  { %v5913_v23 = vadd.f32 %v2475_v56, %v2467_v49 }
 0xdd6   :  { %v2478_v63 = vpack.c.bf16 %v5911_v61, %v5911_v61 }
 0xdd7   :  { %v2479_v2 = vpack.c.bf16 %v5913_v23, %v5913_v23 }
 0xdd8   :  { %v2482_v47 = vunpack.c.l.b16 %v2478_v63 }
 0xdd9   :  { %v2483_v20 = vunpack.c.l.b16 %v2479_v2 }
 0xdda   :  { %v2484_v17 = vrot.slane %v2482_v47, 5 }
 0xddb   :  { %v2485_v8 = vrot.slane %v2483_v20, 4 }
 0xddd   :  { %v2486_v45 = vsel %vm742_vm1, %v2485_v8, %v2484_v17 }
 0xdde   :  { %v2487_v52 = vpack.c.b16 %v2486_v45, %v2486_v45 }
 0xde0   :  { %2522 = vmatmul.mubr.bf16.vlgmr.msra.gmra.mxu0 %v2487_v52  ;;  %4134 = vmatmul.mubr.bf16.vlgmr.msra.gmra.mxu1 %v2487_v52 }
 0xde1   :  { %2625 = vmatpush1.bf16.msra.mxu0 %v5652_v19  ;;  %4138 = vmatpush3.bf16.msra.mxu1 %v5655_v46 }
 0xde2   :  { %2626 = vmatprep.subr.bf16.mxu0 %v5658_v37  ;;  %4139 = vmatprep.subr.bf16.mxu1 %v6304_v34 }
 0xde3   :  { %2656 = vmatprep.mubr.bf16.mxu0 %v6305_v57  ;;  %4153 = vmatprep.mubr.msk.bf16.mxu1 %vm4827_vm0, %v6304_v34 }
 0xde5   :  { %2627 = vmatpush1.bf16.msra.mxu0 %v5665_v50  ;;  %4140 = vmatpush3.bf16.msra.mxu1 %v5731_v32 }
 0xde6   :  { %2628 = vmatprep.subr.bf16.mxu0 %v5669_v38  ;;  %4141 = vmatprep.subr.bf16.mxu1 %v6304_v34 }
 0xde9   :  { %2629 = vmatpush1.bf16.msra.mxu0 %v5673_v15  ;;  %4142 = vmatpush3.bf16.msra.mxu1 %v5737_v33 }
 0xdea   :  { %2630 = vmatprep.subr.bf16.mxu0 %v5677_v5  ;;  %4143 = vmatprep.subr.bf16.mxu1 %v6304_v34 }
 0xded   :  { %2631 = vmatpush1.bf16.msra.mxu0 %v5742_v35  ;;  %4144 = vmatpush3.bf16.msra.mxu1 %v5745_v13 }
 0xdee   :  { %2632 = vmatprep.subr.bf16.mxu0 %v5748_v6  ;;  %4145 = vmatprep.subr.bf16.mxu1 %v6304_v34 }
 0xdf1   :  { %2633 = vmatpush1.bf16.msra.mxu0 %v5752_v14  ;;  %4146 = vmatpush3.bf16.msra.mxu1 %v5755_v26 }
 0xdf2   :  { %2634 = vmatprep.subr.bf16.mxu0 %v5758_v62  ;;  %4147 = vmatprep.subr.bf16.mxu1 %v6304_v34 }
 0xdf5   :  { %2635 = vmatpush1.bf16.msra.mxu0 %v5762_v24  ;;  %4148 = vmatpush3.bf16.msra.mxu1 %v5765_v22 }
 0xdf6   :  { %2636 = vmatprep.subr.bf16.mxu0 %v5768_v39  ;;  %4149 = vmatprep.subr.bf16.mxu1 %v6304_v34 }
 0xdf9   :  { %2637 = vmatpush1.bf16.msra.mxu0 %v5772_v43  ;;  %4150 = vmatpush3.bf16.msra.mxu1 %v5775_v44 }
 0xdfa   :  { %2638 = vmatprep.subr.bf16.mxu0 %v5778_v4  ;;  %4151 = vmatprep.subr.bf16.mxu1 %v6304_v34 }
 0xdfd   :  { %2639 = vmatpush1.bf16.msra.mxu0 %v5782_v21  ;;  %4152 = vmatpush3.bf16.msra.mxu1 %v5785_v1 }
 0xdfe   :  { %2759 = vmatprep.subr.bf16.mxu0 %v5699_v51  ;;  %4157 = vmatprep.subr.bf16.mxu1 %v6304_v34 }
 0xea0   :  { %v2523_v42 = vpop.f32.mrf.mxu0  ;;  %v2564_v12 = vpop.f32.mrf.mxu1 }
 0xea1   :  { %v2524_v53 = vadd.f32 %v2523_v42, %v5071_v11  ;;  %v2565_v56 = vadd.f32 %v2564_v12, %v5082_v59 }
 0xea2   :  { %v2525_v0 = vpop.f32.mrf.mxu0  ;;  %v4135_v28 = vpop.f32.mrf.mxu1 }
 0xea3   :  { %v2571_v9 = vrot.slane %v2524_v53, 2  ;;  %v2572_v27 = vrot.slane %v2524_v53, 3  ;;  %v2526_v25 = vadd.f32 %v2525_v0, %v5079_v55  ;;  %v2589_v47 = vrot.slane %v2565_v56, 2 }
 0xea4   :  { %v2527_v31 = vpop.f32.mrf.mxu0  ;;  %v2567_v60 = vpop.f32.mrf.mxu1  ;;  %v2590_v17 = vrot.slane %v2565_v56, 3  ;;  %v2605_v28 = vrot.slane %v5911_v61, 7 }
 0xea5   :  { %v2575_v29 = vadd.f32 %v2571_v9, %v5040_v3  ;;  %v2576_v41 = vadd.f32 %v2572_v27, %v5060_v36  ;;  %v2580_v48 = vrot.slane %v2526_v25, 2  ;;  %v2581_v49 = vrot.slane %v2526_v25, 3 }
 0xea6   :  { %v2528_v18 = vpop.f32.mrf.mxu0  ;;  %v4136_v40 = vpop.f32.mrf.mxu1  ;;  %v2606_v31 = vrot.slane %v5913_v23, 7 }
 0xea7   :  { %4542 = vtanh.f32 %v2575_v29  ;;  %v2584_v63 = vadd.f32 %v2580_v48, %v5045_v7  ;;  %v2585_v2 = vadd.f32 %v2581_v49, %v5062_v54 }
 0xea8   :  { %4544 = vtanh.f32 %v2576_v41 }
 0xea9   :  { %4546 = vtanh.f32 %v2584_v63 }
 0xeaa   :  { %4548 = vtanh.f32 %v2585_v2 }
 0xeb4   :  { %v4543_v20 = vpop.eup %4542 }
 0xeb5   :  { %v4545_v8 = vpop.eup %4544  ;;  %v2593_v45 = vmul.f32 %v4543_v20, %v2589_v47 }
 0xeb6   :  { %v2594_v52 = vmul.f32 %v4545_v8, %v2590_v17  ;;  %v4547_v0 = vpop.eup %4546 }
 0xeb7   :  { %v2595_v42 = vadd.f32 %v2593_v45, %v5052_v16  ;;  %v4549_v12 = vpop.eup %4548  ;;  %v2599_v9 = vsub.f32 1.0, %v4547_v0  ;;  %v2609_v18 = vmul.f32 %v4547_v0, %v2605_v28 }
 0xeb8   :  { %v2596_v53 = vadd.f32 %v2594_v52, %v5058_v30  ;;  %v2600_v60 = vsub.f32 1.0, %v4549_v12  ;;  %v2610_v25 = vmul.f32 %v4549_v12, %v2606_v31 }
 0xeb9   :  { %4550 = vtanh.f32 %v2595_v42 }
 0xeba   :  { %4552 = vtanh.f32 %v2596_v53 }
 0xec6   :  { %v4551_v27 = vpop.eup %4550 }
 0xec7   :  { %v4553_v29 = vpop.eup %4552  ;;  %v2601_v41 = vmul.f32 %v4551_v27, %v2599_v9 }
 0xec8   :  { %v2602_v40 = vmul.f32 %v4553_v29, %v2600_v60 }
 0xec9   :  { %v5966_v48 = vadd.f32 %v2609_v18, %v2601_v41 }
 0xeca   :  { %v5968_v49 = vadd.f32 %v2610_v25, %v2602_v40 }
 0xecb   :  { %v2613_v56 = vpack.c.bf16 %v5966_v48, %v5966_v48 }
 0xecc   :  { %v2614_v61 = vpack.c.bf16 %v5968_v49, %v5968_v49 }
 0xecd   :  { %v2617_v63 = vunpack.c.l.b16 %v2613_v56 }
 0xece   :  { %v2618_v2 = vunpack.c.l.b16 %v2614_v61 }
 0xecf   :  { %v2619_v47 = vrot.slane %v2617_v63, 6 }
 0xed0   :  { %v2620_v23 = vrot.slane %v2618_v2, 5  ;;  %v2741_v2 = vrot.slane %v5968_v49, 7 }
 0xed2   :  { %v2621_v20 = vsel %vm742_vm1, %v2620_v23, %v2619_v47 }
 0xed3   :  { %v2622_v17 = vpack.c.b16 %v2621_v20, %v2621_v20 }
 0xed5   :  { %2657 = vmatmul.mubr.bf16.vlgmr.msra.gmra.mxu0 %v2622_v17  ;;  %4154 = vmatmul.mubr.bf16.vlgmr.msra.gmra.mxu1 %v2622_v17 }
 0xed6   :  { %2760 = vmatpush1.bf16.msra.mxu0 %v5652_v19  ;;  %4158 = vmatpush3.bf16.msra.mxu1 %v5655_v46 }
 0xed7   :  { %2761 = vmatprep.subr.bf16.mxu0 %v5658_v37  ;;  %4159 = vmatprep.subr.bf16.mxu1 %v6304_v34 }
 0xed8   :  { %2791 = vmatprep.mubr.bf16.mxu0 %v6305_v57  ;;  %4173 = vmatprep.mubr.msk.bf16.mxu1 %vm4827_vm0, %v6304_v34 }
 0xeda   :  { %2762 = vmatpush1.bf16.msra.mxu0 %v5665_v50  ;;  %4160 = vmatpush3.bf16.msra.mxu1 %v5731_v32 }
 0xedb   :  { %2763 = vmatprep.subr.bf16.mxu0 %v5669_v38  ;;  %4161 = vmatprep.subr.bf16.mxu1 %v6304_v34 }
 0xede   :  { %2764 = vmatpush1.bf16.msra.mxu0 %v5673_v15  ;;  %4162 = vmatpush3.bf16.msra.mxu1 %v5737_v33 }
 0xedf   :  { %2765 = vmatprep.subr.bf16.mxu0 %v5677_v5  ;;  %4163 = vmatprep.subr.bf16.mxu1 %v6304_v34 }
 0xee2   :  { %2766 = vmatpush1.bf16.msra.mxu0 %v5742_v35  ;;  %4164 = vmatpush3.bf16.msra.mxu1 %v5745_v13 }
 0xee3   :  { %2767 = vmatprep.subr.bf16.mxu0 %v5748_v6  ;;  %4165 = vmatprep.subr.bf16.mxu1 %v6304_v34 }
 0xee6   :  { %2768 = vmatpush1.bf16.msra.mxu0 %v5752_v14  ;;  %4166 = vmatpush3.bf16.msra.mxu1 %v5755_v26 }
 0xee7   :  { %2769 = vmatprep.subr.bf16.mxu0 %v5758_v62  ;;  %4167 = vmatprep.subr.bf16.mxu1 %v6304_v34 }
 0xeea   :  { %2770 = vmatpush1.bf16.msra.mxu0 %v5762_v24  ;;  %4168 = vmatpush3.bf16.msra.mxu1 %v5765_v22 }
 0xeeb   :  { %2771 = vmatprep.subr.bf16.mxu0 %v5768_v39  ;;  %4169 = vmatprep.subr.bf16.mxu1 %v6304_v34 }
 0xeee   :  { %2772 = vmatpush1.bf16.msra.mxu0 %v5772_v43  ;;  %4170 = vmatpush3.bf16.msra.mxu1 %v5775_v44 }
 0xeef   :  { %2773 = vmatprep.subr.bf16.mxu0 %v5778_v4  ;;  %4171 = vmatprep.subr.bf16.mxu1 %v6304_v34 }
 0xef2   :  { %2774 = vmatpush1.bf16.msra.mxu0 %v5782_v21  ;;  %4172 = vmatpush3.bf16.msra.mxu1 %v5785_v1 }
 0xef3   :  { %2890 = vmatprep.subr.bf16.mxu0 %v5699_v51  ;;  %4177 = vmatprep.subr.bf16.mxu1 %v6304_v34 }
 0xf95   :  { %v2658_v19 = vpop.f32.mrf.mxu0  ;;  %v2699_v46 = vpop.f32.mrf.mxu1 }
 0xf96   :  { %v2659_v37 = vadd.f32 %v2658_v19, %v5071_v11  ;;  %v2700_v9 = vadd.f32 %v2699_v46, %v5082_v59 }
 0xf97   :  { %v2660_v50 = vpop.f32.mrf.mxu0  ;;  %v4155_v38 = vpop.f32.mrf.mxu1 }
 0xf98   :  { %v2706_v15 = vrot.slane %v2659_v37, 1  ;;  %v2707_v5 = vrot.slane %v2659_v37, 2  ;;  %v2661_v51 = vadd.f32 %v2660_v50, %v5079_v55  ;;  %v2724_v60 = vrot.slane %v2700_v9, 1 }
 0xf99   :  { %v2662_v8 = vpop.f32.mrf.mxu0  ;;  %v2702_v45 = vpop.f32.mrf.mxu1  ;;  %v2725_v41 = vrot.slane %v2700_v9, 2 }
 0xf9a   :  { %v2710_v52 = vadd.f32 %v2706_v15, %v5040_v3  ;;  %v2711_v42 = vadd.f32 %v2707_v5, %v5060_v36  ;;  %v2715_v12 = vrot.slane %v2661_v51, 1  ;;  %v2716_v28 = vrot.slane %v2661_v51, 2  ;;  %v6030_v45 = vld [vmem:[#allocation7 + $0xa8] ss:$12 sps:$4 sm:$0xff]   ;;  %v6051_v51 = vld [vmem:[#allocation7 + $0x78] ss:$12 sps:$4 sm:$0xff]  }
 0xf9b   :  { %v2663_v53 = vpop.f32.mrf.mxu0  ;;  %v4156_v0 = vpop.f32.mrf.mxu1 }
 0xf9c   :  { %4554 = vtanh.f32 %v2710_v52  ;;  %v2719_v27 = vadd.f32 %v2715_v12, %v5045_v7  ;;  %v2720_v31 = vadd.f32 %v2716_v28, %v5062_v54  ;;  %v2740_v7 = vrot.slane %v5966_v48, 7  ;;  %v6033_v52 = vld [vmem:[#allocation7 + $0xb0] ss:$12 sps:$4 sm:$0xff]  }
 0xf9d   :  { %4556 = vtanh.f32 %v2711_v42  ;;  %v6036_v42 = vld [vmem:[#allocation7 + $0x94] ss:$12 sps:$4 sm:$0xff]   ;;  %v6043_v53 = vld [vmem:[#allocation7 + $0x90] ss:$12 sps:$4 sm:$0xff]  }
 0xf9e   :  { %4558 = vtanh.f32 %v2719_v27  ;;  %v6047_v0 = vld [vmem:[#allocation7 + $0x7c] ss:$12 sps:$4 sm:$0xff]   ;;  %v6055_v12 = vld [vmem:[#allocation7 + $0x64] ss:$12 sps:$4 sm:$0xff]  }
 0xf9f   :  { %4560 = vtanh.f32 %v2720_v31  ;;  %v6306_v28 = vld [vmem:[#allocation17_spill] sm:$0xff]  ;;  %v6307_v27 = vld [vmem:[#allocation19_spill] sm:$0xff] }
 0xfa9   :  { %v4555_v29 = vpop.eup %4554 }
 0xfaa   :  { %v4557_v3 = vpop.eup %4556  ;;  %v2728_v18 = vmul.f32 %v4555_v29, %v2724_v60 }
 0xfab   :  { %v2729_v36 = vmul.f32 %v4557_v3, %v2725_v41  ;;  %v4559_v56 = vpop.eup %4558 }
 0xfac   :  { %v2730_v40 = vadd.f32 %v2728_v18, %v5052_v16  ;;  %v4561_v61 = vpop.eup %4560  ;;  %v2734_v63 = vsub.f32 1.0, %v4559_v56  ;;  %v2744_v17 = vmul.f32 %v4559_v56, %v2740_v7 }
 0xfad   :  { %v2731_v25 = vadd.f32 %v2729_v36, %v5058_v30  ;;  %v2735_v47 = vsub.f32 1.0, %v4561_v61  ;;  %v2745_v46 = vmul.f32 %v4561_v61, %v2741_v2  ;;  %v6308_v36 = vld [vmem:[#allocation16_spill] sm:$0xff] }
 0xfae   :  { %4562 = vtanh.f32 %v2730_v40 }
 0xfaf   :  { %4564 = vtanh.f32 %v2731_v25  ;;  %v6309_v25 = vld [vmem:[#allocation18_spill] sm:$0xff] }
 0xfbb   :  { %v4563_v54 = vpop.eup %4562 }
 0xfbc   :  { %v4565_v23 = vpop.eup %4564  ;;  %v2736_v20 = vmul.f32 %v4563_v54, %v2734_v63 }
 0xfbd   :  { %v2737_v19 = vmul.f32 %v4565_v23, %v2735_v47 }
 0xfbe   :  { %v6021_v37 = vadd.f32 %v2744_v17, %v2736_v20 }
 0xfbf   :  { %v6023_v16 = vadd.f32 %v2745_v46, %v2737_v19 }
 0xfc0   :  { %v2748_v30 = vpack.c.bf16 %v6021_v37, %v6021_v37  ;;  %v2872_v63 = vrot.slane %v6021_v37, 7 }
 0xfc1   :  { %v2749_v48 = vpack.c.bf16 %v6023_v16, %v6023_v16  ;;  %v2873_v47 = vrot.slane %v6023_v16, 7 }
 0xfc2   :  { %v2752_v50 = vunpack.c.l.b16 %v2748_v30 }
 0xfc3   :  { %v2753_v38 = vunpack.c.l.b16 %v2749_v48 }
 0xfc4   :  { %v2754_v15 = vrot.slane %v2752_v50, 7 }
 0xfc5   :  { %v2755_v49 = vrot.slane %v2753_v38, 6 }
 0xfc7   :  { %v2756_v5 = vsel %vm742_vm1, %v2755_v49, %v2754_v15 }
 0xfc8   :  { %v2757_v8 = vpack.c.b16 %v2756_v5, %v2756_v5 }
 0xfca   :  { %2792 = vmatmul.mubr.bf16.vlgmr.msra.gmra.mxu0 %v2757_v8  ;;  %4174 = vmatmul.mubr.bf16.vlgmr.msra.gmra.mxu1 %v2757_v8 }
 0xfcb   :  { %2891 = vmatpush1.bf16.msra.mxu0 %v6030_v45  ;;  %4178 = vmatpush3.bf16.msra.mxu1 %v6033_v52 }
 0xfcc   :  { %2892 = vmatprep.subr.bf16.mxu0 %v6036_v42  ;;  %4179 = vmatprep.subr.bf16.mxu1 %v6304_v34 }
 0xfcd   :  { %2922 = vmatprep.mubr.bf16.mxu0 %v6305_v57  ;;  %4193 = vmatprep.mubr.msk.bf16.mxu1 %vm4827_vm0, %v6304_v34 }
 0xfcf   :  { %2893 = vmatpush1.bf16.msra.mxu0 %v6043_v53  ;;  %4180 = vmatpush3.bf16.msra.mxu1 %v5731_v32  ;;  %v6077_v32 = vld [vmem:[#allocation7 + $0xac] ss:$12 sps:$4 sm:$0xff]  }
 0xfd0   :  { %2894 = vmatprep.subr.bf16.mxu0 %v6047_v0  ;;  %4181 = vmatprep.subr.bf16.mxu1 %v6304_v34 }
 0xfd3   :  { %2895 = vmatpush1.bf16.msra.mxu0 %v6051_v51  ;;  %4182 = vmatpush3.bf16.msra.mxu1 %v5737_v33 }
 0xfd4   :  { %2896 = vmatprep.subr.bf16.mxu0 %v6055_v12  ;;  %4183 = vmatprep.subr.bf16.mxu1 %v6304_v34 }
 0xfd7   :  { %2897 = vmatpush1.bf16.msra.mxu0 %v5742_v35  ;;  %4184 = vmatpush3.bf16.msra.mxu1 %v5745_v13 }
 0xfd8   :  { %2898 = vmatprep.subr.bf16.mxu0 %v5748_v6  ;;  %4185 = vmatprep.subr.bf16.mxu1 %v6304_v34 }
 0xfdb   :  { %2899 = vmatpush1.bf16.msra.mxu0 %v5752_v14  ;;  %4186 = vmatpush3.bf16.msra.mxu1 %v5755_v26 }
 0xfdc   :  { %2900 = vmatprep.subr.bf16.mxu0 %v5758_v62  ;;  %4187 = vmatprep.subr.bf16.mxu1 %v6304_v34 }
 0xfdf   :  { %2901 = vmatpush1.bf16.msra.mxu0 %v5762_v24  ;;  %4188 = vmatpush3.bf16.msra.mxu1 %v5765_v22 }
 0xfe0   :  { %2902 = vmatprep.subr.bf16.mxu0 %v5768_v39  ;;  %4189 = vmatprep.subr.bf16.mxu1 %v6304_v34 }
 0xfe3   :  { %2903 = vmatpush1.bf16.msra.mxu0 %v5772_v43  ;;  %4190 = vmatpush3.bf16.msra.mxu1 %v5775_v44 }
 0xfe4   :  { %2904 = vmatprep.subr.bf16.mxu0 %v5778_v4  ;;  %4191 = vmatprep.subr.bf16.mxu1 %v6304_v34 }
 0xfe7   :  { %2905 = vmatpush1.bf16.msra.mxu0 %v5782_v21  ;;  %4192 = vmatpush3.bf16.msra.mxu1 %v5785_v1 }
 0xfe8   :  { %3021 = vmatprep.subr.bf16.mxu0 %v6077_v32  ;;  %4197 = vmatprep.subr.bf16.mxu1 %v6304_v34 }
0x108a   :  { %v2793_v33 = vpop.f32.mrf.mxu0  ;;  %v2834_v35 = vpop.f32.mrf.mxu1 }
0x108b   :  { %v2794_v13 = vadd.f32 %v2793_v33, %v5071_v11  ;;  %v2835_v1 = vadd.f32 %v2834_v35, %v5082_v59  ;;  %v6109_v33 = vld [vmem:[#allocation7 + $0x98] ss:$12 sps:$4 sm:$0xff]   ;;  %v6115_v35 = vld [vmem:[#allocation7 + $0x80] ss:$12 sps:$4 sm:$0xff]  }
0x108c   :  { %v2795_v6 = vpop.f32.mrf.mxu0  ;;  %v4175_v14 = vpop.f32.mrf.mxu1 }
0x108d   :  { %v2841_v26 = vrot.slane %v2794_v13, 1  ;;  %v2844_v62 = vadd.f32 %v2794_v13, %v5047_v10  ;;  %v2796_v4 = vadd.f32 %v2795_v6, %v5079_v55  ;;  %v2857_v29 = vrot.slane %v2835_v1, 1  ;;  %v6120_v13 = vld [vmem:[#allocation7 + $0x60] ss:$12 sps:$4 sm:$0xff]   ;;  %v6123_v6 = vld [vmem:[#allocation7 + $0x68] ss:$12 sps:$4 sm:$0xff]  }
0x108e   :  { %v2797_v24 = vpop.f32.mrf.mxu0  ;;  %v2837_v22 = vpop.f32.mrf.mxu1  ;;  %v6126_v14 = vld [vmem:[#allocation7 + $0x4c] ss:$12 sps:$4 sm:$0xff]  }
0x108f   :  { %v2845_v39 = vadd.f32 %v2841_v26, %v5064_v58  ;;  %4566 = vtanh.f32 %v2844_v62  ;;  %v2849_v21 = vrot.slane %v2796_v4, 1  ;;  %v2852_v9 = vadd.f32 %v2796_v4, %v6306_v28  ;;  %v6130_v26 = vld [vmem:[#allocation7 + $0x48] ss:$12 sps:$4 sm:$0xff]   ;;  %v6133_v62 = vld [vmem:[#allocation7 + $0x50] ss:$12 sps:$4 sm:$0xff]  }
0x1090   :  { %v2798_v43 = vpop.f32.mrf.mxu0  ;;  %v4176_v44 = vpop.f32.mrf.mxu1  ;;  %v6136_v24 = vld [vmem:[#allocation7 + $0x34] ss:$12 sps:$4 sm:$0xff]   ;;  %v6140_v22 = vld [vmem:[#allocation7 + $0x30] ss:$12 sps:$4 sm:$0xff]  }
0x1091   :  { %4568 = vtanh.f32 %v2845_v39  ;;  %v2853_v31 = vadd.f32 %v2849_v21, %v6307_v27  ;;  %v6143_v39 = vld [vmem:[#allocation7 + $0x38] ss:$12 sps:$4 sm:$0xff]   ;;  %v6146_v43 = vld [vmem:[#allocation7 + $0x1c] ss:$12 sps:$4 sm:$0xff]   ;;  %v6153_v4 = vld [vmem:[#allocation7 + $0x20] ss:$12 sps:$4 sm:$0xff]  }
0x1092   :  { %4570 = vtanh.f32 %v2852_v9  ;;  %v6150_v44 = vld [vmem:[#allocation7 + $0x18] ss:$12 sps:$4 sm:$0xff]   ;;  %v6163_v9 = vld [vmem:[#allocation7 + $0x8] ss:$12 sps:$4 sm:$0xff]  }
0x1093   :  { %4572 = vtanh.f32 %v2853_v31  ;;  %v6156_v21 = vld [vmem:[#allocation7 + $0x4] ss:$12 sps:$4 sm:$0xff]  }
0x109c   :  { %v4567_v60 = vpop.eup %4566 }
0x109d   :  { %v2860_v41 = vmul.f32 %v4567_v60, %v2835_v1  ;;  %v6160_v1 = vld [vmem:[#allocation7] ss:$12 sps:$4 sm:$0xff]  }
0x109e   :  { %v4569_v3 = vpop.eup %4568 }
0x109f   :  { %v2861_v18 = vmul.f32 %v4569_v3, %v2857_v29  ;;  %v2862_v40 = vadd.f32 %v2860_v41, %v6308_v36  ;;  %v4571_v61 = vpop.eup %4570 }
0x10a0   :  { %v4573_v7 = vpop.eup %4572  ;;  %v2866_v54 = vsub.f32 1.0, %v4571_v61  ;;  %v2876_v17 = vmul.f32 %v4571_v61, %v2872_v63 }
0x10a1   :  { %v2863_v56 = vadd.f32 %v2861_v18, %v6309_v25  ;;  %4574 = vtanh.f32 %v2862_v40  ;;  %v2867_v23 = vsub.f32 1.0, %v4573_v7  ;;  %v2877_v30 = vmul.f32 %v4573_v7, %v2873_v47 }
0x10a3   :  { %4576 = vtanh.f32 %v2863_v56 }
0x10ae   :  { %v4575_v2 = vpop.eup %4574 }
0x10af   :  { %v2868_v20 = vmul.f32 %v4575_v2, %v2866_v54 }
0x10b0   :  { %v4577_v19 = vpop.eup %4576 }
0x10b1   :  { %v2869_v46 = vmul.f32 %v4577_v19, %v2867_v23  ;;  %v6092_v48 = vadd.f32 %v2876_v17, %v2868_v20 }
0x10b3   :  { %v6094_v50 = vadd.f32 %v2877_v30, %v2869_v46  ;;  %v2880_v38 = vpack.c.bf16 %v6092_v48, %v6092_v48 }
0x10b5   :  { %v2881_v37 = vpack.c.bf16 %v6094_v50, %v6094_v50  ;;  %v2884_v49 = vunpack.c.l.b16 %v2880_v38 }
0x10b7   :  { %v2885_v15 = vunpack.c.l.b16 %v2881_v37 }
0x10b9   :  { %v2886_v5 = vrot.slane %v2885_v15, 7 }
0x10bb   :  { %v2887_v16 = vsel %vm742_vm1, %v2886_v5, %v2884_v49 }
0x10bc   :  { %v2888_v8 = vpack.c.b16 %v2887_v16, %v2887_v16  ;;  %v3004_v16 = vrot.slane %v6094_v50, 7 }
0x10be   :  { %2923 = vmatmul.mubr.bf16.vlgmr.msra.gmra.mxu0 %v2888_v8  ;;  %4194 = vmatmul.mubr.bf16.vlgmr.msra.gmra.mxu1 %v2888_v8 }
0x10bf   :  { %3022 = vmatpush1.bf16.msra.mxu0 %v6030_v45  ;;  %4198 = vmatpush3.bf16.msra.mxu1 %v6033_v52 }
0x10c0   :  { %3023 = vmatprep.subr.bf16.mxu0 %v6036_v42  ;;  %4199 = vmatprep.subr.bf16.mxu1 %v6304_v34 }
0x10c1   :  { %3053 = vmatprep.mubr.bf16.mxu0 %v6305_v57  ;;  %4213 = vmatprep.mubr.msk.bf16.mxu1 %vm4827_vm0, %v6304_v34 }
0x10c3   :  { %3024 = vmatpush1.bf16.msra.mxu0 %v6043_v53  ;;  %4200 = vmatpush3.bf16.msra.mxu1 %v6109_v33 }
0x10c4   :  { %3025 = vmatprep.subr.bf16.mxu0 %v6047_v0  ;;  %4201 = vmatprep.subr.bf16.mxu1 %v6304_v34 }
0x10c7   :  { %3026 = vmatpush1.bf16.msra.mxu0 %v6051_v51  ;;  %4202 = vmatpush3.bf16.msra.mxu1 %v6115_v35 }
0x10c8   :  { %3027 = vmatprep.subr.bf16.mxu0 %v6055_v12  ;;  %4203 = vmatprep.subr.bf16.mxu1 %v6304_v34 }
0x10cb   :  { %3028 = vmatpush1.bf16.msra.mxu0 %v6120_v13  ;;  %4204 = vmatpush3.bf16.msra.mxu1 %v6123_v6 }
0x10cc   :  { %3029 = vmatprep.subr.bf16.mxu0 %v6126_v14  ;;  %4205 = vmatprep.subr.bf16.mxu1 %v6304_v34 }
0x10cf   :  { %3030 = vmatpush1.bf16.msra.mxu0 %v6130_v26  ;;  %4206 = vmatpush3.bf16.msra.mxu1 %v6133_v62 }
0x10d0   :  { %3031 = vmatprep.subr.bf16.mxu0 %v6136_v24  ;;  %4207 = vmatprep.subr.bf16.mxu1 %v6304_v34 }
0x10d3   :  { %3032 = vmatpush1.bf16.msra.mxu0 %v6140_v22  ;;  %4208 = vmatpush3.bf16.msra.mxu1 %v6143_v39 }
0x10d4   :  { %3033 = vmatprep.subr.bf16.mxu0 %v6146_v43  ;;  %4209 = vmatprep.subr.bf16.mxu1 %v6304_v34 }
0x10d7   :  { %3034 = vmatpush1.bf16.msra.mxu0 %v6150_v44  ;;  %4210 = vmatpush3.bf16.msra.mxu1 %v6153_v4 }
0x10d8   :  { %3035 = vmatprep.subr.bf16.mxu0 %v6156_v21  ;;  %4211 = vmatprep.subr.bf16.mxu1 %v6304_v34 }
0x10db   :  { %3036 = vmatpush1.bf16.msra.mxu0 %v6160_v1  ;;  %4212 = vmatpush3.bf16.msra.mxu1 %v6163_v9 }
0x10dc   :  { %3156 = vmatprep.subr.bf16.mxu0 %v6077_v32  ;;  %4217 = vmatprep.subr.bf16.mxu1 %v6304_v34 }
0x117e   :  { %v2924_v31 = vpop.f32.mrf.mxu0  ;;  %v2965_v60 = vpop.f32.mrf.mxu1 }
0x117f   :  { %v2925_v29 = vadd.f32 %v2924_v31, %v5071_v11  ;;  %v2966_v47 = vadd.f32 %v2965_v60, %v5082_v59  ;;  %v3003_v60 = vrot.slane %v6092_v48, 7 }
0x1180   :  { %v2926_v41 = vpop.f32.mrf.mxu0  ;;  %v4195_v3 = vpop.f32.mrf.mxu1 }
0x1181   :  { %v2972_v18 = vrot.slane %v2925_v29, 7  ;;  %v2976_v40 = vadd.f32 %v2925_v29, %v5064_v58  ;;  %v2927_v32 = vadd.f32 %v2926_v41, %v5079_v55  ;;  %v2988_v19 = vrot.slane %v2966_v47, 7 }
0x1182   :  { %v2928_v56 = vpop.f32.mrf.mxu0  ;;  %v2968_v61 = vpop.f32.mrf.mxu1 }
0x1183   :  { %v2975_v7 = vadd.f32 %v2972_v18, %v5047_v10  ;;  %4578 = vtanh.f32 %v2976_v40  ;;  %v2980_v2 = vrot.slane %v2927_v32, 7  ;;  %v2984_v23 = vadd.f32 %v2927_v32, %v6307_v27 }
0x1184   :  { %v2929_v63 = vpop.f32.mrf.mxu0  ;;  %v4196_v54 = vpop.f32.mrf.mxu1 }
0x1185   :  { %4580 = vtanh.f32 %v2975_v7  ;;  %v2983_v20 = vadd.f32 %v2980_v2, %v6306_v28 }
0x1186   :  { %4582 = vtanh.f32 %v2984_v23 }
0x1187   :  { %4584 = vtanh.f32 %v2983_v20 }
0x1190   :  { %v4579_v17 = vpop.eup %4578 }
0x1191   :  { %v2992_v46 = vmul.f32 %v4579_v17, %v2966_v47 }
0x1192   :  { %v4581_v30 = vpop.eup %4580 }
0x1193   :  { %v2991_v38 = vmul.f32 %v4581_v30, %v2988_v19  ;;  %v2994_v37 = vadd.f32 %v2992_v46, %v6309_v25  ;;  %v4583_v49 = vpop.eup %4582 }
0x1194   :  { %v4585_v5 = vpop.eup %4584  ;;  %v2998_v8 = vsub.f32 1.0, %v4583_v49  ;;  %v3008_v3 = vmul.f32 %v4583_v49, %v3004_v16 }
0x1195   :  { %v2993_v15 = vadd.f32 %v2991_v38, %v6308_v36  ;;  %4586 = vtanh.f32 %v2994_v37  ;;  %v2997_v29 = vsub.f32 1.0, %v4585_v5  ;;  %v3007_v56 = vmul.f32 %v4585_v5, %v3003_v60 }
0x1197   :  { %4588 = vtanh.f32 %v2993_v15 }
0x11a2   :  { %v4587_v31 = vpop.eup %4586 }
0x11a3   :  { %v3000_v41 = vmul.f32 %v4587_v31, %v2998_v8 }
0x11a4   :  { %v4589_v18 = vpop.eup %4588 }
0x11a5   :  { %v2999_v40 = vmul.f32 %v4589_v18, %v2997_v29  ;;  %v6179_v61 = vadd.f32 %v3008_v3, %v3000_v41 }
0x11a7   :  { %v6181_v7 = vadd.f32 %v3007_v56, %v2999_v40  ;;  %v3012_v50 = vpack.c.bf16 %v6179_v61, %v6179_v61  ;;  %v3138_v15 = vrot.slane %v6179_v61, 7 }
0x11a9   :  { %v3011_v63 = vpack.c.bf16 %v6181_v7, %v6181_v7  ;;  %v3016_v32 = vunpack.c.l.b16 %v3012_v50  ;;  %v3137_v30 = vrot.slane %v6181_v7, 7 }
0x11ab   :  { %v3015_v54 = vunpack.c.l.b16 %v3011_v63 }
0x11ad   :  { %v3017_v2 = vrot.slane %v3015_v54, 1  ;;  %v4358_v54 = vld [vmem:[#allocation8 + $0x38] sm:$0xff]  }
0x11af   :  { %v3018_v48 = vsel %vm742_vm1, %v3016_v32, %v3017_v2  ;;  %v4359_v32 = vld [vmem:[#allocation8 + $0x30] sm:$0xff]   ;;  %v4360_v2 = vld [vmem:[#allocation8 + $0x28] sm:$0xff]  }
0x11b0   :  { %v3019_v47 = vpack.c.b16 %v3018_v48, %v3018_v48  ;;  %v4361_v48 = vld [vmem:[#allocation8 + $0x20] sm:$0xff]  }
0x11b2   :  { %3054 = vmatmul.mubr.bf16.vlgmr.msra.gmra.mxu0 %v3019_v47  ;;  %4214 = vmatmul.mubr.bf16.vlgmr.msra.gmra.mxu1 %v3019_v47  ;;  %v4362_v47 = vld [vmem:[#allocation8 + $0x18] sm:$0xff]  }
0x11b3   :  { %3157 = vmatpush1.bf16.msra.mxu0 %v6030_v45  ;;  %4218 = vmatpush3.bf16.msra.mxu1 %v6033_v52 }
0x11b4   :  { %3158 = vmatprep.subr.bf16.mxu0 %v6036_v42  ;;  %4219 = vmatprep.subr.bf16.mxu1 %v6304_v34 }
0x11b5   :  { %3188 = vmatprep.mubr.bf16.mxu0 %v6305_v57  ;;  %4233 = vmatprep.mubr.msk.bf16.mxu1 %vm4827_vm0, %v6304_v34 }
0x11b7   :  { %3159 = vmatpush1.bf16.msra.mxu0 %v6043_v53  ;;  %4220 = vmatpush3.bf16.msra.mxu1 %v6109_v33 }
0x11b8   :  { %3160 = vmatprep.subr.bf16.mxu0 %v6047_v0  ;;  %4221 = vmatprep.subr.bf16.mxu1 %v6304_v34 }
0x11bb   :  { %3161 = vmatpush1.bf16.msra.mxu0 %v6051_v51  ;;  %4222 = vmatpush3.bf16.msra.mxu1 %v6115_v35 }
0x11bc   :  { %3162 = vmatprep.subr.bf16.mxu0 %v6055_v12  ;;  %4223 = vmatprep.subr.bf16.mxu1 %v6304_v34 }
0x11bf   :  { %3163 = vmatpush1.bf16.msra.mxu0 %v6120_v13  ;;  %4224 = vmatpush3.bf16.msra.mxu1 %v6123_v6 }
0x11c0   :  { %3164 = vmatprep.subr.bf16.mxu0 %v6126_v14  ;;  %4225 = vmatprep.subr.bf16.mxu1 %v6304_v34 }
0x11c3   :  { %3165 = vmatpush1.bf16.msra.mxu0 %v6130_v26  ;;  %4226 = vmatpush3.bf16.msra.mxu1 %v6133_v62 }
0x11c4   :  { %3166 = vmatprep.subr.bf16.mxu0 %v6136_v24  ;;  %4227 = vmatprep.subr.bf16.mxu1 %v6304_v34 }
0x11c7   :  { %3167 = vmatpush1.bf16.msra.mxu0 %v6140_v22  ;;  %4228 = vmatpush3.bf16.msra.mxu1 %v6143_v39 }
0x11c8   :  { %3168 = vmatprep.subr.bf16.mxu0 %v6146_v43  ;;  %4229 = vmatprep.subr.bf16.mxu1 %v6304_v34 }
0x11cb   :  { %3169 = vmatpush1.bf16.msra.mxu0 %v6150_v44  ;;  %4230 = vmatpush3.bf16.msra.mxu1 %v6153_v4 }
0x11cc   :  { %3170 = vmatprep.subr.bf16.mxu0 %v6156_v21  ;;  %4231 = vmatprep.subr.bf16.mxu1 %v6304_v34 }
0x11cf   :  { %3171 = vmatpush1.bf16.msra.mxu0 %v6160_v1  ;;  %4232 = vmatpush3.bf16.msra.mxu1 %v6163_v9 }
0x11d0   :  { %4237 = vmatprep.subr.bf16.mxu0 %v6304_v34  ;;  %4257 = vmatprep.subr.bf16.mxu1 %v6304_v34 }
0x1272   :  { %v3055_v57 = vpop.f32.mrf.mxu0  ;;  %v3096_v45 = vpop.f32.mrf.mxu1 }
0x1273   :  { %v3056_v52 = vadd.f32 %v3055_v57, %v5071_v11  ;;  %v3097_v22 = vadd.f32 %v3096_v45, %v5082_v59  ;;  %v4363_v57 = vld [vmem:[#allocation8 + $0x10] sm:$0xff]   ;;  %v4364_v45 = vld [vmem:[#allocation8 + $0x8] sm:$0xff]  }
0x1274   :  { %v3057_v42 = vpop.f32.mrf.mxu0  ;;  %v4215_v53 = vpop.f32.mrf.mxu1 }
0x1275   :  { %v3103_v0 = vrot.slane %v3056_v52, 6  ;;  %v3104_v51 = vrot.slane %v3056_v52, 7  ;;  %v3058_v26 = vadd.f32 %v3057_v42, %v5079_v55  ;;  %v3121_v44 = vrot.slane %v3097_v22, 6  ;;  %v4365_v52 = vld [vmem:[#allocation8] sm:$0xff]   ;;  %v4366_v42 = vld [vmem:[#allocation10 + $0x38] sm:$0xff]   ;;  %v4367_v53 = vld [vmem:[#allocation10 + $0x30] sm:$0xff]  }
0x1276   :  { %v3059_v12 = vpop.f32.mrf.mxu0  ;;  %v3099_v33 = vpop.f32.mrf.mxu1  ;;  %v3122_v21 = vrot.slane %v3097_v22, 7 }
0x1277   :  { %v3107_v35 = vadd.f32 %v3103_v0, %v5047_v10  ;;  %v3108_v13 = vadd.f32 %v3104_v51, %v5064_v58  ;;  %v3112_v62 = vrot.slane %v3058_v26, 6  ;;  %v3113_v24 = vrot.slane %v3058_v26, 7  ;;  %v4368_v0 = vld [vmem:[#allocation10 + $0x28] sm:$0xff]  }
0x1278   :  { %v3060_v6 = vpop.f32.mrf.mxu0  ;;  %v4216_v14 = vpop.f32.mrf.mxu1 }
0x1279   :  { %4590 = vtanh.f32 %v3107_v35  ;;  %v3116_v39 = vadd.f32 %v3112_v62, %v6306_v28  ;;  %v3117_v43 = vadd.f32 %v3113_v24, %v6307_v27 }
0x127a   :  { %4592 = vtanh.f32 %v3108_v13 }
0x127b   :  { %4594 = vtanh.f32 %v3116_v39 }
0x127c   :  { %4596 = vtanh.f32 %v3117_v43 }
0x1286   :  { %v4591_v4 = vpop.eup %4590 }
0x1287   :  { %v4593_v1 = vpop.eup %4592  ;;  %v3125_v9 = vmul.f32 %v4591_v4, %v3121_v44 }
0x1288   :  { %v3126_v23 = vmul.f32 %v4593_v1, %v3122_v21  ;;  %v4595_v19 = vpop.eup %4594 }
0x1289   :  { %v3127_v20 = vadd.f32 %v3125_v9, %v6308_v36  ;;  %v4597_v46 = vpop.eup %4596  ;;  %v3131_v38 = vsub.f32 1.0, %v4595_v19  ;;  %v3141_v8 = vmul.f32 %v4595_v19, %v3137_v30 }
0x128a   :  { %v3128_v17 = vadd.f32 %v3126_v23, %v6309_v25  ;;  %v3132_v49 = vsub.f32 1.0, %v4597_v46  ;;  %v3142_v60 = vmul.f32 %v4597_v46, %v3138_v15 }
0x128b   :  { %4598 = vtanh.f32 %v3127_v20 }
0x128c   :  { %4600 = vtanh.f32 %v3128_v17 }
0x1298   :  { %v4599_v37 = vpop.eup %4598 }
0x1299   :  { %v4601_v5 = vpop.eup %4600  ;;  %v3133_v16 = vmul.f32 %v4599_v37, %v3131_v38 }
0x129a   :  { %v3134_v31 = vmul.f32 %v4601_v5, %v3132_v49 }
0x129b   :  { %v6234_v29 = vadd.f32 %v3141_v8, %v3133_v16 }
0x129c   :  { %v6236_v41 = vadd.f32 %v3142_v60, %v3134_v31 }
0x129d   :  { %v3145_v3 = vpack.c.bf16 %v6234_v29, %v6234_v29 }
0x129e   :  { %v3146_v18 = vpack.c.bf16 %v6236_v41, %v6236_v41  ;;  %v3273_v37 = vrot.slane %v6236_v41, 7  ;;  %v4370_v41 = vld [vmem:[#allocation10 + $0x18] sm:$0xff]  }
0x129f   :  { %v3149_v40 = vunpack.c.l.b16 %v3145_v3 }
0x12a0   :  { %v3150_v56 = vunpack.c.l.b16 %v3146_v18 }
0x12a1   :  { %v3151_v7 = vrot.slane %v3149_v40, 2 }
0x12a2   :  { %v3152_v61 = vrot.slane %v3150_v56, 1 }
0x12a4   :  { %v3153_v63 = vsel %vm742_vm1, %v3152_v61, %v3151_v7 }
0x12a5   :  { %v3154_v50 = vpack.c.b16 %v3153_v63, %v3153_v63  ;;  %v4369_v63 = vld [vmem:[#allocation10 + $0x20] sm:$0xff]  }
0x12a7   :  { %3189 = vmatmul.mubr.bf16.vlgmr.msra.gmra.mxu0 %v3154_v50  ;;  %4234 = vmatmul.mubr.bf16.vlgmr.msra.gmra.mxu1 %v3154_v50  ;;  %v4371_v50 = vld [vmem:[#allocation10 + $0x10] sm:$0xff]  }
0x12a8   :  { %4253 = vmatprep.mubr.msk.bf16.mxu0 %vm4827_vm0, %v6304_v34  ;;  %4273 = vmatprep.mubr.msk.bf16.mxu1 %vm4827_vm0, %v6304_v34 }
0x12a9   :  { %4238 = vmatpush3.bf16.msra.mxu0 %v4358_v54  ;;  %4258 = vmatpush3.bf16.msra.mxu1 %v4366_v42  ;;  %v4372_v54 = vld [vmem:[#allocation10 + $0x8] sm:$0xff]  }
0x12aa   :  { %4239 = vmatprep.subr.bf16.mxu0 %v6304_v34  ;;  %4259 = vmatprep.subr.bf16.mxu1 %v6304_v34 }
0x12ad   :  { %4240 = vmatpush3.bf16.msra.mxu0 %v4359_v32  ;;  %4260 = vmatpush3.bf16.msra.mxu1 %v4367_v53  ;;  %v4373_v32 = vld [vmem:[#allocation10] sm:$0xff]  }
0x12ae   :  { %4241 = vmatprep.subr.bf16.mxu0 %v6304_v34  ;;  %4261 = vmatprep.subr.bf16.mxu1 %v6304_v34 }
0x12b1   :  { %4242 = vmatpush3.bf16.msra.mxu0 %v4360_v2  ;;  %4262 = vmatpush3.bf16.msra.mxu1 %v4368_v0  ;;  %v3585_v2 = vld [vmem:[%s6288_s6] ss:$0 sm:$0xff]  ;;  %s4788_s6 = scalar_lea.vmem %s3523_s19, 32 }
0x12b2   :  { %4243 = vmatprep.subr.bf16.mxu0 %v6304_v34  ;;  %4263 = vmatprep.subr.bf16.mxu1 %v6304_v34  ;;  %v3594_v0 = vld [vmem:[%s6290_s8] ss:$0 sm:$0xff]  ;;  %p4789_p11 = scmp.ne.s32.totalorder %s3523_s19, %s4788_s6  ;;  %p4794_p13 = scmp.lt.s32.totalorder %s4788_s6, %s4788_s6 }
0x12b4   :  { %p4795_p0 = por %p4794_p13, %p4793_p12 }
0x12b5   :  { %4244 = vmatpush3.bf16.msra.mxu0 %v4361_v48  ;;  %4264 = vmatpush3.bf16.msra.mxu1 %v4369_v63 }
0x12b6   :  { %4245 = vmatprep.subr.bf16.mxu0 %v6304_v34  ;;  %4265 = vmatprep.subr.bf16.mxu1 %v6304_v34  ;;  %p4796_p1 = pnand %p4795_p0, %p4789_p11 }
0x12b9   :  { %4246 = vmatpush3.bf16.msra.mxu0 %v4362_v47  ;;  %4266 = vmatpush3.bf16.msra.mxu1 %v4370_v41 }
0x12ba   :  { %4247 = vmatprep.subr.bf16.mxu0 %v6304_v34  ;;  %4267 = vmatprep.subr.bf16.mxu1 %v6304_v34 }
0x12bd   :  { %4248 = vmatpush3.bf16.msra.mxu0 %v4363_v57  ;;  %4268 = vmatpush3.bf16.msra.mxu1 %v4371_v50 }
0x12be   :  { %4249 = vmatprep.subr.bf16.mxu0 %v6304_v34  ;;  %4269 = vmatprep.subr.bf16.mxu1 %v6304_v34 }
0x12c1   :  { %4250 = vmatpush3.bf16.msra.mxu0 %v4364_v45  ;;  %4270 = vmatpush3.bf16.msra.mxu1 %v4372_v54 }
0x12c2   :  { %4251 = vmatprep.subr.bf16.mxu0 %v6304_v34  ;;  %4271 = vmatprep.subr.bf16.mxu1 %v6304_v34 }
0x12c5   :  { %4252 = vmatpush3.bf16.msra.mxu0 %v4365_v52  ;;  %4272 = vmatpush3.bf16.msra.mxu1 %v4373_v32 }
0x1367   :  { %v3190_v51 = vpop.f32.mrf.mxu0  ;;  %v3231_v12 = vpop.f32.mrf.mxu1 }
0x1368   :  { %v3191_v33 = vadd.f32 %v3190_v51, %v5071_v11  ;;  %v3232_v11 = vadd.f32 %v3231_v12, %v5082_v59 }
0x1369   :  { %v3192_v35 = vpop.f32.mrf.mxu0  ;;  %v4235_v13 = vpop.f32.mrf.mxu1 }
0x136a   :  { %v3238_v6 = vrot.slane %v3191_v33, 5  ;;  %v3239_v14 = vrot.slane %v3191_v33, 6  ;;  %v3193_v44 = vadd.f32 %v3192_v35, %v5079_v55  ;;  %v3256_v23 = vrot.slane %v3232_v11, 5 }
0x136b   :  { %v3194_v26 = vpop.f32.mrf.mxu0  ;;  %v3234_v62 = vpop.f32.mrf.mxu1  ;;  %v3257_v17 = vrot.slane %v3232_v11, 6 }
0x136c   :  { %v3242_v24 = vadd.f32 %v3238_v6, %v5047_v10  ;;  %v3243_v22 = vadd.f32 %v3239_v14, %v5064_v58  ;;  %v3247_v4 = vrot.slane %v3193_v44, 5  ;;  %v3248_v21 = vrot.slane %v3193_v44, 6 }
0x136d   :  { %v3195_v39 = vpop.f32.mrf.mxu0  ;;  %v4236_v43 = vpop.f32.mrf.mxu1 }
0x136e   :  { %4602 = vtanh.f32 %v3242_v24  ;;  %v3251_v1 = vadd.f32 %v3247_v4, %v6306_v28  ;;  %v3252_v9 = vadd.f32 %v3248_v21, %v6307_v27  ;;  %v3272_v28 = vrot.slane %v6234_v29, 7 }
0x136f   :  { %4604 = vtanh.f32 %v3243_v22 }
0x1370   :  { %4606 = vtanh.f32 %v3251_v1 }
0x1371   :  { %4608 = vtanh.f32 %v3252_v9 }
0x137b   :  { %v4603_v20 = vpop.eup %4602 }
0x137c   :  { %v4605_v10 = vpop.eup %4604  ;;  %v3260_v19 = vmul.f32 %v4603_v20, %v3256_v23 }
0x137d   :  { %v3261_v58 = vmul.f32 %v4605_v10, %v3257_v17  ;;  %v4607_v30 = vpop.eup %4606 }
0x137e   :  { %v3262_v46 = vadd.f32 %v3260_v19, %v6308_v36  ;;  %v4609_v59 = vpop.eup %4608  ;;  %v3266_v38 = vsub.f32 1.0, %v4607_v30  ;;  %v3276_v16 = vmul.f32 %v4607_v30, %v3272_v28 }
0x137f   :  { %v3263_v55 = vadd.f32 %v3261_v58, %v6309_v25  ;;  %v3267_v15 = vsub.f32 1.0, %v4609_v59  ;;  %v3277_v31 = vmul.f32 %v4609_v59, %v3273_v37 }
0x1380   :  { %4610 = vtanh.f32 %v3262_v46 }
0x1381   :  { %4612 = vtanh.f32 %v3263_v55 }
0x138d   :  { %v4611_v27 = vpop.eup %4610 }
0x138e   :  { %v4613_v49 = vpop.eup %4612  ;;  %v3268_v5 = vmul.f32 %v4611_v27, %v3266_v38 }
0x138f   :  { %v3269_v8 = vmul.f32 %v4613_v49, %v3267_v15 }
0x1390   :  { %v3278_v60 = vadd.f32 %v3276_v16, %v3268_v5 }
0x1391   :  { %v3279_v36 = vadd.f32 %v3277_v31, %v3269_v8 }
0x1392   :  { %v3280_v3 = vpack.c.bf16 %v3278_v60, %v3278_v60 }
0x1393   :  { %v3281_v25 = vpack.c.bf16 %v3279_v36, %v3279_v36 }
0x1394   :  { %v3307_v18 = vunpack.c.l.b16 %v3280_v3 }
0x1395   :  { %v3308_v40 = vunpack.c.l.b16 %v3281_v25 }
0x1396   :  { %v3309_v56 = vrot.slane %v3307_v18, 3 }
0x1397   :  { %v3310_v7 = vrot.slane %v3308_v40, 2 }
0x1399   :  { %v3311_v29 = vsel %vm742_vm1, %v3310_v7, %v3309_v56 }
0x139a   :  { %v3312_v61 = vpack.c.b16 %v3311_v29, %v3311_v29 }
0x139c   :  { %4254 = vmatmul.mubr.bf16.vlgmr.msra.gmra.mxu0 %v3312_v61 }
0x145c   :  { %v3396_v48 = vpop.f32.mrf.mxu0 }
0x145d   :  { %v3397_v47 = vadd.f32 %v3585_v2, %v3396_v48 }
0x145e   :  { %v4255_v57 = vpop.f32.mrf.mxu0 }
0x145f   :  { %4614 = vtanh.f32 %v3397_v47 }
0x1460   :  { %v3399_v45 = vpop.f32.mrf.mxu0 }
0x1462   :  { %v4256_v52 = vpop.f32.mrf.mxu0 }
0x146c   :  { %v4615_v42 = vpop.eup %4614 }
0x146d   :  { %v3403_v53 = vpack.c.bf16 %v4615_v42, %v4615_v42 }
0x146f   :  { %4274 = vmatmul.mubr.bf16.vlgmr.msra.gmra.mxu1 %v3403_v53 }
0x152f   :  { %v3509_v34 = vpop.f32.mrf.mxu1 }
0x1530   :  { %v3510_v51 = vadd.f32 %v3594_v0, %v3509_v34 }
0x1531   :  { %v4275_v12 = vpop.f32.mrf.mxu1 }
0x1532   :  { %3515 = vst [vmem:[#allocation11] sm:$0x3] %v3510_v51 }
0x1533   :  { %v3512_v33 = vpop.f32.mrf.mxu1 }
0x1534   :  { %4799 = shalt.err (!%p4796_p1)
}
0x1535   :  { %3525 = dma.vmem_to_hbm [thread:$0]  %s3523_s19, 32, %s6291_s9, [#allocation4]   ;;  %v4276_v35 = vpop.f32.mrf.mxu1 }
0x1536   :  { %4814 = dma.done.wait [#allocation4], 32  }
0x1537   :  { %4815 = vsyncadd [#allocation4], 4294967264 }
0x1538   :  { %3529 = vsyncpa [#allocation3], 1 }
0x1539   :  { %3530 = vsyncpa [#allocation6], 1 }
0x153a   :  { %3531 = vsyncpa [#allocation9], 1 }
0x153b   :  { %3532 = vsyncpa [#allocation4], 1 }

</bundles_post_ra>
